<compile_context>
chip_gen: v6e
topology: v6e:2x2x1
jax: 0.10.0
libtpu: 0.0.40
codegen_flags: <defaults>
</compile_context>

<pallas_src>
import functools
import math
import numpy as np
import jax
import jax.numpy as jnp
from jax.experimental import pallas as pl
from jax.experimental.pallas import tpu as pltpu

# ---------------- small synthetic CLIP-ViT config ----------------
IMG_IN   = 20            # raw input spatial size
IMG_OUT  = 16            # preprocess resize target (real CLIP: 224)
PATCH    = 8
WIDTH    = 32
HEADS    = 4
LAYERS   = 2
OUT_DIM  = 16
GRID_HW  = IMG_OUT // PATCH
N_PATCH  = GRID_HW * GRID_HW
SEQ      = N_PATCH + 1
SEQ_PAD  = 8             # pad each batch's token block to a full sublane tile
HEAD_DIM = WIDTH // HEADS
MLP_DIM  = 4 * WIDTH
EPS      = 1e-5
NEG      = -1e30

CLIP_MEAN = np.array([0.48145466, 0.4578275, 0.40821073], np.float32)
CLIP_STD  = np.array([0.26862954, 0.26130258, 0.27577711], np.float32)

_VMEM = pl.BlockSpec(memory_space=pltpu.MemorySpace.VMEM)


# ---------------- bicubic interpolation matrix (host-side, numpy) ----------------
def _cubic(x, a=-0.75):
    x = np.abs(x)
    return np.where(
        x <= 1.0, (a + 2.0) * x**3 - (a + 3.0) * x**2 + 1.0,
        np.where(x < 2.0, a * x**3 - 5.0 * a * x**2 + 8.0 * a * x - 4.0 * a, 0.0))


def bicubic_matrix(n_out, n_in, align_corners=True):
    M = np.zeros((n_out, n_in), dtype=np.float32)
    for i in range(n_out):
        if align_corners and n_out > 1:
            src = i * (n_in - 1) / (n_out - 1)
        else:
            src = (i + 0.5) * n_in / n_out - 0.5
        f = int(np.floor(src))
        t = src - f
        for k in range(-1, 3):
            idx = min(max(f + k, 0), n_in - 1)          # border replicate
            M[i, idx] += _cubic(k - t)
    return M


# ---------------- host-side constant folding (done once, outside the kernel) ----------------
def build_operands(params, batch):
    wh = bicubic_matrix(IMG_OUT, IMG_IN)                          # (Hout, Hin)
    ww = bicubic_matrix(IMG_OUT, IMG_IN)                          # (Wout, Win)
    scale = 0.5 / CLIP_STD                                        # folds (x+1)/2 + normalize
    shift = (0.5 - CLIP_MEAN) / CLIP_STD
    conv_w = np.asarray(params["conv_w"], np.float32)             # (3, P, P, WIDTH)

    # Gbig[c*Win+wi, (ph*GRID_HW+gw)*WIDTH+o] = sum_pw ww[gw*P+pw, wi] * scale[c]*conv_w[c,ph,pw,o]
    wprime = conv_w * scale[:, None, None, None]
    ww_r = ww.reshape(GRID_HW, PATCH, IMG_IN)                     # (gw, pw, wi)
    gbig = np.einsum('gpw,chpo->cwhgo', ww_r, wprime).reshape(
        3 * IMG_IN, PATCH * GRID_HW * WIDTH).astype(np.float32)   # (60, 512)

    # normalize-shift folded into a per-output-channel token bias (conv is linear, bias-free)
    tok_bias = np.einsum('c,chpo->o', shift, conv_w).astype(np.float32)    # (WIDTH,)

    # A2[ph] maps (b,hi)-rows -> padded-sequence rows (H-direction bicubic + conv ph contraction)
    a2 = np.zeros((PATCH, batch * SEQ_PAD, batch * IMG_IN), np.float32)
    gwsel = np.zeros((batch * SEQ_PAD, 1), np.float32)
    pos = np.asarray(params["pos_emb"], np.float32)               # (SEQ, WIDTH)
    cls = np.asarray(params["class_emb"], np.float32)             # (1, WIDTH)
    seq_bias = np.zeros((batch * SEQ_PAD, WIDTH), np.float32)
    for b in range(batch):
        seq_bias[b * SEQ_PAD] = cls[0] + pos[0]                   # CLS slot
        for pidx in range(N_PATCH):
            gh, gw = divmod(pidx, GRID_HW)
            slot = b * SEQ_PAD + 1 + pidx
            a2[:, slot, b * IMG_IN:(b + 1) * IMG_IN] = wh[gh * PATCH:(gh + 1) * PATCH, :]
            gwsel[slot, 0] = float(gw)
            seq_bias[slot] = pos[1 + pidx] + tok_bias
        # slots SEQ..SEQ_PAD-1 stay zero (padding rows, masked in attention)

    ops = dict(gbig=jnp.asarray(gbig), a2=jnp.asarray(a2),
               gwsel=jnp.asarray(gwsel), seq_bias=jnp.asarray(seq_bias))
    for k in ("ln_pre_g", "ln_pre_b", "ln1_g", "ln1_b", "qkv_w", "qkv_b",
              "out_w", "out_b", "ln2_g", "ln2_b", "fc1_w", "fc1_b",
              "fc2_w", "fc2_b", "ln_post_g", "ln_post_b", "proj"):
        ops[k] = params[k]
    return ops


# ---------------- the fused kernel ----------------
def _ln(x, g, b):
    mu = jnp.mean(x, axis=-1, keepdims=True)
    xc = x - mu
    var = jnp.mean(xc * xc, axis=-1, keepdims=True)
    return xc * jax.lax.rsqrt(var + EPS) * g + b


def _clip_kernel(x_ref, gbig_ref, a2_ref, gwsel_ref, bias_ref,
                 ln_pre_g_ref, ln_pre_b_ref,
                 ln1_g_ref, ln1_b_ref, qkv_w_ref, qkv_b_ref,
                 out_w_ref, out_b_ref, ln2_g_ref, ln2_b_ref,
                 fc1_w_ref, fc1_b_ref, fc2_w_ref, fc2_b_ref,
                 ln_post_g_ref, ln_post_b_ref, proj_ref,
                 o_ref, *, batch):
    n_rows = batch * SEQ_PAD
    BW = GRID_HW * WIDTH                                          # 64

    # ---- gather NCHW input into (B*Hin, 3*Win) with channels on lanes (values only) ----
    chans = []
    for c in range(3):
        planes = [x_ref[b, c, :, :] for b in range(batch)]
        chans.append(planes[0] if batch == 1 else jnp.concatenate(planes, axis=0))
    xr = jnp.concatenate(chans, axis=1)                           # (B*Hin, 3*Win)

    # ---- W-direction bicubic + normalize-scale + conv pw-contraction: one matmul ----
    u = jnp.dot(xr, gbig_ref[...], preferred_element_type=jnp.float32)    # (B*Hin, P*2*WIDTH)

    # ---- H-direction bicubic + conv ph-contraction: 8 accumulating matmuls ----
    v = jnp.dot(a2_ref[0], u[:, :BW], preferred_element_type=jnp.float32)  # (B*SEQ_PAD, 64)
    for ph in range(1, PATCH):
        v = v + jnp.dot(a2_ref[ph], u[:, ph * BW:(ph + 1) * BW],
                        preferred_element_type=jnp.float32)

    # ---- pick gw lane-half per row, add CLS / positional / normalize-shift biases ----
    gsel = gwsel_ref[...]                                         # (B*SEQ_PAD, 1)
    x = jnp.where(gsel > 0.5, v[:, WIDTH:], v[:, :WIDTH]) + bias_ref[...]

    # ---- ln_pre (residual stream starts here) ----
    x = _ln(x, ln_pre_g_ref[...], ln_pre_b_ref[...])              # (B*SEQ_PAD, WIDTH)

    att_scale = 1.0 / math.sqrt(HEAD_DIM)
    kmask = jax.lax.broadcasted_iota(jnp.int32, (SEQ_PAD, SEQ_PAD), 1) < SEQ   # mask pad keys

    for l in range(LAYERS):                                       # unrolled (LAYERS=2)
        # ---- pre-LN multi-head self-attention + residual (all values, no scratch) ----
        h = _ln(x, ln1_g_ref[l], ln1_b_ref[l])
        qkv = jnp.dot(h, qkv_w_ref[l], preferred_element_type=jnp.float32) + qkv_b_ref[l]
        per_batch = []
        for b in range(batch):                                    # 8-row aligned slices
            rb = qkv[b * SEQ_PAD:(b + 1) * SEQ_PAD, :]            # (SEQ_PAD, 3*WIDTH)
            heads = []
            for hd in range(HEADS):
                q = rb[:, hd * HEAD_DIM:(hd + 1) * HEAD_DIM]
                k = rb[:, WIDTH + hd * HEAD_DIM: WIDTH + (hd + 1) * HEAD_DIM]
                vv = rb[:, 2 * WIDTH + hd * HEAD_DIM: 2 * WIDTH + (hd + 1) * HEAD_DIM]
                s = jax.lax.dot_general(q, k, (((1,), (1,)), ((), ())),
                                        preferred_element_type=jnp.float32) * att_scale
                s = jnp.where(kmask, s, NEG)
                s = s - jnp.max(s, axis=-1, keepdims=True)
                p = jnp.exp(s)
                p = p / jnp.sum(p, axis=-1, keepdims=True)        # exact divide (parity)
                heads.append(jnp.dot(p, vv, preferred_element_type=jnp.float32))
            per_batch.append(jnp.concatenate(heads, axis=1))      # lane-dense (SEQ_PAD, WIDTH)
        attn = per_batch[0] if batch == 1 else jnp.concatenate(per_batch, axis=0)
        x = x + jnp.dot(attn, out_w_ref[l], preferred_element_type=jnp.float32) + out_b_ref[l]

        # ---- pre-LN MLP (QuickGELU) + residual ----
        h = _ln(x, ln2_g_ref[l], ln2_b_ref[l])
        h = jnp.dot(h, fc1_w_ref[l], preferred_element_type=jnp.float32) + fc1_b_ref[l]
        h = h * jax.nn.sigmoid(1.702 * h)                         # QuickGELU
        x = x + jnp.dot(h, fc2_w_ref[l], preferred_element_type=jnp.float32) + fc2_b_ref[l]

    # ---- ln_post on all CLS tokens at once + one projection matmul + one store ----
    cls_list = [x[b * SEQ_PAD:b * SEQ_PAD + 1, :] for b in range(batch)]
    cls_rows = cls_list[0] if batch == 1 else jnp.concatenate(cls_list, axis=0)   # (B, WIDTH)
    cls_rows = _ln(cls_rows, ln_post_g_ref[...], ln_post_b_ref[...])
    o_ref[...] = jnp.dot(cls_rows, proj_ref[...], preferred_element_type=jnp.float32)


def clip_image_embed(ops, x):
    batch = x.shape[0]
    return pl.pallas_call(
        functools.partial(_clip_kernel, batch=batch),
        out_shape=jax.ShapeDtypeStruct((batch, OUT_DIM), jnp.float32),
        in_specs=[_VMEM] * 22,
        out_specs=_VMEM,
    )(x, ops["gbig"], ops["a2"], ops["gwsel"], ops["seq_bias"],
      ops["ln_pre_g"], ops["ln_pre_b"],
      ops["ln1_g"], ops["ln1_b"], ops["qkv_w"], ops["qkv_b"],
      ops["out_w"], ops["out_b"], ops["ln2_g"], ops["ln2_b"],
      ops["fc1_w"], ops["fc1_b"], ops["fc2_w"], ops["fc2_b"],
      ops["ln_post_g"], ops["ln_post_b"], ops["proj"])


# ---------------- deterministic parameter init (stacked per-layer weights) ----------------
def init_params(key):
    ks = jax.random.split(key, 4 + LAYERS)

    def nrm(k, shape, s=0.02):
        return (s * jax.random.normal(k, shape)).astype(jnp.float32)

    ones = lambda *s: jnp.ones(s, jnp.float32)
    zeros = lambda *s: jnp.zeros(s, jnp.float32)

    qkv_w, out_w, fc1_w, fc2_w = [], [], [], []
    for l in range(LAYERS):
        bk = jax.random.split(ks[4 + l], 4)
        qkv_w.append(nrm(bk[0], (WIDTH, 3 * WIDTH)))
        out_w.append(nrm(bk[1], (WIDTH, WIDTH)))
        fc1_w.append(nrm(bk[2], (WIDTH, MLP_DIM)))
        fc2_w.append(nrm(bk[3], (MLP_DIM, WIDTH)))

    return dict(
        conv_w=nrm(ks[0], (3, PATCH, PATCH, WIDTH)),   # conv1 weight (bias-free), (c,ph,pw,width)
        class_emb=nrm(ks[1], (1, WIDTH)),
        pos_emb=nrm(ks[2], (SEQ, WIDTH)),
        ln_pre_g=ones(1, WIDTH), ln_pre_b=zeros(1, WIDTH),
        ln_post_g=ones(1, WIDTH), ln_post_b=zeros(1, WIDTH),
        proj=nrm(ks[3], (WIDTH, OUT_DIM)),
        ln1_g=ones(LAYERS, 1, WIDTH), ln1_b=zeros(LAYERS, 1, WIDTH),
        ln2_g=ones(LAYERS, 1, WIDTH), ln2_b=zeros(LAYERS, 1, WIDTH),
        qkv_w=jnp.stack(qkv_w), qkv_b=zeros(LAYERS, 1, 3 * WIDTH),
        out_w=jnp.stack(out_w), out_b=zeros(LAYERS, 1, WIDTH),
        fc1_w=jnp.stack(fc1_w), fc1_b=zeros(LAYERS, 1, MLP_DIM),
        fc2_w=jnp.stack(fc2_w), fc2_b=zeros(LAYERS, 1, WIDTH),
    )


if __name__ == "__main__":
    key = jax.random.PRNGKey(0)
    kx, kp = jax.random.split(key)

    # image in [-1, 1], NCHW like the PyTorch module expects
    x = jax.random.uniform(kx, (2, 3, IMG_IN, IMG_IN), jnp.float32, -1.0, 1.0)
    params = init_params(kp)
    ops = build_operands(params, batch=x.shape[0])   # one-time host-side weight folding

    out = clip_image_embed(ops, x)                   # single fused pallas_call per forward
    jax.block_until_ready(out)
    assert out.shape == (x.shape[0], OUT_DIM) and out.dtype == jnp.float32
    assert bool(jnp.all(jnp.isfinite(out)))
    print("KERNEL_OK")
</pallas_src>

<mosaic_0001>
module attributes {stable_mosaic.version = 11 : i64} {
  func.func @_clip_kernel(%arg0: memref<2x3x20x20xf32, #tpu.memory_space<vmem>>, %arg1: memref<60x512xf32, #tpu.memory_space<vmem>>, %arg2: memref<8x16x40xf32, #tpu.memory_space<vmem>>, %arg3: memref<16x1xf32, #tpu.memory_space<vmem>>, %arg4: memref<16x32xf32, #tpu.memory_space<vmem>>, %arg5: memref<1x32xf32, #tpu.memory_space<vmem>>, %arg6: memref<1x32xf32, #tpu.memory_space<vmem>>, %arg7: memref<2x1x32xf32, #tpu.memory_space<vmem>>, %arg8: memref<2x1x32xf32, #tpu.memory_space<vmem>>, %arg9: memref<2x32x96xf32, #tpu.memory_space<vmem>>, %arg10: memref<2x1x96xf32, #tpu.memory_space<vmem>>, %arg11: memref<2x32x32xf32, #tpu.memory_space<vmem>>, %arg12: memref<2x1x32xf32, #tpu.memory_space<vmem>>, %arg13: memref<2x1x32xf32, #tpu.memory_space<vmem>>, %arg14: memref<2x1x32xf32, #tpu.memory_space<vmem>>, %arg15: memref<2x32x128xf32, #tpu.memory_space<vmem>>, %arg16: memref<2x1x128xf32, #tpu.memory_space<vmem>>, %arg17: memref<2x128x32xf32, #tpu.memory_space<vmem>>, %arg18: memref<2x1x32xf32, #tpu.memory_space<vmem>>, %arg19: memref<1x32xf32, #tpu.memory_space<vmem>>, %arg20: memref<1x32xf32, #tpu.memory_space<vmem>>, %arg21: memref<32x16xf32, #tpu.memory_space<vmem>>, %arg22: memref<2x16xf32, #tpu.memory_space<vmem>>) attributes {dimension_semantics = [], scalar_prefetch = 0 : i64, scratch_operands = 0 : i64, tpu.core_type = #tpu.core_type<tc>} {
    %c0 = arith.constant 0 : index
    %c0_0 = arith.constant 0 : index
    %c0_1 = arith.constant 0 : index
    %c0_2 = arith.constant 0 : index
    %0 = vector.load %arg0[%c0, %c0_0, %c0_1, %c0_2] : memref<2x3x20x20xf32, #tpu.memory_space<vmem>>, vector<1x1x20x20xf32>
    %1 = vector.shape_cast %0 : vector<1x1x20x20xf32> to vector<20x20xf32>
    %c1 = arith.constant 1 : index
    %c0_3 = arith.constant 0 : index
    %c0_4 = arith.constant 0 : index
    %c0_5 = arith.constant 0 : index
    %2 = vector.load %arg0[%c1, %c0_3, %c0_4, %c0_5] : memref<2x3x20x20xf32, #tpu.memory_space<vmem>>, vector<1x1x20x20xf32>
    %3 = vector.shape_cast %2 : vector<1x1x20x20xf32> to vector<20x20xf32>
    %4 = tpu.concatenate %1, %3 in 0 : vector<20x20xf32>, vector<20x20xf32> -> vector<40x20xf32>
    %c0_6 = arith.constant 0 : index
    %c1_7 = arith.constant 1 : index
    %c0_8 = arith.constant 0 : index
    %c0_9 = arith.constant 0 : index
    %5 = vector.load %arg0[%c0_6, %c1_7, %c0_8, %c0_9] : memref<2x3x20x20xf32, #tpu.memory_space<vmem>>, vector<1x1x20x20xf32>
    %6 = vector.shape_cast %5 : vector<1x1x20x20xf32> to vector<20x20xf32>
    %c1_10 = arith.constant 1 : index
    %c1_11 = arith.constant 1 : index
    %c0_12 = arith.constant 0 : index
    %c0_13 = arith.constant 0 : index
    %7 = vector.load %arg0[%c1_10, %c1_11, %c0_12, %c0_13] : memref<2x3x20x20xf32, #tpu.memory_space<vmem>>, vector<1x1x20x20xf32>
    %8 = vector.shape_cast %7 : vector<1x1x20x20xf32> to vector<20x20xf32>
    %9 = tpu.concatenate %6, %8 in 0 : vector<20x20xf32>, vector<20x20xf32> -> vector<40x20xf32>
    %c0_14 = arith.constant 0 : index
    %c2 = arith.constant 2 : index
    %c0_15 = arith.constant 0 : index
    %c0_16 = arith.constant 0 : index
    %10 = vector.load %arg0[%c0_14, %c2, %c0_15, %c0_16] : memref<2x3x20x20xf32, #tpu.memory_space<vmem>>, vector<1x1x20x20xf32>
    %11 = vector.shape_cast %10 : vector<1x1x20x20xf32> to vector<20x20xf32>
    %c1_17 = arith.constant 1 : index
    %c2_18 = arith.constant 2 : index
    %c0_19 = arith.constant 0 : index
    %c0_20 = arith.constant 0 : index
    %12 = vector.load %arg0[%c1_17, %c2_18, %c0_19, %c0_20] : memref<2x3x20x20xf32, #tpu.memory_space<vmem>>, vector<1x1x20x20xf32>
    %13 = vector.shape_cast %12 : vector<1x1x20x20xf32> to vector<20x20xf32>
    %14 = tpu.concatenate %11, %13 in 0 : vector<20x20xf32>, vector<20x20xf32> -> vector<40x20xf32>
    %15 = tpu.concatenate %4, %9, %14 in 1 : vector<40x20xf32>, vector<40x20xf32>, vector<40x20xf32> -> vector<40x60xf32>
    %c0_21 = arith.constant 0 : index
    %c0_22 = arith.constant 0 : index
    %16 = vector.load %arg1[%c0_21, %c0_22] : memref<60x512xf32, #tpu.memory_space<vmem>>, vector<60x512xf32>
    %cst = arith.constant dense<0.000000e+00> : vector<40x512xf32>
    %17 = tpu.matmul %15, %16, %cst {dimension_numbers = #tpu.dot_dimension_numbers<[1], [0], [0], [1], [0, 0, 1, 1], [], []>} : vector<40x60xf32>, vector<60x512xf32>, vector<40x512xf32> -> vector<40x512xf32>
    %c0_23 = arith.constant 0 : index
    %c0_24 = arith.constant 0 : index
    %c0_25 = arith.constant 0 : index
    %18 = vector.load %arg2[%c0_23, %c0_24, %c0_25] : memref<8x16x40xf32, #tpu.memory_space<vmem>>, vector<1x16x40xf32>
    %19 = vector.shape_cast %18 : vector<1x16x40xf32> to vector<16x40xf32>
    %20 = vector.extract_strided_slice %17 {offsets = [0, 0], sizes = [40, 64], strides = [1, 1]} : vector<40x512xf32> to vector<40x64xf32>
    %cst_26 = arith.constant dense<0.000000e+00> : vector<16x64xf32>
    %21 = tpu.matmul %19, %20, %cst_26 {dimension_numbers = #tpu.dot_dimension_numbers<[1], [0], [0], [1], [0, 0, 1, 1], [], []>} : vector<16x40xf32>, vector<40x64xf32>, vector<16x64xf32> -> vector<16x64xf32>
    %c1_27 = arith.constant 1 : index
    %c0_28 = arith.constant 0 : index
    %c0_29 = arith.constant 0 : index
    %22 = vector.load %arg2[%c1_27, %c0_28, %c0_29] : memref<8x16x40xf32, #tpu.memory_space<vmem>>, vector<1x16x40xf32>
    %23 = vector.shape_cast %22 : vector<1x16x40xf32> to vector<16x40xf32>
    %24 = vector.extract_strided_slice %17 {offsets = [0, 64], sizes = [40, 64], strides = [1, 1]} : vector<40x512xf32> to vector<40x64xf32>
    %cst_30 = arith.constant dense<0.000000e+00> : vector<16x64xf32>
    %25 = tpu.matmul %23, %24, %cst_30 {dimension_numbers = #tpu.dot_dimension_numbers<[1], [0], [0], [1], [0, 0, 1, 1], [], []>} : vector<16x40xf32>, vector<40x64xf32>, vector<16x64xf32> -> vector<16x64xf32>
    %26 = arith.addf %21, %25 : vector<16x64xf32>
    %c2_31 = arith.constant 2 : index
    %c0_32 = arith.constant 0 : index
    %c0_33 = arith.constant 0 : index
    %27 = vector.load %arg2[%c2_31, %c0_32, %c0_33] : memref<8x16x40xf32, #tpu.memory_space<vmem>>, vector<1x16x40xf32>
    %28 = vector.shape_cast %27 : vector<1x16x40xf32> to vector<16x40xf32>
    %29 = vector.extract_strided_slice %17 {offsets = [0, 128], sizes = [40, 64], strides = [1, 1]} : vector<40x512xf32> to vector<40x64xf32>
    %cst_34 = arith.constant dense<0.000000e+00> : vector<16x64xf32>
    %30 = tpu.matmul %28, %29, %cst_34 {dimension_numbers = #tpu.dot_dimension_numbers<[1], [0], [0], [1], [0, 0, 1, 1], [], []>} : vector<16x40xf32>, vector<40x64xf32>, vector<16x64xf32> -> vector<16x64xf32>
    %31 = arith.addf %26, %30 : vector<16x64xf32>
    %c3 = arith.constant 3 : index
    %c0_35 = arith.constant 0 : index
    %c0_36 = arith.constant 0 : index
    %32 = vector.load %arg2[%c3, %c0_35, %c0_36] : memref<8x16x40xf32, #tpu.memory_space<vmem>>, vector<1x16x40xf32>
    %33 = vector.shape_cast %32 : vector<1x16x40xf32> to vector<16x40xf32>
    %34 = vector.extract_strided_slice %17 {offsets = [0, 192], sizes = [40, 64], strides = [1, 1]} : vector<40x512xf32> to vector<40x64xf32>
    %cst_37 = arith.constant dense<0.000000e+00> : vector<16x64xf32>
    %35 = tpu.matmul %33, %34, %cst_37 {dimension_numbers = #tpu.dot_dimension_numbers<[1], [0], [0], [1], [0, 0, 1, 1], [], []>} : vector<16x40xf32>, vector<40x64xf32>, vector<16x64xf32> -> vector<16x64xf32>
    %36 = arith.addf %31, %35 : vector<16x64xf32>
    %c4 = arith.constant 4 : index
    %c0_38 = arith.constant 0 : index
    %c0_39 = arith.constant 0 : index
    %37 = vector.load %arg2[%c4, %c0_38, %c0_39] : memref<8x16x40xf32, #tpu.memory_space<vmem>>, vector<1x16x40xf32>
    %38 = vector.shape_cast %37 : vector<1x16x40xf32> to vector<16x40xf32>
    %39 = vector.extract_strided_slice %17 {offsets = [0, 256], sizes = [40, 64], strides = [1, 1]} : vector<40x512xf32> to vector<40x64xf32>
    %cst_40 = arith.constant dense<0.000000e+00> : vector<16x64xf32>
    %40 = tpu.matmul %38, %39, %cst_40 {dimension_numbers = #tpu.dot_dimension_numbers<[1], [0], [0], [1], [0, 0, 1, 1], [], []>} : vector<16x40xf32>, vector<40x64xf32>, vector<16x64xf32> -> vector<16x64xf32>
    %41 = arith.addf %36, %40 : vector<16x64xf32>
    %c5 = arith.constant 5 : index
    %c0_41 = arith.constant 0 : index
    %c0_42 = arith.constant 0 : index
    %42 = vector.load %arg2[%c5, %c0_41, %c0_42] : memref<8x16x40xf32, #tpu.memory_space<vmem>>, vector<1x16x40xf32>
    %43 = vector.shape_cast %42 : vector<1x16x40xf32> to vector<16x40xf32>
    %44 = vector.extract_strided_slice %17 {offsets = [0, 320], sizes = [40, 64], strides = [1, 1]} : vector<40x512xf32> to vector<40x64xf32>
    %cst_43 = arith.constant dense<0.000000e+00> : vector<16x64xf32>
    %45 = tpu.matmul %43, %44, %cst_43 {dimension_numbers = #tpu.dot_dimension_numbers<[1], [0], [0], [1], [0, 0, 1, 1], [], []>} : vector<16x40xf32>, vector<40x64xf32>, vector<16x64xf32> -> vector<16x64xf32>
    %46 = arith.addf %41, %45 : vector<16x64xf32>
    %c6 = arith.constant 6 : index
    %c0_44 = arith.constant 0 : index
    %c0_45 = arith.constant 0 : index
    %47 = vector.load %arg2[%c6, %c0_44, %c0_45] : memref<8x16x40xf32, #tpu.memory_space<vmem>>, vector<1x16x40xf32>
    %48 = vector.shape_cast %47 : vector<1x16x40xf32> to vector<16x40xf32>
    %49 = vector.extract_strided_slice %17 {offsets = [0, 384], sizes = [40, 64], strides = [1, 1]} : vector<40x512xf32> to vector<40x64xf32>
    %cst_46 = arith.constant dense<0.000000e+00> : vector<16x64xf32>
    %50 = tpu.matmul %48, %49, %cst_46 {dimension_numbers = #tpu.dot_dimension_numbers<[1], [0], [0], [1], [0, 0, 1, 1], [], []>} : vector<16x40xf32>, vector<40x64xf32>, vector<16x64xf32> -> vector<16x64xf32>
    %51 = arith.addf %46, %50 : vector<16x64xf32>
    %c7 = arith.constant 7 : index
    %c0_47 = arith.constant 0 : index
    %c0_48 = arith.constant 0 : index
    %52 = vector.load %arg2[%c7, %c0_47, %c0_48] : memref<8x16x40xf32, #tpu.memory_space<vmem>>, vector<1x16x40xf32>
    %53 = vector.shape_cast %52 : vector<1x16x40xf32> to vector<16x40xf32>
    %54 = vector.extract_strided_slice %17 {offsets = [0, 448], sizes = [40, 64], strides = [1, 1]} : vector<40x512xf32> to vector<40x64xf32>
    %cst_49 = arith.constant dense<0.000000e+00> : vector<16x64xf32>
    %55 = tpu.matmul %53, %54, %cst_49 {dimension_numbers = #tpu.dot_dimension_numbers<[1], [0], [0], [1], [0, 0, 1, 1], [], []>} : vector<16x40xf32>, vector<40x64xf32>, vector<16x64xf32> -> vector<16x64xf32>
    %56 = arith.addf %51, %55 : vector<16x64xf32>
    %c0_50 = arith.constant 0 : index
    %c0_51 = arith.constant 0 : index
    %57 = vector.load %arg3[%c0_50, %c0_51] : memref<16x1xf32, #tpu.memory_space<vmem>>, vector<16x1xf32>
    %cst_52 = arith.constant 5.000000e-01 : f32
    %58 = vector.broadcast %cst_52 : f32 to vector<16x1xf32>
    %59 = arith.cmpf ogt, %57, %58 : vector<16x1xf32>
    %60 = vector.extract_strided_slice %56 {offsets = [0, 32], sizes = [16, 32], strides = [1, 1]} : vector<16x64xf32> to vector<16x32xf32>
    %61 = vector.extract_strided_slice %56 {offsets = [0, 0], sizes = [16, 32], strides = [1, 1]} : vector<16x64xf32> to vector<16x32xf32>
    %62 = vector.shape_cast %59 : vector<16x1xi1> to vector<16x1xi1>
    %63 = vector.broadcast %62 : vector<16x1xi1> to vector<16x32xi1>
    %64 = arith.select %63, %60, %61 : vector<16x32xi1>, vector<16x32xf32>
    %c0_53 = arith.constant 0 : index
    %c0_54 = arith.constant 0 : index
    %65 = vector.load %arg4[%c0_53, %c0_54] : memref<16x32xf32, #tpu.memory_space<vmem>>, vector<16x32xf32>
    %66 = arith.addf %64, %65 : vector<16x32xf32>
    %c0_55 = arith.constant 0 : index
    %c0_56 = arith.constant 0 : index
    %67 = vector.load %arg5[%c0_55, %c0_56] : memref<1x32xf32, #tpu.memory_space<vmem>>, vector<1x32xf32>
    %c0_57 = arith.constant 0 : index
    %c0_58 = arith.constant 0 : index
    %68 = vector.load %arg6[%c0_57, %c0_58] : memref<1x32xf32, #tpu.memory_space<vmem>>, vector<1x32xf32>
    %cst_59 = arith.constant dense<0.000000e+00> : vector<16xf32>
    %69 = vector.multi_reduction <add>, %66, %cst_59 [1] : vector<16x32xf32> to vector<16xf32>
    %70 = vector.shape_cast %69 : vector<16xf32> to vector<16x1xf32>
    %cst_60 = arith.constant 3.200000e+01 : f32
    %71 = vector.broadcast %cst_60 : f32 to vector<16x1xf32>
    %72 = arith.divf %70, %71 : vector<16x1xf32>
    %73 = vector.broadcast %72 : vector<16x1xf32> to vector<16x32xf32>
    %74 = arith.subf %66, %73 : vector<16x32xf32>
    %75 = arith.mulf %74, %74 : vector<16x32xf32>
    %cst_61 = arith.constant dense<0.000000e+00> : vector<16xf32>
    %76 = vector.multi_reduction <add>, %75, %cst_61 [1] : vector<16x32xf32> to vector<16xf32>
    %77 = vector.shape_cast %76 : vector<16xf32> to vector<16x1xf32>
    %cst_62 = arith.constant 3.200000e+01 : f32
    %78 = vector.broadcast %cst_62 : f32 to vector<16x1xf32>
    %79 = arith.divf %77, %78 : vector<16x1xf32>
    %cst_63 = arith.constant 9.99999974E-6 : f32
    %80 = vector.broadcast %cst_63 : f32 to vector<16x1xf32>
    %81 = arith.addf %79, %80 : vector<16x1xf32>
    %82 = math.rsqrt %81 : vector<16x1xf32>
    %83 = vector.broadcast %82 : vector<16x1xf32> to vector<16x32xf32>
    %84 = arith.mulf %74, %83 : vector<16x32xf32>
    %85 = vector.broadcast %67 : vector<1x32xf32> to vector<16x32xf32>
    %86 = arith.mulf %84, %85 : vector<16x32xf32>
    %87 = vector.broadcast %68 : vector<1x32xf32> to vector<16x32xf32>
    %88 = arith.addf %86, %87 : vector<16x32xf32>
    %89 = tpu.iota {dimensions = array<i32: 1>} : vector<8x8xi32>
    %c5_i32 = arith.constant 5 : i32
    %90 = vector.broadcast %c5_i32 : i32 to vector<8x8xi32>
    %91 = arith.cmpi slt, %89, %90 : vector<8x8xi32>
    %c0_64 = arith.constant 0 : index
    %c0_65 = arith.constant 0 : index
    %c0_66 = arith.constant 0 : index
    %92 = vector.load %arg7[%c0_64, %c0_65, %c0_66] : memref<2x1x32xf32, #tpu.memory_space<vmem>>, vector<1x1x32xf32>
    %93 = vector.shape_cast %92 : vector<1x1x32xf32> to vector<1x32xf32>
    %c0_67 = arith.constant 0 : index
    %c0_68 = arith.constant 0 : index
    %c0_69 = arith.constant 0 : index
    %94 = vector.load %arg8[%c0_67, %c0_68, %c0_69] : memref<2x1x32xf32, #tpu.memory_space<vmem>>, vector<1x1x32xf32>
    %95 = vector.shape_cast %94 : vector<1x1x32xf32> to vector<1x32xf32>
    %cst_70 = arith.constant dense<0.000000e+00> : vector<16xf32>
    %96 = vector.multi_reduction <add>, %88, %cst_70 [1] : vector<16x32xf32> to vector<16xf32>
    %97 = vector.shape_cast %96 : vector<16xf32> to vector<16x1xf32>
    %cst_71 = arith.constant 3.200000e+01 : f32
    %98 = vector.broadcast %cst_71 : f32 to vector<16x1xf32>
    %99 = arith.divf %97, %98 : vector<16x1xf32>
    %100 = vector.broadcast %99 : vector<16x1xf32> to vector<16x32xf32>
    %101 = arith.subf %88, %100 : vector<16x32xf32>
    %102 = arith.mulf %101, %101 : vector<16x32xf32>
    %cst_72 = arith.constant dense<0.000000e+00> : vector<16xf32>
    %103 = vector.multi_reduction <add>, %102, %cst_72 [1] : vector<16x32xf32> to vector<16xf32>
    %104 = vector.shape_cast %103 : vector<16xf32> to vector<16x1xf32>
    %cst_73 = arith.constant 3.200000e+01 : f32
    %105 = vector.broadcast %cst_73 : f32 to vector<16x1xf32>
    %106 = arith.divf %104, %105 : vector<16x1xf32>
    %cst_74 = arith.constant 9.99999974E-6 : f32
    %107 = vector.broadcast %cst_74 : f32 to vector<16x1xf32>
    %108 = arith.addf %106, %107 : vector<16x1xf32>
    %109 = math.rsqrt %108 : vector<16x1xf32>
    %110 = vector.broadcast %109 : vector<16x1xf32> to vector<16x32xf32>
    %111 = arith.mulf %101, %110 : vector<16x32xf32>
    %112 = vector.broadcast %93 : vector<1x32xf32> to vector<16x32xf32>
    %113 = arith.mulf %111, %112 : vector<16x32xf32>
    %114 = vector.broadcast %95 : vector<1x32xf32> to vector<16x32xf32>
    %115 = arith.addf %113, %114 : vector<16x32xf32>
    %c0_75 = arith.constant 0 : index
    %c0_76 = arith.constant 0 : index
    %c0_77 = arith.constant 0 : index
    %116 = vector.load %arg9[%c0_75, %c0_76, %c0_77] : memref<2x32x96xf32, #tpu.memory_space<vmem>>, vector<1x32x96xf32>
    %117 = vector.shape_cast %116 : vector<1x32x96xf32> to vector<32x96xf32>
    %cst_78 = arith.constant dense<0.000000e+00> : vector<16x96xf32>
    %118 = tpu.matmul %115, %117, %cst_78 {dimension_numbers = #tpu.dot_dimension_numbers<[1], [0], [0], [1], [0, 0, 1, 1], [], []>} : vector<16x32xf32>, vector<32x96xf32>, vector<16x96xf32> -> vector<16x96xf32>
    %c0_79 = arith.constant 0 : index
    %c0_80 = arith.constant 0 : index
    %c0_81 = arith.constant 0 : index
    %119 = vector.load %arg10[%c0_79, %c0_80, %c0_81] : memref<2x1x96xf32, #tpu.memory_space<vmem>>, vector<1x1x96xf32>
    %120 = vector.shape_cast %119 : vector<1x1x96xf32> to vector<1x96xf32>
    %121 = vector.broadcast %120 : vector<1x96xf32> to vector<16x96xf32>
    %122 = arith.addf %118, %121 : vector<16x96xf32>
    %123 = vector.extract_strided_slice %122 {offsets = [0, 0], sizes = [8, 96], strides = [1, 1]} : vector<16x96xf32> to vector<8x96xf32>
    %124 = vector.extract_strided_slice %123 {offsets = [0, 0], sizes = [8, 8], strides = [1, 1]} : vector<8x96xf32> to vector<8x8xf32>
    %125 = vector.extract_strided_slice %123 {offsets = [0, 32], sizes = [8, 8], strides = [1, 1]} : vector<8x96xf32> to vector<8x8xf32>
    %126 = vector.extract_strided_slice %123 {offsets = [0, 64], sizes = [8, 8], strides = [1, 1]} : vector<8x96xf32> to vector<8x8xf32>
    %cst_82 = arith.constant dense<0.000000e+00> : vector<8x8xf32>
    %127 = tpu.matmul %124, %125, %cst_82 {dimension_numbers = #tpu.dot_dimension_numbers<[1], [1], [0], [0], [0, 0, 1, 0], [], []>} : vector<8x8xf32>, vector<8x8xf32>, vector<8x8xf32> -> vector<8x8xf32>
    %cst_83 = arith.constant 0.353553385 : f32
    %128 = vector.broadcast %cst_83 : f32 to vector<8x8xf32>
    %129 = arith.mulf %127, %128 : vector<8x8xf32>
    %cst_84 = arith.constant -1.000000e+30 : f32
    %130 = vector.broadcast %cst_84 : f32 to vector<8x8xf32>
    %131 = arith.select %91, %129, %130 : vector<8x8xi1>, vector<8x8xf32>
    %cst_85 = arith.constant dense<0xFF800000> : vector<8xf32>
    %132 = vector.multi_reduction <maximumf>, %131, %cst_85 [1] : vector<8x8xf32> to vector<8xf32>
    %133 = vector.shape_cast %132 : vector<8xf32> to vector<8x1xf32>
    %134 = vector.broadcast %133 : vector<8x1xf32> to vector<8x8xf32>
    %135 = arith.subf %131, %134 : vector<8x8xf32>
    %136 = math.exp %135 : vector<8x8xf32>
    %cst_86 = arith.constant dense<0.000000e+00> : vector<8xf32>
    %137 = vector.multi_reduction <add>, %136, %cst_86 [1] : vector<8x8xf32> to vector<8xf32>
    %138 = vector.shape_cast %137 : vector<8xf32> to vector<8x1xf32>
    %139 = vector.broadcast %138 : vector<8x1xf32> to vector<8x8xf32>
    %140 = arith.divf %136, %139 : vector<8x8xf32>
    %cst_87 = arith.constant dense<0.000000e+00> : vector<8x8xf32>
    %141 = tpu.matmul %140, %126, %cst_87 {dimension_numbers = #tpu.dot_dimension_numbers<[1], [0], [0], [1], [0, 0, 1, 1], [], []>} : vector<8x8xf32>, vector<8x8xf32>, vector<8x8xf32> -> vector<8x8xf32>
    %142 = vector.extract_strided_slice %123 {offsets = [0, 8], sizes = [8, 8], strides = [1, 1]} : vector<8x96xf32> to vector<8x8xf32>
    %143 = vector.extract_strided_slice %123 {offsets = [0, 40], sizes = [8, 8], strides = [1, 1]} : vector<8x96xf32> to vector<8x8xf32>
    %144 = vector.extract_strided_slice %123 {offsets = [0, 72], sizes = [8, 8], strides = [1, 1]} : vector<8x96xf32> to vector<8x8xf32>
    %cst_88 = arith.constant dense<0.000000e+00> : vector<8x8xf32>
    %145 = tpu.matmul %142, %143, %cst_88 {dimension_numbers = #tpu.dot_dimension_numbers<[1], [1], [0], [0], [0, 0, 1, 0], [], []>} : vector<8x8xf32>, vector<8x8xf32>, vector<8x8xf32> -> vector<8x8xf32>
    %cst_89 = arith.constant 0.353553385 : f32
    %146 = vector.broadcast %cst_89 : f32 to vector<8x8xf32>
    %147 = arith.mulf %145, %146 : vector<8x8xf32>
    %cst_90 = arith.constant -1.000000e+30 : f32
    %148 = vector.broadcast %cst_90 : f32 to vector<8x8xf32>
    %149 = arith.select %91, %147, %148 : vector<8x8xi1>, vector<8x8xf32>
    %cst_91 = arith.constant dense<0xFF800000> : vector<8xf32>
    %150 = vector.multi_reduction <maximumf>, %149, %cst_91 [1] : vector<8x8xf32> to vector<8xf32>
    %151 = vector.shape_cast %150 : vector<8xf32> to vector<8x1xf32>
    %152 = vector.broadcast %151 : vector<8x1xf32> to vector<8x8xf32>
    %153 = arith.subf %149, %152 : vector<8x8xf32>
    %154 = math.exp %153 : vector<8x8xf32>
    %cst_92 = arith.constant dense<0.000000e+00> : vector<8xf32>
    %155 = vector.multi_reduction <add>, %154, %cst_92 [1] : vector<8x8xf32> to vector<8xf32>
    %156 = vector.shape_cast %155 : vector<8xf32> to vector<8x1xf32>
    %157 = vector.broadcast %156 : vector<8x1xf32> to vector<8x8xf32>
    %158 = arith.divf %154, %157 : vector<8x8xf32>
    %cst_93 = arith.constant dense<0.000000e+00> : vector<8x8xf32>
    %159 = tpu.matmul %158, %144, %cst_93 {dimension_numbers = #tpu.dot_dimension_numbers<[1], [0], [0], [1], [0, 0, 1, 1], [], []>} : vector<8x8xf32>, vector<8x8xf32>, vector<8x8xf32> -> vector<8x8xf32>
    %160 = vector.extract_strided_slice %123 {offsets = [0, 16], sizes = [8, 8], strides = [1, 1]} : vector<8x96xf32> to vector<8x8xf32>
    %161 = vector.extract_strided_slice %123 {offsets = [0, 48], sizes = [8, 8], strides = [1, 1]} : vector<8x96xf32> to vector<8x8xf32>
    %162 = vector.extract_strided_slice %123 {offsets = [0, 80], sizes = [8, 8], strides = [1, 1]} : vector<8x96xf32> to vector<8x8xf32>
    %cst_94 = arith.constant dense<0.000000e+00> : vector<8x8xf32>
    %163 = tpu.matmul %160, %161, %cst_94 {dimension_numbers = #tpu.dot_dimension_numbers<[1], [1], [0], [0], [0, 0, 1, 0], [], []>} : vector<8x8xf32>, vector<8x8xf32>, vector<8x8xf32> -> vector<8x8xf32>
    %cst_95 = arith.constant 0.353553385 : f32
    %164 = vector.broadcast %cst_95 : f32 to vector<8x8xf32>
    %165 = arith.mulf %163, %164 : vector<8x8xf32>
    %cst_96 = arith.constant -1.000000e+30 : f32
    %166 = vector.broadcast %cst_96 : f32 to vector<8x8xf32>
    %167 = arith.select %91, %165, %166 : vector<8x8xi1>, vector<8x8xf32>
    %cst_97 = arith.constant dense<0xFF800000> : vector<8xf32>
    %168 = vector.multi_reduction <maximumf>, %167, %cst_97 [1] : vector<8x8xf32> to vector<8xf32>
    %169 = vector.shape_cast %168 : vector<8xf32> to vector<8x1xf32>
    %170 = vector.broadcast %169 : vector<8x1xf32> to vector<8x8xf32>
    %171 = arith.subf %167, %170 : vector<8x8xf32>
    %172 = math.exp %171 : vector<8x8xf32>
    %cst_98 = arith.constant dense<0.000000e+00> : vector<8xf32>
    %173 = vector.multi_reduction <add>, %172, %cst_98 [1] : vector<8x8xf32> to vector<8xf32>
    %174 = vector.shape_cast %173 : vector<8xf32> to vector<8x1xf32>
    %175 = vector.broadcast %174 : vector<8x1xf32> to vector<8x8xf32>
    %176 = arith.divf %172, %175 : vector<8x8xf32>
    %cst_99 = arith.constant dense<0.000000e+00> : vector<8x8xf32>
    %177 = tpu.matmul %176, %162, %cst_99 {dimension_numbers = #tpu.dot_dimension_numbers<[1], [0], [0], [1], [0, 0, 1, 1], [], []>} : vector<8x8xf32>, vector<8x8xf32>, vector<8x8xf32> -> vector<8x8xf32>
    %178 = vector.extract_strided_slice %123 {offsets = [0, 24], sizes = [8, 8], strides = [1, 1]} : vector<8x96xf32> to vector<8x8xf32>
    %179 = vector.extract_strided_slice %123 {offsets = [0, 56], sizes = [8, 8], strides = [1, 1]} : vector<8x96xf32> to vector<8x8xf32>
    %180 = vector.extract_strided_slice %123 {offsets = [0, 88], sizes = [8, 8], strides = [1, 1]} : vector<8x96xf32> to vector<8x8xf32>
    %cst_100 = arith.constant dense<0.000000e+00> : vector<8x8xf32>
    %181 = tpu.matmul %178, %179, %cst_100 {dimension_numbers = #tpu.dot_dimension_numbers<[1], [1], [0], [0], [0, 0, 1, 0], [], []>} : vector<8x8xf32>, vector<8x8xf32>, vector<8x8xf32> -> vector<8x8xf32>
    %cst_101 = arith.constant 0.353553385 : f32
    %182 = vector.broadcast %cst_101 : f32 to vector<8x8xf32>
    %183 = arith.mulf %181, %182 : vector<8x8xf32>
    %cst_102 = arith.constant -1.000000e+30 : f32
    %184 = vector.broadcast %cst_102 : f32 to vector<8x8xf32>
    %185 = arith.select %91, %183, %184 : vector<8x8xi1>, vector<8x8xf32>
    %cst_103 = arith.constant dense<0xFF800000> : vector<8xf32>
    %186 = vector.multi_reduction <maximumf>, %185, %cst_103 [1] : vector<8x8xf32> to vector<8xf32>
    %187 = vector.shape_cast %186 : vector<8xf32> to vector<8x1xf32>
    %188 = vector.broadcast %187 : vector<8x1xf32> to vector<8x8xf32>
    %189 = arith.subf %185, %188 : vector<8x8xf32>
    %190 = math.exp %189 : vector<8x8xf32>
    %cst_104 = arith.constant dense<0.000000e+00> : vector<8xf32>
    %191 = vector.multi_reduction <add>, %190, %cst_104 [1] : vector<8x8xf32> to vector<8xf32>
    %192 = vector.shape_cast %191 : vector<8xf32> to vector<8x1xf32>
    %193 = vector.broadcast %192 : vector<8x1xf32> to vector<8x8xf32>
    %194 = arith.divf %190, %193 : vector<8x8xf32>
    %cst_105 = arith.constant dense<0.000000e+00> : vector<8x8xf32>
    %195 = tpu.matmul %194, %180, %cst_105 {dimension_numbers = #tpu.dot_dimension_numbers<[1], [0], [0], [1], [0, 0, 1, 1], [], []>} : vector<8x8xf32>, vector<8x8xf32>, vector<8x8xf32> -> vector<8x8xf32>
    %196 = tpu.concatenate %141, %159, %177, %195 in 1 : vector<8x8xf32>, vector<8x8xf32>, vector<8x8xf32>, vector<8x8xf32> -> vector<8x32xf32>
    %197 = vector.extract_strided_slice %122 {offsets = [8, 0], sizes = [8, 96], strides = [1, 1]} : vector<16x96xf32> to vector<8x96xf32>
    %198 = vector.extract_strided_slice %197 {offsets = [0, 0], sizes = [8, 8], strides = [1, 1]} : vector<8x96xf32> to vector<8x8xf32>
    %199 = vector.extract_strided_slice %197 {offsets = [0, 32], sizes = [8, 8], strides = [1, 1]} : vector<8x96xf32> to vector<8x8xf32>
    %200 = vector.extract_strided_slice %197 {offsets = [0, 64], sizes = [8, 8], strides = [1, 1]} : vector<8x96xf32> to vector<8x8xf32>
    %cst_106 = arith.constant dense<0.000000e+00> : vector<8x8xf32>
    %201 = tpu.matmul %198, %199, %cst_106 {dimension_numbers = #tpu.dot_dimension_numbers<[1], [1], [0], [0], [0, 0, 1, 0], [], []>} : vector<8x8xf32>, vector<8x8xf32>, vector<8x8xf32> -> vector<8x8xf32>
    %cst_107 = arith.constant 0.353553385 : f32
    %202 = vector.broadcast %cst_107 : f32 to vector<8x8xf32>
    %203 = arith.mulf %201, %202 : vector<8x8xf32>
    %cst_108 = arith.constant -1.000000e+30 : f32
    %204 = vector.broadcast %cst_108 : f32 to vector<8x8xf32>
    %205 = arith.select %91, %203, %204 : vector<8x8xi1>, vector<8x8xf32>
    %cst_109 = arith.constant dense<0xFF800000> : vector<8xf32>
    %206 = vector.multi_reduction <maximumf>, %205, %cst_109 [1] : vector<8x8xf32> to vector<8xf32>
    %207 = vector.shape_cast %206 : vector<8xf32> to vector<8x1xf32>
    %208 = vector.broadcast %207 : vector<8x1xf32> to vector<8x8xf32>
    %209 = arith.subf %205, %208 : vector<8x8xf32>
    %210 = math.exp %209 : vector<8x8xf32>
    %cst_110 = arith.constant dense<0.000000e+00> : vector<8xf32>
    %211 = vector.multi_reduction <add>, %210, %cst_110 [1] : vector<8x8xf32> to vector<8xf32>
    %212 = vector.shape_cast %211 : vector<8xf32> to vector<8x1xf32>
    %213 = vector.broadcast %212 : vector<8x1xf32> to vector<8x8xf32>
    %214 = arith.divf %210, %213 : vector<8x8xf32>
    %cst_111 = arith.constant dense<0.000000e+00> : vector<8x8xf32>
    %215 = tpu.matmul %214, %200, %cst_111 {dimension_numbers = #tpu.dot_dimension_numbers<[1], [0], [0], [1], [0, 0, 1, 1], [], []>} : vector<8x8xf32>, vector<8x8xf32>, vector<8x8xf32> -> vector<8x8xf32>
    %216 = vector.extract_strided_slice %197 {offsets = [0, 8], sizes = [8, 8], strides = [1, 1]} : vector<8x96xf32> to vector<8x8xf32>
    %217 = vector.extract_strided_slice %197 {offsets = [0, 40], sizes = [8, 8], strides = [1, 1]} : vector<8x96xf32> to vector<8x8xf32>
    %218 = vector.extract_strided_slice %197 {offsets = [0, 72], sizes = [8, 8], strides = [1, 1]} : vector<8x96xf32> to vector<8x8xf32>
    %cst_112 = arith.constant dense<0.000000e+00> : vector<8x8xf32>
    %219 = tpu.matmul %216, %217, %cst_112 {dimension_numbers = #tpu.dot_dimension_numbers<[1], [1], [0], [0], [0, 0, 1, 0], [], []>} : vector<8x8xf32>, vector<8x8xf32>, vector<8x8xf32> -> vector<8x8xf32>
    %cst_113 = arith.constant 0.353553385 : f32
    %220 = vector.broadcast %cst_113 : f32 to vector<8x8xf32>
    %221 = arith.mulf %219, %220 : vector<8x8xf32>
    %cst_114 = arith.constant -1.000000e+30 : f32
    %222 = vector.broadcast %cst_114 : f32 to vector<8x8xf32>
    %223 = arith.select %91, %221, %222 : vector<8x8xi1>, vector<8x8xf32>
    %cst_115 = arith.constant dense<0xFF800000> : vector<8xf32>
    %224 = vector.multi_reduction <maximumf>, %223, %cst_115 [1] : vector<8x8xf32> to vector<8xf32>
    %225 = vector.shape_cast %224 : vector<8xf32> to vector<8x1xf32>
    %226 = vector.broadcast %225 : vector<8x1xf32> to vector<8x8xf32>
    %227 = arith.subf %223, %226 : vector<8x8xf32>
    %228 = math.exp %227 : vector<8x8xf32>
    %cst_116 = arith.constant dense<0.000000e+00> : vector<8xf32>
    %229 = vector.multi_reduction <add>, %228, %cst_116 [1] : vector<8x8xf32> to vector<8xf32>
    %230 = vector.shape_cast %229 : vector<8xf32> to vector<8x1xf32>
    %231 = vector.broadcast %230 : vector<8x1xf32> to vector<8x8xf32>
    %232 = arith.divf %228, %231 : vector<8x8xf32>
    %cst_117 = arith.constant dense<0.000000e+00> : vector<8x8xf32>
    %233 = tpu.matmul %232, %218, %cst_117 {dimension_numbers = #tpu.dot_dimension_numbers<[1], [0], [0], [1], [0, 0, 1, 1], [], []>} : vector<8x8xf32>, vector<8x8xf32>, vector<8x8xf32> -> vector<8x8xf32>
    %234 = vector.extract_strided_slice %197 {offsets = [0, 16], sizes = [8, 8], strides = [1, 1]} : vector<8x96xf32> to vector<8x8xf32>
    %235 = vector.extract_strided_slice %197 {offsets = [0, 48], sizes = [8, 8], strides = [1, 1]} : vector<8x96xf32> to vector<8x8xf32>
    %236 = vector.extract_strided_slice %197 {offsets = [0, 80], sizes = [8, 8], strides = [1, 1]} : vector<8x96xf32> to vector<8x8xf32>
    %cst_118 = arith.constant dense<0.000000e+00> : vector<8x8xf32>
    %237 = tpu.matmul %234, %235, %cst_118 {dimension_numbers = #tpu.dot_dimension_numbers<[1], [1], [0], [0], [0, 0, 1, 0], [], []>} : vector<8x8xf32>, vector<8x8xf32>, vector<8x8xf32> -> vector<8x8xf32>
    %cst_119 = arith.constant 0.353553385 : f32
    %238 = vector.broadcast %cst_119 : f32 to vector<8x8xf32>
    %239 = arith.mulf %237, %238 : vector<8x8xf32>
    %cst_120 = arith.constant -1.000000e+30 : f32
    %240 = vector.broadcast %cst_120 : f32 to vector<8x8xf32>
    %241 = arith.select %91, %239, %240 : vector<8x8xi1>, vector<8x8xf32>
    %cst_121 = arith.constant dense<0xFF800000> : vector<8xf32>
    %242 = vector.multi_reduction <maximumf>, %241, %cst_121 [1] : vector<8x8xf32> to vector<8xf32>
    %243 = vector.shape_cast %242 : vector<8xf32> to vector<8x1xf32>
    %244 = vector.broadcast %243 : vector<8x1xf32> to vector<8x8xf32>
    %245 = arith.subf %241, %244 : vector<8x8xf32>
    %246 = math.exp %245 : vector<8x8xf32>
    %cst_122 = arith.constant dense<0.000000e+00> : vector<8xf32>
    %247 = vector.multi_reduction <add>, %246, %cst_122 [1] : vector<8x8xf32> to vector<8xf32>
    %248 = vector.shape_cast %247 : vector<8xf32> to vector<8x1xf32>
    %249 = vector.broadcast %248 : vector<8x1xf32> to vector<8x8xf32>
    %250 = arith.divf %246, %249 : vector<8x8xf32>
    %cst_123 = arith.constant dense<0.000000e+00> : vector<8x8xf32>
    %251 = tpu.matmul %250, %236, %cst_123 {dimension_numbers = #tpu.dot_dimension_numbers<[1], [0], [0], [1], [0, 0, 1, 1], [], []>} : vector<8x8xf32>, vector<8x8xf32>, vector<8x8xf32> -> vector<8x8xf32>
    %252 = vector.extract_strided_slice %197 {offsets = [0, 24], sizes = [8, 8], strides = [1, 1]} : vector<8x96xf32> to vector<8x8xf32>
    %253 = vector.extract_strided_slice %197 {offsets = [0, 56], sizes = [8, 8], strides = [1, 1]} : vector<8x96xf32> to vector<8x8xf32>
    %254 = vector.extract_strided_slice %197 {offsets = [0, 88], sizes = [8, 8], strides = [1, 1]} : vector<8x96xf32> to vector<8x8xf32>
    %cst_124 = arith.constant dense<0.000000e+00> : vector<8x8xf32>
    %255 = tpu.matmul %252, %253, %cst_124 {dimension_numbers = #tpu.dot_dimension_numbers<[1], [1], [0], [0], [0, 0, 1, 0], [], []>} : vector<8x8xf32>, vector<8x8xf32>, vector<8x8xf32> -> vector<8x8xf32>
    %cst_125 = arith.constant 0.353553385 : f32
    %256 = vector.broadcast %cst_125 : f32 to vector<8x8xf32>
    %257 = arith.mulf %255, %256 : vector<8x8xf32>
    %cst_126 = arith.constant -1.000000e+30 : f32
    %258 = vector.broadcast %cst_126 : f32 to vector<8x8xf32>
    %259 = arith.select %91, %257, %258 : vector<8x8xi1>, vector<8x8xf32>
    %cst_127 = arith.constant dense<0xFF800000> : vector<8xf32>
    %260 = vector.multi_reduction <maximumf>, %259, %cst_127 [1] : vector<8x8xf32> to vector<8xf32>
    %261 = vector.shape_cast %260 : vector<8xf32> to vector<8x1xf32>
    %262 = vector.broadcast %261 : vector<8x1xf32> to vector<8x8xf32>
    %263 = arith.subf %259, %262 : vector<8x8xf32>
    %264 = math.exp %263 : vector<8x8xf32>
    %cst_128 = arith.constant dense<0.000000e+00> : vector<8xf32>
    %265 = vector.multi_reduction <add>, %264, %cst_128 [1] : vector<8x8xf32> to vector<8xf32>
    %266 = vector.shape_cast %265 : vector<8xf32> to vector<8x1xf32>
    %267 = vector.broadcast %266 : vector<8x1xf32> to vector<8x8xf32>
    %268 = arith.divf %264, %267 : vector<8x8xf32>
    %cst_129 = arith.constant dense<0.000000e+00> : vector<8x8xf32>
    %269 = tpu.matmul %268, %254, %cst_129 {dimension_numbers = #tpu.dot_dimension_numbers<[1], [0], [0], [1], [0, 0, 1, 1], [], []>} : vector<8x8xf32>, vector<8x8xf32>, vector<8x8xf32> -> vector<8x8xf32>
    %270 = tpu.concatenate %215, %233, %251, %269 in 1 : vector<8x8xf32>, vector<8x8xf32>, vector<8x8xf32>, vector<8x8xf32> -> vector<8x32xf32>
    %271 = tpu.concatenate %196, %270 in 0 : vector<8x32xf32>, vector<8x32xf32> -> vector<16x32xf32>
    %c0_130 = arith.constant 0 : index
    %c0_131 = arith.constant 0 : index
    %c0_132 = arith.constant 0 : index
    %272 = vector.load %arg11[%c0_130, %c0_131, %c0_132] : memref<2x32x32xf32, #tpu.memory_space<vmem>>, vector<1x32x32xf32>
    %273 = vector.shape_cast %272 : vector<1x32x32xf32> to vector<32x32xf32>
    %cst_133 = arith.constant dense<0.000000e+00> : vector<16x32xf32>
    %274 = tpu.matmul %271, %273, %cst_133 {dimension_numbers = #tpu.dot_dimension_numbers<[1], [0], [0], [1], [0, 0, 1, 1], [], []>} : vector<16x32xf32>, vector<32x32xf32>, vector<16x32xf32> -> vector<16x32xf32>
    %275 = arith.addf %88, %274 : vector<16x32xf32>
    %c0_134 = arith.constant 0 : index
    %c0_135 = arith.constant 0 : index
    %c0_136 = arith.constant 0 : index
    %276 = vector.load %arg12[%c0_134, %c0_135, %c0_136] : memref<2x1x32xf32, #tpu.memory_space<vmem>>, vector<1x1x32xf32>
    %277 = vector.shape_cast %276 : vector<1x1x32xf32> to vector<1x32xf32>
    %278 = vector.broadcast %277 : vector<1x32xf32> to vector<16x32xf32>
    %279 = arith.addf %275, %278 : vector<16x32xf32>
    %c0_137 = arith.constant 0 : index
    %c0_138 = arith.constant 0 : index
    %c0_139 = arith.constant 0 : index
    %280 = vector.load %arg13[%c0_137, %c0_138, %c0_139] : memref<2x1x32xf32, #tpu.memory_space<vmem>>, vector<1x1x32xf32>
    %281 = vector.shape_cast %280 : vector<1x1x32xf32> to vector<1x32xf32>
    %c0_140 = arith.constant 0 : index
    %c0_141 = arith.constant 0 : index
    %c0_142 = arith.constant 0 : index
    %282 = vector.load %arg14[%c0_140, %c0_141, %c0_142] : memref<2x1x32xf32, #tpu.memory_space<vmem>>, vector<1x1x32xf32>
    %283 = vector.shape_cast %282 : vector<1x1x32xf32> to vector<1x32xf32>
    %cst_143 = arith.constant dense<0.000000e+00> : vector<16xf32>
    %284 = vector.multi_reduction <add>, %279, %cst_143 [1] : vector<16x32xf32> to vector<16xf32>
    %285 = vector.shape_cast %284 : vector<16xf32> to vector<16x1xf32>
    %cst_144 = arith.constant 3.200000e+01 : f32
    %286 = vector.broadcast %cst_144 : f32 to vector<16x1xf32>
    %287 = arith.divf %285, %286 : vector<16x1xf32>
    %288 = vector.broadcast %287 : vector<16x1xf32> to vector<16x32xf32>
    %289 = arith.subf %279, %288 : vector<16x32xf32>
    %290 = arith.mulf %289, %289 : vector<16x32xf32>
    %cst_145 = arith.constant dense<0.000000e+00> : vector<16xf32>
    %291 = vector.multi_reduction <add>, %290, %cst_145 [1] : vector<16x32xf32> to vector<16xf32>
    %292 = vector.shape_cast %291 : vector<16xf32> to vector<16x1xf32>
    %cst_146 = arith.constant 3.200000e+01 : f32
    %293 = vector.broadcast %cst_146 : f32 to vector<16x1xf32>
    %294 = arith.divf %292, %293 : vector<16x1xf32>
    %cst_147 = arith.constant 9.99999974E-6 : f32
    %295 = vector.broadcast %cst_147 : f32 to vector<16x1xf32>
    %296 = arith.addf %294, %295 : vector<16x1xf32>
    %297 = math.rsqrt %296 : vector<16x1xf32>
    %298 = vector.broadcast %297 : vector<16x1xf32> to vector<16x32xf32>
    %299 = arith.mulf %289, %298 : vector<16x32xf32>
    %300 = vector.broadcast %281 : vector<1x32xf32> to vector<16x32xf32>
    %301 = arith.mulf %299, %300 : vector<16x32xf32>
    %302 = vector.broadcast %283 : vector<1x32xf32> to vector<16x32xf32>
    %303 = arith.addf %301, %302 : vector<16x32xf32>
    %c0_148 = arith.constant 0 : index
    %c0_149 = arith.constant 0 : index
    %c0_150 = arith.constant 0 : index
    %304 = vector.load %arg15[%c0_148, %c0_149, %c0_150] : memref<2x32x128xf32, #tpu.memory_space<vmem>>, vector<1x32x128xf32>
    %305 = vector.shape_cast %304 : vector<1x32x128xf32> to vector<32x128xf32>
    %cst_151 = arith.constant dense<0.000000e+00> : vector<16x128xf32>
    %306 = tpu.matmul %303, %305, %cst_151 {dimension_numbers = #tpu.dot_dimension_numbers<[1], [0], [0], [1], [0, 0, 1, 1], [], []>} : vector<16x32xf32>, vector<32x128xf32>, vector<16x128xf32> -> vector<16x128xf32>
    %c0_152 = arith.constant 0 : index
    %c0_153 = arith.constant 0 : index
    %c0_154 = arith.constant 0 : index
    %307 = vector.load %arg16[%c0_152, %c0_153, %c0_154] : memref<2x1x128xf32, #tpu.memory_space<vmem>>, vector<1x1x128xf32>
    %308 = vector.shape_cast %307 : vector<1x1x128xf32> to vector<1x128xf32>
    %309 = vector.broadcast %308 : vector<1x128xf32> to vector<16x128xf32>
    %310 = arith.addf %306, %309 : vector<16x128xf32>
    %cst_155 = arith.constant 1.702000e+00 : f32
    %311 = vector.broadcast %cst_155 : f32 to vector<16x128xf32>
    %312 = arith.mulf %311, %310 : vector<16x128xf32>
    %313 = arith.negf %312 : vector<16x128xf32>
    %314 = math.exp %313 : vector<16x128xf32>
    %cst_156 = arith.constant 1.000000e+00 : f32
    %315 = vector.broadcast %cst_156 : f32 to vector<16x128xf32>
    %316 = arith.addf %315, %314 : vector<16x128xf32>
    %317 = arith.divf %315, %316 : vector<16x128xf32>
    %318 = arith.mulf %310, %317 : vector<16x128xf32>
    %c0_157 = arith.constant 0 : index
    %c0_158 = arith.constant 0 : index
    %c0_159 = arith.constant 0 : index
    %319 = vector.load %arg17[%c0_157, %c0_158, %c0_159] : memref<2x128x32xf32, #tpu.memory_space<vmem>>, vector<1x128x32xf32>
    %320 = vector.shape_cast %319 : vector<1x128x32xf32> to vector<128x32xf32>
    %cst_160 = arith.constant dense<0.000000e+00> : vector<16x32xf32>
    %321 = tpu.matmul %318, %320, %cst_160 {dimension_numbers = #tpu.dot_dimension_numbers<[1], [0], [0], [1], [0, 0, 1, 1], [], []>} : vector<16x128xf32>, vector<128x32xf32>, vector<16x32xf32> -> vector<16x32xf32>
    %322 = arith.addf %279, %321 : vector<16x32xf32>
    %c0_161 = arith.constant 0 : index
    %c0_162 = arith.constant 0 : index
    %c0_163 = arith.constant 0 : index
    %323 = vector.load %arg18[%c0_161, %c0_162, %c0_163] : memref<2x1x32xf32, #tpu.memory_space<vmem>>, vector<1x1x32xf32>
    %324 = vector.shape_cast %323 : vector<1x1x32xf32> to vector<1x32xf32>
    %325 = vector.broadcast %324 : vector<1x32xf32> to vector<16x32xf32>
    %326 = arith.addf %322, %325 : vector<16x32xf32>
    %c1_164 = arith.constant 1 : index
    %c0_165 = arith.constant 0 : index
    %c0_166 = arith.constant 0 : index
    %327 = vector.load %arg7[%c1_164, %c0_165, %c0_166] : memref<2x1x32xf32, #tpu.memory_space<vmem>>, vector<1x1x32xf32>
    %328 = vector.shape_cast %327 : vector<1x1x32xf32> to vector<1x32xf32>
    %c1_167 = arith.constant 1 : index
    %c0_168 = arith.constant 0 : index
    %c0_169 = arith.constant 0 : index
    %329 = vector.load %arg8[%c1_167, %c0_168, %c0_169] : memref<2x1x32xf32, #tpu.memory_space<vmem>>, vector<1x1x32xf32>
    %330 = vector.shape_cast %329 : vector<1x1x32xf32> to vector<1x32xf32>
    %cst_170 = arith.constant dense<0.000000e+00> : vector<16xf32>
    %331 = vector.multi_reduction <add>, %326, %cst_170 [1] : vector<16x32xf32> to vector<16xf32>
    %332 = vector.shape_cast %331 : vector<16xf32> to vector<16x1xf32>
    %cst_171 = arith.constant 3.200000e+01 : f32
    %333 = vector.broadcast %cst_171 : f32 to vector<16x1xf32>
    %334 = arith.divf %332, %333 : vector<16x1xf32>
    %335 = vector.broadcast %334 : vector<16x1xf32> to vector<16x32xf32>
    %336 = arith.subf %326, %335 : vector<16x32xf32>
    %337 = arith.mulf %336, %336 : vector<16x32xf32>
    %cst_172 = arith.constant dense<0.000000e+00> : vector<16xf32>
    %338 = vector.multi_reduction <add>, %337, %cst_172 [1] : vector<16x32xf32> to vector<16xf32>
    %339 = vector.shape_cast %338 : vector<16xf32> to vector<16x1xf32>
    %cst_173 = arith.constant 3.200000e+01 : f32
    %340 = vector.broadcast %cst_173 : f32 to vector<16x1xf32>
    %341 = arith.divf %339, %340 : vector<16x1xf32>
    %cst_174 = arith.constant 9.99999974E-6 : f32
    %342 = vector.broadcast %cst_174 : f32 to vector<16x1xf32>
    %343 = arith.addf %341, %342 : vector<16x1xf32>
    %344 = math.rsqrt %343 : vector<16x1xf32>
    %345 = vector.broadcast %344 : vector<16x1xf32> to vector<16x32xf32>
    %346 = arith.mulf %336, %345 : vector<16x32xf32>
    %347 = vector.broadcast %328 : vector<1x32xf32> to vector<16x32xf32>
    %348 = arith.mulf %346, %347 : vector<16x32xf32>
    %349 = vector.broadcast %330 : vector<1x32xf32> to vector<16x32xf32>
    %350 = arith.addf %348, %349 : vector<16x32xf32>
    %c1_175 = arith.constant 1 : index
    %c0_176 = arith.constant 0 : index
    %c0_177 = arith.constant 0 : index
    %351 = vector.load %arg9[%c1_175, %c0_176, %c0_177] : memref<2x32x96xf32, #tpu.memory_space<vmem>>, vector<1x32x96xf32>
    %352 = vector.shape_cast %351 : vector<1x32x96xf32> to vector<32x96xf32>
    %cst_178 = arith.constant dense<0.000000e+00> : vector<16x96xf32>
    %353 = tpu.matmul %350, %352, %cst_178 {dimension_numbers = #tpu.dot_dimension_numbers<[1], [0], [0], [1], [0, 0, 1, 1], [], []>} : vector<16x32xf32>, vector<32x96xf32>, vector<16x96xf32> -> vector<16x96xf32>
    %c1_179 = arith.constant 1 : index
    %c0_180 = arith.constant 0 : index
    %c0_181 = arith.constant 0 : index
    %354 = vector.load %arg10[%c1_179, %c0_180, %c0_181] : memref<2x1x96xf32, #tpu.memory_space<vmem>>, vector<1x1x96xf32>
    %355 = vector.shape_cast %354 : vector<1x1x96xf32> to vector<1x96xf32>
    %356 = vector.broadcast %355 : vector<1x96xf32> to vector<16x96xf32>
    %357 = arith.addf %353, %356 : vector<16x96xf32>
    %358 = vector.extract_strided_slice %357 {offsets = [0, 0], sizes = [8, 96], strides = [1, 1]} : vector<16x96xf32> to vector<8x96xf32>
    %359 = vector.extract_strided_slice %358 {offsets = [0, 0], sizes = [8, 8], strides = [1, 1]} : vector<8x96xf32> to vector<8x8xf32>
    %360 = vector.extract_strided_slice %358 {offsets = [0, 32], sizes = [8, 8], strides = [1, 1]} : vector<8x96xf32> to vector<8x8xf32>
    %361 = vector.extract_strided_slice %358 {offsets = [0, 64], sizes = [8, 8], strides = [1, 1]} : vector<8x96xf32> to vector<8x8xf32>
    %cst_182 = arith.constant dense<0.000000e+00> : vector<8x8xf32>
    %362 = tpu.matmul %359, %360, %cst_182 {dimension_numbers = #tpu.dot_dimension_numbers<[1], [1], [0], [0], [0, 0, 1, 0], [], []>} : vector<8x8xf32>, vector<8x8xf32>, vector<8x8xf32> -> vector<8x8xf32>
    %cst_183 = arith.constant 0.353553385 : f32
    %363 = vector.broadcast %cst_183 : f32 to vector<8x8xf32>
    %364 = arith.mulf %362, %363 : vector<8x8xf32>
    %cst_184 = arith.constant -1.000000e+30 : f32
    %365 = vector.broadcast %cst_184 : f32 to vector<8x8xf32>
    %366 = arith.select %91, %364, %365 : vector<8x8xi1>, vector<8x8xf32>
    %cst_185 = arith.constant dense<0xFF800000> : vector<8xf32>
    %367 = vector.multi_reduction <maximumf>, %366, %cst_185 [1] : vector<8x8xf32> to vector<8xf32>
    %368 = vector.shape_cast %367 : vector<8xf32> to vector<8x1xf32>
    %369 = vector.broadcast %368 : vector<8x1xf32> to vector<8x8xf32>
    %370 = arith.subf %366, %369 : vector<8x8xf32>
    %371 = math.exp %370 : vector<8x8xf32>
    %cst_186 = arith.constant dense<0.000000e+00> : vector<8xf32>
    %372 = vector.multi_reduction <add>, %371, %cst_186 [1] : vector<8x8xf32> to vector<8xf32>
    %373 = vector.shape_cast %372 : vector<8xf32> to vector<8x1xf32>
    %374 = vector.broadcast %373 : vector<8x1xf32> to vector<8x8xf32>
    %375 = arith.divf %371, %374 : vector<8x8xf32>
    %cst_187 = arith.constant dense<0.000000e+00> : vector<8x8xf32>
    %376 = tpu.matmul %375, %361, %cst_187 {dimension_numbers = #tpu.dot_dimension_numbers<[1], [0], [0], [1], [0, 0, 1, 1], [], []>} : vector<8x8xf32>, vector<8x8xf32>, vector<8x8xf32> -> vector<8x8xf32>
    %377 = vector.extract_strided_slice %358 {offsets = [0, 8], sizes = [8, 8], strides = [1, 1]} : vector<8x96xf32> to vector<8x8xf32>
    %378 = vector.extract_strided_slice %358 {offsets = [0, 40], sizes = [8, 8], strides = [1, 1]} : vector<8x96xf32> to vector<8x8xf32>
    %379 = vector.extract_strided_slice %358 {offsets = [0, 72], sizes = [8, 8], strides = [1, 1]} : vector<8x96xf32> to vector<8x8xf32>
    %cst_188 = arith.constant dense<0.000000e+00> : vector<8x8xf32>
    %380 = tpu.matmul %377, %378, %cst_188 {dimension_numbers = #tpu.dot_dimension_numbers<[1], [1], [0], [0], [0, 0, 1, 0], [], []>} : vector<8x8xf32>, vector<8x8xf32>, vector<8x8xf32> -> vector<8x8xf32>
    %cst_189 = arith.constant 0.353553385 : f32
    %381 = vector.broadcast %cst_189 : f32 to vector<8x8xf32>
    %382 = arith.mulf %380, %381 : vector<8x8xf32>
    %cst_190 = arith.constant -1.000000e+30 : f32
    %383 = vector.broadcast %cst_190 : f32 to vector<8x8xf32>
    %384 = arith.select %91, %382, %383 : vector<8x8xi1>, vector<8x8xf32>
    %cst_191 = arith.constant dense<0xFF800000> : vector<8xf32>
    %385 = vector.multi_reduction <maximumf>, %384, %cst_191 [1] : vector<8x8xf32> to vector<8xf32>
    %386 = vector.shape_cast %385 : vector<8xf32> to vector<8x1xf32>
    %387 = vector.broadcast %386 : vector<8x1xf32> to vector<8x8xf32>
    %388 = arith.subf %384, %387 : vector<8x8xf32>
    %389 = math.exp %388 : vector<8x8xf32>
    %cst_192 = arith.constant dense<0.000000e+00> : vector<8xf32>
    %390 = vector.multi_reduction <add>, %389, %cst_192 [1] : vector<8x8xf32> to vector<8xf32>
    %391 = vector.shape_cast %390 : vector<8xf32> to vector<8x1xf32>
    %392 = vector.broadcast %391 : vector<8x1xf32> to vector<8x8xf32>
    %393 = arith.divf %389, %392 : vector<8x8xf32>
    %cst_193 = arith.constant dense<0.000000e+00> : vector<8x8xf32>
    %394 = tpu.matmul %393, %379, %cst_193 {dimension_numbers = #tpu.dot_dimension_numbers<[1], [0], [0], [1], [0, 0, 1, 1], [], []>} : vector<8x8xf32>, vector<8x8xf32>, vector<8x8xf32> -> vector<8x8xf32>
    %395 = vector.extract_strided_slice %358 {offsets = [0, 16], sizes = [8, 8], strides = [1, 1]} : vector<8x96xf32> to vector<8x8xf32>
    %396 = vector.extract_strided_slice %358 {offsets = [0, 48], sizes = [8, 8], strides = [1, 1]} : vector<8x96xf32> to vector<8x8xf32>
    %397 = vector.extract_strided_slice %358 {offsets = [0, 80], sizes = [8, 8], strides = [1, 1]} : vector<8x96xf32> to vector<8x8xf32>
    %cst_194 = arith.constant dense<0.000000e+00> : vector<8x8xf32>
    %398 = tpu.matmul %395, %396, %cst_194 {dimension_numbers = #tpu.dot_dimension_numbers<[1], [1], [0], [0], [0, 0, 1, 0], [], []>} : vector<8x8xf32>, vector<8x8xf32>, vector<8x8xf32> -> vector<8x8xf32>
    %cst_195 = arith.constant 0.353553385 : f32
    %399 = vector.broadcast %cst_195 : f32 to vector<8x8xf32>
    %400 = arith.mulf %398, %399 : vector<8x8xf32>
    %cst_196 = arith.constant -1.000000e+30 : f32
    %401 = vector.broadcast %cst_196 : f32 to vector<8x8xf32>
    %402 = arith.select %91, %400, %401 : vector<8x8xi1>, vector<8x8xf32>
    %cst_197 = arith.constant dense<0xFF800000> : vector<8xf32>
    %403 = vector.multi_reduction <maximumf>, %402, %cst_197 [1] : vector<8x8xf32> to vector<8xf32>
    %404 = vector.shape_cast %403 : vector<8xf32> to vector<8x1xf32>
    %405 = vector.broadcast %404 : vector<8x1xf32> to vector<8x8xf32>
    %406 = arith.subf %402, %405 : vector<8x8xf32>
    %407 = math.exp %406 : vector<8x8xf32>
    %cst_198 = arith.constant dense<0.000000e+00> : vector<8xf32>
    %408 = vector.multi_reduction <add>, %407, %cst_198 [1] : vector<8x8xf32> to vector<8xf32>
    %409 = vector.shape_cast %408 : vector<8xf32> to vector<8x1xf32>
    %410 = vector.broadcast %409 : vector<8x1xf32> to vector<8x8xf32>
    %411 = arith.divf %407, %410 : vector<8x8xf32>
    %cst_199 = arith.constant dense<0.000000e+00> : vector<8x8xf32>
    %412 = tpu.matmul %411, %397, %cst_199 {dimension_numbers = #tpu.dot_dimension_numbers<[1], [0], [0], [1], [0, 0, 1, 1], [], []>} : vector<8x8xf32>, vector<8x8xf32>, vector<8x8xf32> -> vector<8x8xf32>
    %413 = vector.extract_strided_slice %358 {offsets = [0, 24], sizes = [8, 8], strides = [1, 1]} : vector<8x96xf32> to vector<8x8xf32>
    %414 = vector.extract_strided_slice %358 {offsets = [0, 56], sizes = [8, 8], strides = [1, 1]} : vector<8x96xf32> to vector<8x8xf32>
    %415 = vector.extract_strided_slice %358 {offsets = [0, 88], sizes = [8, 8], strides = [1, 1]} : vector<8x96xf32> to vector<8x8xf32>
    %cst_200 = arith.constant dense<0.000000e+00> : vector<8x8xf32>
    %416 = tpu.matmul %413, %414, %cst_200 {dimension_numbers = #tpu.dot_dimension_numbers<[1], [1], [0], [0], [0, 0, 1, 0], [], []>} : vector<8x8xf32>, vector<8x8xf32>, vector<8x8xf32> -> vector<8x8xf32>
    %cst_201 = arith.constant 0.353553385 : f32
    %417 = vector.broadcast %cst_201 : f32 to vector<8x8xf32>
    %418 = arith.mulf %416, %417 : vector<8x8xf32>
    %cst_202 = arith.constant -1.000000e+30 : f32
    %419 = vector.broadcast %cst_202 : f32 to vector<8x8xf32>
    %420 = arith.select %91, %418, %419 : vector<8x8xi1>, vector<8x8xf32>
    %cst_203 = arith.constant dense<0xFF800000> : vector<8xf32>
    %421 = vector.multi_reduction <maximumf>, %420, %cst_203 [1] : vector<8x8xf32> to vector<8xf32>
    %422 = vector.shape_cast %421 : vector<8xf32> to vector<8x1xf32>
    %423 = vector.broadcast %422 : vector<8x1xf32> to vector<8x8xf32>
    %424 = arith.subf %420, %423 : vector<8x8xf32>
    %425 = math.exp %424 : vector<8x8xf32>
    %cst_204 = arith.constant dense<0.000000e+00> : vector<8xf32>
    %426 = vector.multi_reduction <add>, %425, %cst_204 [1] : vector<8x8xf32> to vector<8xf32>
    %427 = vector.shape_cast %426 : vector<8xf32> to vector<8x1xf32>
    %428 = vector.broadcast %427 : vector<8x1xf32> to vector<8x8xf32>
    %429 = arith.divf %425, %428 : vector<8x8xf32>
    %cst_205 = arith.constant dense<0.000000e+00> : vector<8x8xf32>
    %430 = tpu.matmul %429, %415, %cst_205 {dimension_numbers = #tpu.dot_dimension_numbers<[1], [0], [0], [1], [0, 0, 1, 1], [], []>} : vector<8x8xf32>, vector<8x8xf32>, vector<8x8xf32> -> vector<8x8xf32>
    %431 = tpu.concatenate %376, %394, %412, %430 in 1 : vector<8x8xf32>, vector<8x8xf32>, vector<8x8xf32>, vector<8x8xf32> -> vector<8x32xf32>
    %432 = vector.extract_strided_slice %357 {offsets = [8, 0], sizes = [8, 96], strides = [1, 1]} : vector<16x96xf32> to vector<8x96xf32>
    %433 = vector.extract_strided_slice %432 {offsets = [0, 0], sizes = [8, 8], strides = [1, 1]} : vector<8x96xf32> to vector<8x8xf32>
    %434 = vector.extract_strided_slice %432 {offsets = [0, 32], sizes = [8, 8], strides = [1, 1]} : vector<8x96xf32> to vector<8x8xf32>
    %435 = vector.extract_strided_slice %432 {offsets = [0, 64], sizes = [8, 8], strides = [1, 1]} : vector<8x96xf32> to vector<8x8xf32>
    %cst_206 = arith.constant dense<0.000000e+00> : vector<8x8xf32>
    %436 = tpu.matmul %433, %434, %cst_206 {dimension_numbers = #tpu.dot_dimension_numbers<[1], [1], [0], [0], [0, 0, 1, 0], [], []>} : vector<8x8xf32>, vector<8x8xf32>, vector<8x8xf32> -> vector<8x8xf32>
    %cst_207 = arith.constant 0.353553385 : f32
    %437 = vector.broadcast %cst_207 : f32 to vector<8x8xf32>
    %438 = arith.mulf %436, %437 : vector<8x8xf32>
    %cst_208 = arith.constant -1.000000e+30 : f32
    %439 = vector.broadcast %cst_208 : f32 to vector<8x8xf32>
    %440 = arith.select %91, %438, %439 : vector<8x8xi1>, vector<8x8xf32>
    %cst_209 = arith.constant dense<0xFF800000> : vector<8xf32>
    %441 = vector.multi_reduction <maximumf>, %440, %cst_209 [1] : vector<8x8xf32> to vector<8xf32>
    %442 = vector.shape_cast %441 : vector<8xf32> to vector<8x1xf32>
    %443 = vector.broadcast %442 : vector<8x1xf32> to vector<8x8xf32>
    %444 = arith.subf %440, %443 : vector<8x8xf32>
    %445 = math.exp %444 : vector<8x8xf32>
    %cst_210 = arith.constant dense<0.000000e+00> : vector<8xf32>
    %446 = vector.multi_reduction <add>, %445, %cst_210 [1] : vector<8x8xf32> to vector<8xf32>
    %447 = vector.shape_cast %446 : vector<8xf32> to vector<8x1xf32>
    %448 = vector.broadcast %447 : vector<8x1xf32> to vector<8x8xf32>
    %449 = arith.divf %445, %448 : vector<8x8xf32>
    %cst_211 = arith.constant dense<0.000000e+00> : vector<8x8xf32>
    %450 = tpu.matmul %449, %435, %cst_211 {dimension_numbers = #tpu.dot_dimension_numbers<[1], [0], [0], [1], [0, 0, 1, 1], [], []>} : vector<8x8xf32>, vector<8x8xf32>, vector<8x8xf32> -> vector<8x8xf32>
    %451 = vector.extract_strided_slice %432 {offsets = [0, 8], sizes = [8, 8], strides = [1, 1]} : vector<8x96xf32> to vector<8x8xf32>
    %452 = vector.extract_strided_slice %432 {offsets = [0, 40], sizes = [8, 8], strides = [1, 1]} : vector<8x96xf32> to vector<8x8xf32>
    %453 = vector.extract_strided_slice %432 {offsets = [0, 72], sizes = [8, 8], strides = [1, 1]} : vector<8x96xf32> to vector<8x8xf32>
    %cst_212 = arith.constant dense<0.000000e+00> : vector<8x8xf32>
    %454 = tpu.matmul %451, %452, %cst_212 {dimension_numbers = #tpu.dot_dimension_numbers<[1], [1], [0], [0], [0, 0, 1, 0], [], []>} : vector<8x8xf32>, vector<8x8xf32>, vector<8x8xf32> -> vector<8x8xf32>
    %cst_213 = arith.constant 0.353553385 : f32
    %455 = vector.broadcast %cst_213 : f32 to vector<8x8xf32>
    %456 = arith.mulf %454, %455 : vector<8x8xf32>
    %cst_214 = arith.constant -1.000000e+30 : f32
    %457 = vector.broadcast %cst_214 : f32 to vector<8x8xf32>
    %458 = arith.select %91, %456, %457 : vector<8x8xi1>, vector<8x8xf32>
    %cst_215 = arith.constant dense<0xFF800000> : vector<8xf32>
    %459 = vector.multi_reduction <maximumf>, %458, %cst_215 [1] : vector<8x8xf32> to vector<8xf32>
    %460 = vector.shape_cast %459 : vector<8xf32> to vector<8x1xf32>
    %461 = vector.broadcast %460 : vector<8x1xf32> to vector<8x8xf32>
    %462 = arith.subf %458, %461 : vector<8x8xf32>
    %463 = math.exp %462 : vector<8x8xf32>
    %cst_216 = arith.constant dense<0.000000e+00> : vector<8xf32>
    %464 = vector.multi_reduction <add>, %463, %cst_216 [1] : vector<8x8xf32> to vector<8xf32>
    %465 = vector.shape_cast %464 : vector<8xf32> to vector<8x1xf32>
    %466 = vector.broadcast %465 : vector<8x1xf32> to vector<8x8xf32>
    %467 = arith.divf %463, %466 : vector<8x8xf32>
    %cst_217 = arith.constant dense<0.000000e+00> : vector<8x8xf32>
    %468 = tpu.matmul %467, %453, %cst_217 {dimension_numbers = #tpu.dot_dimension_numbers<[1], [0], [0], [1], [0, 0, 1, 1], [], []>} : vector<8x8xf32>, vector<8x8xf32>, vector<8x8xf32> -> vector<8x8xf32>
    %469 = vector.extract_strided_slice %432 {offsets = [0, 16], sizes = [8, 8], strides = [1, 1]} : vector<8x96xf32> to vector<8x8xf32>
    %470 = vector.extract_strided_slice %432 {offsets = [0, 48], sizes = [8, 8], strides = [1, 1]} : vector<8x96xf32> to vector<8x8xf32>
    %471 = vector.extract_strided_slice %432 {offsets = [0, 80], sizes = [8, 8], strides = [1, 1]} : vector<8x96xf32> to vector<8x8xf32>
    %cst_218 = arith.constant dense<0.000000e+00> : vector<8x8xf32>
    %472 = tpu.matmul %469, %470, %cst_218 {dimension_numbers = #tpu.dot_dimension_numbers<[1], [1], [0], [0], [0, 0, 1, 0], [], []>} : vector<8x8xf32>, vector<8x8xf32>, vector<8x8xf32> -> vector<8x8xf32>
    %cst_219 = arith.constant 0.353553385 : f32
    %473 = vector.broadcast %cst_219 : f32 to vector<8x8xf32>
    %474 = arith.mulf %472, %473 : vector<8x8xf32>
    %cst_220 = arith.constant -1.000000e+30 : f32
    %475 = vector.broadcast %cst_220 : f32 to vector<8x8xf32>
    %476 = arith.select %91, %474, %475 : vector<8x8xi1>, vector<8x8xf32>
    %cst_221 = arith.constant dense<0xFF800000> : vector<8xf32>
    %477 = vector.multi_reduction <maximumf>, %476, %cst_221 [1] : vector<8x8xf32> to vector<8xf32>
    %478 = vector.shape_cast %477 : vector<8xf32> to vector<8x1xf32>
    %479 = vector.broadcast %478 : vector<8x1xf32> to vector<8x8xf32>
    %480 = arith.subf %476, %479 : vector<8x8xf32>
    %481 = math.exp %480 : vector<8x8xf32>
    %cst_222 = arith.constant dense<0.000000e+00> : vector<8xf32>
    %482 = vector.multi_reduction <add>, %481, %cst_222 [1] : vector<8x8xf32> to vector<8xf32>
    %483 = vector.shape_cast %482 : vector<8xf32> to vector<8x1xf32>
    %484 = vector.broadcast %483 : vector<8x1xf32> to vector<8x8xf32>
    %485 = arith.divf %481, %484 : vector<8x8xf32>
    %cst_223 = arith.constant dense<0.000000e+00> : vector<8x8xf32>
    %486 = tpu.matmul %485, %471, %cst_223 {dimension_numbers = #tpu.dot_dimension_numbers<[1], [0], [0], [1], [0, 0, 1, 1], [], []>} : vector<8x8xf32>, vector<8x8xf32>, vector<8x8xf32> -> vector<8x8xf32>
    %487 = vector.extract_strided_slice %432 {offsets = [0, 24], sizes = [8, 8], strides = [1, 1]} : vector<8x96xf32> to vector<8x8xf32>
    %488 = vector.extract_strided_slice %432 {offsets = [0, 56], sizes = [8, 8], strides = [1, 1]} : vector<8x96xf32> to vector<8x8xf32>
    %489 = vector.extract_strided_slice %432 {offsets = [0, 88], sizes = [8, 8], strides = [1, 1]} : vector<8x96xf32> to vector<8x8xf32>
    %cst_224 = arith.constant dense<0.000000e+00> : vector<8x8xf32>
    %490 = tpu.matmul %487, %488, %cst_224 {dimension_numbers = #tpu.dot_dimension_numbers<[1], [1], [0], [0], [0, 0, 1, 0], [], []>} : vector<8x8xf32>, vector<8x8xf32>, vector<8x8xf32> -> vector<8x8xf32>
    %cst_225 = arith.constant 0.353553385 : f32
    %491 = vector.broadcast %cst_225 : f32 to vector<8x8xf32>
    %492 = arith.mulf %490, %491 : vector<8x8xf32>
    %cst_226 = arith.constant -1.000000e+30 : f32
    %493 = vector.broadcast %cst_226 : f32 to vector<8x8xf32>
    %494 = arith.select %91, %492, %493 : vector<8x8xi1>, vector<8x8xf32>
    %cst_227 = arith.constant dense<0xFF800000> : vector<8xf32>
    %495 = vector.multi_reduction <maximumf>, %494, %cst_227 [1] : vector<8x8xf32> to vector<8xf32>
    %496 = vector.shape_cast %495 : vector<8xf32> to vector<8x1xf32>
    %497 = vector.broadcast %496 : vector<8x1xf32> to vector<8x8xf32>
    %498 = arith.subf %494, %497 : vector<8x8xf32>
    %499 = math.exp %498 : vector<8x8xf32>
    %cst_228 = arith.constant dense<0.000000e+00> : vector<8xf32>
    %500 = vector.multi_reduction <add>, %499, %cst_228 [1] : vector<8x8xf32> to vector<8xf32>
    %501 = vector.shape_cast %500 : vector<8xf32> to vector<8x1xf32>
    %502 = vector.broadcast %501 : vector<8x1xf32> to vector<8x8xf32>
    %503 = arith.divf %499, %502 : vector<8x8xf32>
    %cst_229 = arith.constant dense<0.000000e+00> : vector<8x8xf32>
    %504 = tpu.matmul %503, %489, %cst_229 {dimension_numbers = #tpu.dot_dimension_numbers<[1], [0], [0], [1], [0, 0, 1, 1], [], []>} : vector<8x8xf32>, vector<8x8xf32>, vector<8x8xf32> -> vector<8x8xf32>
    %505 = tpu.concatenate %450, %468, %486, %504 in 1 : vector<8x8xf32>, vector<8x8xf32>, vector<8x8xf32>, vector<8x8xf32> -> vector<8x32xf32>
    %506 = tpu.concatenate %431, %505 in 0 : vector<8x32xf32>, vector<8x32xf32> -> vector<16x32xf32>
    %c1_230 = arith.constant 1 : index
    %c0_231 = arith.constant 0 : index
    %c0_232 = arith.constant 0 : index
    %507 = vector.load %arg11[%c1_230, %c0_231, %c0_232] : memref<2x32x32xf32, #tpu.memory_space<vmem>>, vector<1x32x32xf32>
    %508 = vector.shape_cast %507 : vector<1x32x32xf32> to vector<32x32xf32>
    %cst_233 = arith.constant dense<0.000000e+00> : vector<16x32xf32>
    %509 = tpu.matmul %506, %508, %cst_233 {dimension_numbers = #tpu.dot_dimension_numbers<[1], [0], [0], [1], [0, 0, 1, 1], [], []>} : vector<16x32xf32>, vector<32x32xf32>, vector<16x32xf32> -> vector<16x32xf32>
    %510 = arith.addf %326, %509 : vector<16x32xf32>
    %c1_234 = arith.constant 1 : index
    %c0_235 = arith.constant 0 : index
    %c0_236 = arith.constant 0 : index
    %511 = vector.load %arg12[%c1_234, %c0_235, %c0_236] : memref<2x1x32xf32, #tpu.memory_space<vmem>>, vector<1x1x32xf32>
    %512 = vector.shape_cast %511 : vector<1x1x32xf32> to vector<1x32xf32>
    %513 = vector.broadcast %512 : vector<1x32xf32> to vector<16x32xf32>
    %514 = arith.addf %510, %513 : vector<16x32xf32>
    %c1_237 = arith.constant 1 : index
    %c0_238 = arith.constant 0 : index
    %c0_239 = arith.constant 0 : index
    %515 = vector.load %arg13[%c1_237, %c0_238, %c0_239] : memref<2x1x32xf32, #tpu.memory_space<vmem>>, vector<1x1x32xf32>
    %516 = vector.shape_cast %515 : vector<1x1x32xf32> to vector<1x32xf32>
    %c1_240 = arith.constant 1 : index
    %c0_241 = arith.constant 0 : index
    %c0_242 = arith.constant 0 : index
    %517 = vector.load %arg14[%c1_240, %c0_241, %c0_242] : memref<2x1x32xf32, #tpu.memory_space<vmem>>, vector<1x1x32xf32>
    %518 = vector.shape_cast %517 : vector<1x1x32xf32> to vector<1x32xf32>
    %cst_243 = arith.constant dense<0.000000e+00> : vector<16xf32>
    %519 = vector.multi_reduction <add>, %514, %cst_243 [1] : vector<16x32xf32> to vector<16xf32>
    %520 = vector.shape_cast %519 : vector<16xf32> to vector<16x1xf32>
    %cst_244 = arith.constant 3.200000e+01 : f32
    %521 = vector.broadcast %cst_244 : f32 to vector<16x1xf32>
    %522 = arith.divf %520, %521 : vector<16x1xf32>
    %523 = vector.broadcast %522 : vector<16x1xf32> to vector<16x32xf32>
    %524 = arith.subf %514, %523 : vector<16x32xf32>
    %525 = arith.mulf %524, %524 : vector<16x32xf32>
    %cst_245 = arith.constant dense<0.000000e+00> : vector<16xf32>
    %526 = vector.multi_reduction <add>, %525, %cst_245 [1] : vector<16x32xf32> to vector<16xf32>
    %527 = vector.shape_cast %526 : vector<16xf32> to vector<16x1xf32>
    %cst_246 = arith.constant 3.200000e+01 : f32
    %528 = vector.broadcast %cst_246 : f32 to vector<16x1xf32>
    %529 = arith.divf %527, %528 : vector<16x1xf32>
    %cst_247 = arith.constant 9.99999974E-6 : f32
    %530 = vector.broadcast %cst_247 : f32 to vector<16x1xf32>
    %531 = arith.addf %529, %530 : vector<16x1xf32>
    %532 = math.rsqrt %531 : vector<16x1xf32>
    %533 = vector.broadcast %532 : vector<16x1xf32> to vector<16x32xf32>
    %534 = arith.mulf %524, %533 : vector<16x32xf32>
    %535 = vector.broadcast %516 : vector<1x32xf32> to vector<16x32xf32>
    %536 = arith.mulf %534, %535 : vector<16x32xf32>
    %537 = vector.broadcast %518 : vector<1x32xf32> to vector<16x32xf32>
    %538 = arith.addf %536, %537 : vector<16x32xf32>
    %c1_248 = arith.constant 1 : index
    %c0_249 = arith.constant 0 : index
    %c0_250 = arith.constant 0 : index
    %539 = vector.load %arg15[%c1_248, %c0_249, %c0_250] : memref<2x32x128xf32, #tpu.memory_space<vmem>>, vector<1x32x128xf32>
    %540 = vector.shape_cast %539 : vector<1x32x128xf32> to vector<32x128xf32>
    %cst_251 = arith.constant dense<0.000000e+00> : vector<16x128xf32>
    %541 = tpu.matmul %538, %540, %cst_251 {dimension_numbers = #tpu.dot_dimension_numbers<[1], [0], [0], [1], [0, 0, 1, 1], [], []>} : vector<16x32xf32>, vector<32x128xf32>, vector<16x128xf32> -> vector<16x128xf32>
    %c1_252 = arith.constant 1 : index
    %c0_253 = arith.constant 0 : index
    %c0_254 = arith.constant 0 : index
    %542 = vector.load %arg16[%c1_252, %c0_253, %c0_254] : memref<2x1x128xf32, #tpu.memory_space<vmem>>, vector<1x1x128xf32>
    %543 = vector.shape_cast %542 : vector<1x1x128xf32> to vector<1x128xf32>
    %544 = vector.broadcast %543 : vector<1x128xf32> to vector<16x128xf32>
    %545 = arith.addf %541, %544 : vector<16x128xf32>
    %cst_255 = arith.constant 1.702000e+00 : f32
    %546 = vector.broadcast %cst_255 : f32 to vector<16x128xf32>
    %547 = arith.mulf %546, %545 : vector<16x128xf32>
    %548 = arith.negf %547 : vector<16x128xf32>
    %549 = math.exp %548 : vector<16x128xf32>
    %cst_256 = arith.constant 1.000000e+00 : f32
    %550 = vector.broadcast %cst_256 : f32 to vector<16x128xf32>
    %551 = arith.addf %550, %549 : vector<16x128xf32>
    %552 = arith.divf %550, %551 : vector<16x128xf32>
    %553 = arith.mulf %545, %552 : vector<16x128xf32>
    %c1_257 = arith.constant 1 : index
    %c0_258 = arith.constant 0 : index
    %c0_259 = arith.constant 0 : index
    %554 = vector.load %arg17[%c1_257, %c0_258, %c0_259] : memref<2x128x32xf32, #tpu.memory_space<vmem>>, vector<1x128x32xf32>
    %555 = vector.shape_cast %554 : vector<1x128x32xf32> to vector<128x32xf32>
    %cst_260 = arith.constant dense<0.000000e+00> : vector<16x32xf32>
    %556 = tpu.matmul %553, %555, %cst_260 {dimension_numbers = #tpu.dot_dimension_numbers<[1], [0], [0], [1], [0, 0, 1, 1], [], []>} : vector<16x128xf32>, vector<128x32xf32>, vector<16x32xf32> -> vector<16x32xf32>
    %557 = arith.addf %514, %556 : vector<16x32xf32>
    %c1_261 = arith.constant 1 : index
    %c0_262 = arith.constant 0 : index
    %c0_263 = arith.constant 0 : index
    %558 = vector.load %arg18[%c1_261, %c0_262, %c0_263] : memref<2x1x32xf32, #tpu.memory_space<vmem>>, vector<1x1x32xf32>
    %559 = vector.shape_cast %558 : vector<1x1x32xf32> to vector<1x32xf32>
    %560 = vector.broadcast %559 : vector<1x32xf32> to vector<16x32xf32>
    %561 = arith.addf %557, %560 : vector<16x32xf32>
    %562 = vector.extract_strided_slice %561 {offsets = [0, 0], sizes = [1, 32], strides = [1, 1]} : vector<16x32xf32> to vector<1x32xf32>
    %563 = vector.extract_strided_slice %561 {offsets = [8, 0], sizes = [1, 32], strides = [1, 1]} : vector<16x32xf32> to vector<1x32xf32>
    %564 = tpu.concatenate %562, %563 in 0 : vector<1x32xf32>, vector<1x32xf32> -> vector<2x32xf32>
    %c0_264 = arith.constant 0 : index
    %c0_265 = arith.constant 0 : index
    %565 = vector.load %arg19[%c0_264, %c0_265] : memref<1x32xf32, #tpu.memory_space<vmem>>, vector<1x32xf32>
    %c0_266 = arith.constant 0 : index
    %c0_267 = arith.constant 0 : index
    %566 = vector.load %arg20[%c0_266, %c0_267] : memref<1x32xf32, #tpu.memory_space<vmem>>, vector<1x32xf32>
    %cst_268 = arith.constant dense<0.000000e+00> : vector<2xf32>
    %567 = vector.multi_reduction <add>, %564, %cst_268 [1] : vector<2x32xf32> to vector<2xf32>
    %568 = vector.shape_cast %567 : vector<2xf32> to vector<2x1xf32>
    %cst_269 = arith.constant 3.200000e+01 : f32
    %569 = vector.broadcast %cst_269 : f32 to vector<2x1xf32>
    %570 = arith.divf %568, %569 : vector<2x1xf32>
    %571 = vector.broadcast %570 : vector<2x1xf32> to vector<2x32xf32>
    %572 = arith.subf %564, %571 : vector<2x32xf32>
    %573 = arith.mulf %572, %572 : vector<2x32xf32>
    %cst_270 = arith.constant dense<0.000000e+00> : vector<2xf32>
    %574 = vector.multi_reduction <add>, %573, %cst_270 [1] : vector<2x32xf32> to vector<2xf32>
    %575 = vector.shape_cast %574 : vector<2xf32> to vector<2x1xf32>
    %cst_271 = arith.constant 3.200000e+01 : f32
    %576 = vector.broadcast %cst_271 : f32 to vector<2x1xf32>
    %577 = arith.divf %575, %576 : vector<2x1xf32>
    %cst_272 = arith.constant 9.99999974E-6 : f32
    %578 = vector.broadcast %cst_272 : f32 to vector<2x1xf32>
    %579 = arith.addf %577, %578 : vector<2x1xf32>
    %580 = math.rsqrt %579 : vector<2x1xf32>
    %581 = vector.broadcast %580 : vector<2x1xf32> to vector<2x32xf32>
    %582 = arith.mulf %572, %581 : vector<2x32xf32>
    %583 = vector.broadcast %565 : vector<1x32xf32> to vector<2x32xf32>
    %584 = arith.mulf %582, %583 : vector<2x32xf32>
    %585 = vector.broadcast %566 : vector<1x32xf32> to vector<2x32xf32>
    %586 = arith.addf %584, %585 : vector<2x32xf32>
    %c0_273 = arith.constant 0 : index
    %c0_274 = arith.constant 0 : index
    %587 = vector.load %arg21[%c0_273, %c0_274] : memref<32x16xf32, #tpu.memory_space<vmem>>, vector<32x16xf32>
    %cst_275 = arith.constant dense<0.000000e+00> : vector<2x16xf32>
    %588 = tpu.matmul %586, %587, %cst_275 {dimension_numbers = #tpu.dot_dimension_numbers<[1], [0], [0], [1], [0, 0, 1, 1], [], []>} : vector<2x32xf32>, vector<32x16xf32>, vector<2x16xf32> -> vector<2x16xf32>
    %c0_276 = arith.constant 0 : index
    %c0_277 = arith.constant 0 : index
    %589 = vector.load %arg22[%c0_276, %c0_277] : memref<2x16xf32, #tpu.memory_space<vmem>>, vector<2x16xf32>
    tpu.vector_store %arg22[%c0_276, %c0_277], %588 {strides = array<i32>} : memref<2x16xf32, #tpu.memory_space<vmem>>, vector<2x16xf32>,
    return
  }
}

</mosaic_0001>

<bundles_post_ra>
// kernel: tpu_custom_call.1
= control target key start
LH: loop header
LB: loop body
LE: loop exit
PB: predicated region body
PF: predicated region fallthrough
CT: control target
= control target key end

     0   :  { %s7554_s0 = inlined_call_operand.vmem [shape: f32[2,3,20,20], index: 0, kind: input, shape index: {}]   ;;  %s7555_s1 = inlined_call_operand.vmem [shape: f32[60,512], index: 1, kind: input, shape index: {}]   ;;  %s7556_s2 = inlined_call_operand.vmem [shape: f32[8,16,40], index: 2, kind: input, shape index: {}]   ;;  %s7557_s3 = inlined_call_operand.vmem [shape: f32[16,1], index: 3, kind: input, shape index: {}]   ;;  %s7558_s4 = inlined_call_operand.hbm [shape: f32[16,32], index: 4, kind: input, shape index: {}]   ;;  %s7559_s5 = inlined_call_operand.hbm [shape: f32[1,32], index: 5, kind: input, shape index: {}]   ;;  %s7560_s6 = inlined_call_operand.hbm [shape: f32[1,32], index: 6, kind: input, shape index: {}]   ;;  %s7561_s7 = inlined_call_operand.vmem [shape: f32[2,1,32], index: 7, kind: input, shape index: {}]   ;;  %s7562_s8 = inlined_call_operand.vmem [shape: f32[2,1,32], index: 8, kind: input, shape index: {}]   ;;  %s7563_s9 = inlined_call_operand.vmem [shape: f32[2,32,96], index: 9, kind: input, shape index: {}]   ;;  %s7564_s10 = inlined_call_operand.vmem [shape: f32[2,1,96], index: 10, kind: input, shape index: {}]   ;;  %s7565_s11 = inlined_call_operand.vmem [shape: f32[2,32,32], index: 11, kind: input, shape index: {}]   ;;  %s7566_s12 = inlined_call_operand.vmem [shape: f32[2,1,32], index: 12, kind: input, shape index: {}]   ;;  %s7567_s13 = inlined_call_operand.vmem [shape: f32[2,1,32], index: 13, kind: input, shape index: {}]   ;;  %s7568_s14 = inlined_call_operand.vmem [shape: f32[2,1,32], index: 14, kind: input, shape index: {}]   ;;  %s7569_s15 = inlined_call_operand.vmem [shape: f32[2,32,128], index: 15, kind: input, shape index: {}]   ;;  %s7570_s16 = inlined_call_operand.vmem [shape: f32[2,1,128], index: 16, kind: input, shape index: {}]   ;;  %s7571_s17 = inlined_call_operand.vmem [shape: f32[2,128,32], index: 17, kind: input, shape index: {}]   ;;  %s7572_s18 = inlined_call_operand.vmem [shape: f32[2,1,32], index: 18, kind: input, shape index: {}]   ;;  %s7573_s19 = inlined_call_operand.vmem [shape: f32[1,32], index: 19, kind: input, shape index: {}]   ;;  %s7574_s20 = inlined_call_operand.vmem [shape: f32[1,32], index: 20, kind: input, shape index: {}]   ;;  %s7575_s21 = inlined_call_operand.vmem [shape: f32[32,16], index: 21, kind: input, shape index: {}]   ;;  %s7576_s22 = inlined_call_operand.hbm [shape: f32[2,16], index: 22, kind: output, shape index: {}]  }
   0x1   :  { %7597 = sst [smem:[#allocation12_spill]] %s7554_s0 }
   0x2   :  { %7598 = sst [smem:[#allocation13_spill]] %s7555_s1 }
   0x3   :  { %7599 = sst [smem:[#allocation14_spill]] %s7556_s2 }
   0x4   :  { %7600 = sst [smem:[#allocation15_spill]] %s7557_s3 }
   0x5   :  { %7601 = sst [smem:[#allocation16_spill]] %s7558_s4 }
   0x6   :  { %7602 = sst [smem:[#allocation17_spill]] %s7559_s5 }
   0x7   :  { %7603 = sst [smem:[#allocation18_spill]] %s7560_s6 }
   0x8   :  { %27 = vsyncpa [#allocation3], 0 }
   0x9   :  { %28 = vsyncpa [#allocation6], 0 }
   0xa   :  { %29 = vsyncpa [#allocation4], 0  ;;  %s6328_s3 = smov [#allocation5]   ;;  %s6329_s29 = smov [#allocation2]  }
   0xb   :  { %s56_s28 = sshll.u32 %s6328_s3, 4  ;;  %s43_s30 = sshll.u32 %s6329_s29, 4  ;;  %s57_s28 = int_to_ptr.vmem [resolvable:$true] %s56_s28  ;;  %s44_s30 = int_to_ptr.vmem [resolvable:$true] %s43_s30 }
   0xc   :  { %s6250_s4 = scalar_lea.vmem %s57_s28, 16  ;;  %s6254_s0 = scalar_lea.vmem %s57_s28, 32 }
   0xd   :  { %p6251_p0 = scmp.ne.s32.totalorder %s57_s28, %s6250_s4  ;;  %p6255_p1 = scmp.lt.s32.totalorder %s57_s28, %s57_s28 }
   0xe   :  { %p6256_p2 = scmp.lt.s32.totalorder %s6254_s0, %s6250_s4 }
  0x10   :  { %p6257_p3 = por %p6256_p2, %p6255_p1 }
  0x12   :  { %p6258_p4 = pnand %p6257_p3, %p6251_p0 }
  0x14   :  { %6261 = shalt.err (!%p6258_p4)
}
  0x15   :  { %s7604_s5 = sld [smem:[#allocation17_spill]]  ;;  %s6270_s24 = scalar_lea.vmem %s44_s30, 256 }
  0x16   :  { %p6271_p5 = scmp.ne.s32.totalorder %s44_s30, %s6270_s24  ;;  %p6275_p6 = scmp.lt.s32.totalorder %s44_s30, %s44_s30 }
  0x17   :  { %p6276_p7 = scmp.lt.s32.totalorder %s6270_s24, %s6270_s24 }
  0x19   :  { %p6277_p8 = por %p6276_p7, %p6275_p6 }
  0x1b   :  { %59 = dma.hbm_to_vmem [thread:$0]  %s7604_s5, 16, %s57_s28, [#allocation6]  }
  0x1c   :  { %p6278_p9 = pnand %p6277_p8, %p6271_p5 }
  0x1e   :  { %6281 = shalt.err (!%p6278_p9)
}
  0x1f   :  { %s6330_s6 = smov 128   ;;  %s6331_s25 = smov 8  }
  0x20   :  { %s7605_s27 = sld [smem:[#allocation16_spill]]  ;;  %s6332_s3 = smov [#allocation7]  }
  0x21   :  { %s66_s29 = sshll.u32 %s6332_s3, 4  ;;  %s67_s29 = int_to_ptr.vmem [resolvable:$true] %s66_s29 }
  0x22   :  { %s6290_s4 = scalar_lea.vmem %s67_s29, 16  ;;  %s6294_s28 = scalar_lea.vmem %s67_s29, 32 }
  0x23   :  { %p6291_p10 = scmp.ne.s32.totalorder %s67_s29, %s6290_s4  ;;  %p6295_p11 = scmp.lt.s32.totalorder %s67_s29, %s67_s29 }
  0x24   :  { %p6296_p12 = scmp.lt.s32.totalorder %s6294_s28, %s6290_s4 }
  0x26   :  { %49 = dma.hbm_to_vmem [thread:$0]  %s7605_s27, 256, %s44_s30, [#allocation3], %s6330_s6, %s6330_s6, %s6331_s25  }
  0x27   :  { %p6297_p13 = por %p6296_p12, %p6295_p11 }
  0x29   :  { %p6298_p0 = pnand %p6297_p13, %p6291_p10 }
  0x2b   :  { %6301 = shalt.err (!%p6298_p0)
}
  0x2c   :  { %s7606_s1 = sld [smem:[#allocation18_spill]] }
  0x32   :  { %69 = dma.hbm_to_vmem [thread:$0]  %s7606_s1, 16, %s67_s29, [#allocation6]  }
  0x33   :  { %6322 = dma.done.wait [#allocation3], 256  }
  0x34   :  { %6323 = vsyncadd [#allocation3], 4294967040 }
  0x35   :  { %6324 = dma.done.wait [#allocation6], 32  }
  0x36   :  { %6325 = vsyncadd [#allocation6], 4294967264  ;;  %v6333_v0 = vmov 0.0   ;;  %s7607_s24 = sld [smem:[#allocation12_spill]]  ;;  %s6334_s2 = smov 20   ;;  %vm119_vm0 = vcmask 1043456  }
  0x37   :  { %337 = vmatprep.mubr.f32.mxu0 %v6333_v0  ;;  %432 = vmatprep.mubr.f32.mxu1 %v6333_v0  ;;  %s7608_s23 = sld [smem:[#allocation13_spill]]  ;;  %s7583_s1 = smov 40   ;;  %vm201_vm1 = vcmask 162816   ;;  %vm207_vm2 = vcmask 326656   ;;  %vm245_vm3 = vcmask 490496   ;;  %vm1272_vm8 = vcmask 261120  }
  0x38   :  { %s7609_s3 = sld [smem:[#allocation14_spill]]  ;;  %s6336_s29 = smov 64   ;;  %vm6340_vm9 = vmmov 0   ;;  %vm1494_vm10 = vcmask 64512   ;;  %vm2172_vm12 = vcmask 130048   ;;  %vm2174_vm13 = vcmask 195584  }
  0x39   :  { %s7610_s27 = sld [smem:[#allocation15_spill]]  ;;  %s6339_s28 = smov 96   ;;  %vm5185_vm14 = vcmask 1040384   ;;  %vm5193_vm15 = vcmask 254976  }
  0x3a   :  { %s7595_s26 = smov 88   ;;  %s7591_s4 = smov 112  }
  0x3b   :  { %s7581_s0 = smov 48   ;;  %s7585_s30 = smov 56  }
  0x3c   :  { %v5329_v1 = vld [vmem:[%s7607_s24 + $0x18] sm:$0xff]  ;;  %v5330_v2 = vld [vmem:[%s7607_s24 + $0x20] sm:$0xff]  ;;  %v5335_v3 = vld [vmem:[%s7607_s24 + $0x30] sm:$0xff]  ;;  %s6349_s5 = smov 16   ;;  %s7614_s6 = smov 104  }
  0x3d   :  { %168 = vrot.lane.b32.xlu0 %v5329_v1, %s6334_s2  ;;  %170 = vrot.lane.b32.xlu1 %v5330_v2, %s6334_s2  ;;  %v5336_v4 = vld [vmem:[%s7607_s24 + $0x38] sm:$0xff]  ;;  %v5331_v5 = vld [vmem:[%s7607_s24 + $0x28] sm:$0xf] }
  0x3e   :  { %v5332_v6 = vld [vmem:[%s7607_s24 + $0x60] sm:$0xff]  ;;  %v5338_v7 = vld [vmem:[%s7607_s24 + $0x78] sm:$0xff]  ;;  %v5333_v11 = vld [vmem:[%s7607_s24 + $0x68] sm:$0xff] }
  0x3f   :  { %v140_v8 = vrot.slane %v5332_v6, 4  ;;  %v5337_v9 = vld [vmem:[%s7607_s24 + $0x40] sm:$0xf]  ;;  %v158_v10 = vrot.slane %v5338_v7, 4  ;;  %v238_v13 = vld [vmem:[%s7608_s23 + $0xc8] sm:$0xff]  ;;  %v141_v14 = vrot.slane %v5333_v11, 4 }
  0x40   :  { %v5339_v12 = vld [vmem:[%s7607_s24 + $0x80] sm:$0xff]  ;;  %v5334_v15 = vld [vmem:[%s7607_s24 + $0x70] sm:$0xf]  ;;  %v242_v16 = vld [vmem:[%s7608_s23 + $0xe8] sm:$0xf] }
  0x41   :  { %186 = vrot.lane.b32.xlu0 %v5335_v3, %s7583_s1  ;;  %188 = vrot.lane.b32.xlu1 %v5336_v4, %s7583_s1  ;;  %v244_v17 = vld [vmem:[%s7608_s23 + $0xf8] sm:$0xf]  ;;  %v146_v18 = vsel %vm119_vm0, %v5331_v5, %v140_v8  ;;  %v164_v19 = vsel %vm119_vm0, %v5337_v9, %v158_v10  ;;  %v159_v20 = vrot.slane %v5339_v12, 4  ;;  %v241_v21 = vld [vmem:[%s7608_s23 + $0xe0] sm:$0xf]  ;;  %v142_v31 = vsel %vm119_vm0, %v140_v8, %v141_v14 }
  0x42   :  { %5341 = vmatprep.subr.msk.mxu0 %vm119_vm0, %v242_v16  ;;  %5348 = vmatprep.subr.msk.mxu1 %vm119_vm0, %v244_v17  ;;  %v243_v22 = vld [vmem:[%s7608_s23 + $0xf0] sm:$0xf]  ;;  %v240_v23 = vld [vmem:[%s7608_s23 + $0xd8] sm:$0xff]  ;;  %v5340_v24 = vld [vmem:[%s7607_s24 + $0x88] sm:$0xf]  ;;  %v143_v33 = vrot.slane %v5334_v15, 4 }
  0x43   :  { %5342 = vmatpush1.msk.msra.mxu0 %vm119_vm0, %v241_v21  ;;  %5349 = vmatpush1.msk.msra.mxu1 %vm119_vm0, %v243_v22  ;;  %v237_v25 = vld [vmem:[%s7608_s23 + $0xc0] sm:$0xff]  ;;  %v239_v26 = vld [vmem:[%s7608_s23 + $0xd0] sm:$0xff]  ;;  %v234_v27 = vld [vmem:[%s7608_s23 + $0xa8] sm:$0xff]  ;;  %v160_v32 = vsel %vm119_vm0, %v158_v10, %v159_v20  ;;  %v161_v34 = vrot.slane %v5340_v24, 4 }
  0x44   :  { %291 = vmatprep.subr.mxu0 %v238_v13  ;;  %386 = vmatprep.subr.mxu1 %v240_v23  ;;  %v236_v28 = vld [vmem:[%s7608_s23 + $0xb8] sm:$0xff]  ;;  %v233_v29 = vld [vmem:[%s7608_s23 + $0xa0] sm:$0xff]  ;;  %v235_v30 = vld [vmem:[%s7608_s23 + $0xb0] sm:$0xff]  ;;  %v144_v41 = vsel %vm119_vm0, %v141_v14, %v143_v33 }
  0x45   :  { %172 = vrot.lane.b32.xlu0 %v146_v18, %s6334_s2  ;;  %190 = vrot.lane.b32.xlu1 %v164_v19, %s7583_s1  ;;  %v230_v35 = vld [vmem:[%s7608_s23 + $0x88] sm:$0xff]  ;;  %v232_v36 = vld [vmem:[%s7608_s23 + $0x98] sm:$0xff]  ;;  %v162_v42 = vsel %vm119_vm0, %v159_v20, %v161_v34 }
  0x46   :  { %292 = vmatpush1.msra.mxu0 %v237_v25  ;;  %387 = vmatpush1.msra.mxu1 %v239_v26  ;;  %v229_v37 = vld [vmem:[%s7608_s23 + $0x80] sm:$0xff]  ;;  %v231_v38 = vld [vmem:[%s7608_s23 + $0x90] sm:$0xff]  ;;  %v226_v39 = vld [vmem:[%s7608_s23 + $0x68] sm:$0xff] }
  0x47   :  { %293 = vmatprep.subr.mxu0 %v234_v27  ;;  %388 = vmatprep.subr.mxu1 %v236_v28  ;;  %v228_v40 = vld [vmem:[%s7608_s23 + $0x78] sm:$0xff]  ;;  %v225_v43 = vld [vmem:[%s7608_s23 + $0x60] sm:$0xff]  ;;  %v227_v44 = vld [vmem:[%s7608_s23 + $0x70] sm:$0xff] }
  0x48   :  { %294 = vmatpush1.msra.mxu0 %v233_v29  ;;  %389 = vmatpush1.msra.mxu1 %v235_v30  ;;  %v222_v45 = vld [vmem:[%s7608_s23 + $0x48] sm:$0xff]  ;;  %v224_v46 = vld [vmem:[%s7608_s23 + $0x58] sm:$0xff]  ;;  %v221_v47 = vld [vmem:[%s7608_s23 + $0x40] sm:$0xff] }
  0x49   :  { %174 = vrot.lane.b32.xlu0 %v142_v31, %s6334_s2  ;;  %192 = vrot.lane.b32.xlu1 %v160_v32, %s7583_s1  ;;  %v223_v48 = vld [vmem:[%s7608_s23 + $0x50] sm:$0xff]  ;;  %v218_v49 = vld [vmem:[%s7608_s23 + $0x28] sm:$0xff] }
  0x4a   :  { %295 = vmatprep.subr.mxu0 %v230_v35  ;;  %390 = vmatprep.subr.mxu1 %v232_v36  ;;  %v220_v50 = vld [vmem:[%s7608_s23 + $0x38] sm:$0xff]  ;;  %v217_v51 = vld [vmem:[%s7608_s23 + $0x20] sm:$0xff]  ;;  %v219_v52 = vld [vmem:[%s7608_s23 + $0x30] sm:$0xff] }
  0x4b   :  { %296 = vmatpush1.msra.mxu0 %v229_v37  ;;  %391 = vmatpush1.msra.mxu1 %v231_v38  ;;  %v214_v53 = vld [vmem:[%s7608_s23 + $0x8] sm:$0xff]  ;;  %v216_v54 = vld [vmem:[%s7608_s23 + $0x18] sm:$0xff]  ;;  %v213_v55 = vld [vmem:[%s7608_s23] sm:$0xff] }
  0x4c   :  { %297 = vmatprep.subr.mxu0 %v226_v39  ;;  %392 = vmatprep.subr.mxu1 %v228_v40  ;;  %v215_v56 = vld [vmem:[%s7608_s23 + $0x10] sm:$0xff]  ;;  %v5326_v57 = vld [vmem:[%s7607_s24 + $0x48] sm:$0xff]  ;;  %v109_v60 = vld [vmem:[%s7607_s24] sm:$0xff]  ;;  %s7589_s23 = smov 104  }
  0x4d   :  { %176 = vrot.lane.b32.xlu0 %v144_v41, %s6334_s2  ;;  %194 = vrot.lane.b32.xlu1 %v162_v42, %s7583_s1  ;;  %v120_v61 = vrot.slane %v5326_v57, 4  ;;  %v110_v62 = vld [vmem:[%s7607_s24 + $0x8] sm:$0xff]  ;;  %v111_v63 = vld [vmem:[%s7607_s24 + $0x10] sm:$0xf]  ;;  %s7593_s2 = smov 80  }
  0x4e   :  { %298 = vmatpush1.msra.mxu0 %v225_v43  ;;  %393 = vmatpush1.msra.mxu1 %v227_v44  ;;  %v5327_v1 = vld [vmem:[%s7607_s24 + $0x50] sm:$0xff]  ;;  %v5328_v9 = vld [vmem:[%s7607_s24 + $0x58] sm:$0xf]  ;;  %v5361_v26 = vld [vmem:[%s7609_s3 + $0x20] sm:$0xff]  ;;  %s6343_s24 = smov 120  }
  0x4f   :  { %299 = vmatprep.subr.mxu0 %v222_v45  ;;  %394 = vmatprep.subr.mxu1 %v224_v46  ;;  %v128_v7 = vsel %vm119_vm0, %v111_v63, %v120_v61  ;;  %v121_v8 = vrot.slane %v5327_v1, 4  ;;  %v123_v15 = vrot.slane %v5328_v9, 4  ;;  %v5355_v39 = vld [vmem:[%s7609_s3 + $0x10] sm:$0xff]  ;;  %v5362_v46 = vld [vmem:[%s7609_s3 + $0x28] sm:$0xff] }
  0x50   :  { %300 = vmatpush1.msra.mxu0 %v221_v47  ;;  %395 = vmatpush1.msra.mxu1 %v223_v48  ;;  %v5369_v48 = vld [vmem:[%s7609_s3 + $0x40] sm:$0xff] }
  0x51   :  { %301 = vmatprep.subr.mxu0 %v218_v49  ;;  %396 = vmatprep.subr.mxu1 %v220_v50  ;;  %v122_v14 = vsel %vm119_vm0, %v120_v61, %v121_v8  ;;  %v124_v20 = vsel %vm119_vm0, %v121_v8, %v123_v15  ;;  %v5370_v49 = vld [vmem:[%s7609_s3 + $0x48] sm:$0xff]  ;;  %v5373_v8 = vld [vmem:[%s7609_s3 + $0x50] sm:$0xff]  ;;  %vm5308_vm0 = vcmask 123904  }
  0x52   :  { %302 = vmatpush1.msra.mxu0 %v217_v51  ;;  %397 = vmatpush1.msra.mxu1 %v219_v52  ;;  %v5377_v51 = vld [vmem:[%s7609_s3 + $0x60] sm:$0xff]  ;;  %v5378_v52 = vld [vmem:[%s7609_s3 + $0x68] sm:$0xff] }
  0x53   :  { %303 = vmatprep.subr.mxu0 %v214_v53  ;;  %398 = vmatprep.subr.mxu1 %v216_v54 }
  0x54   :  { %304 = vmatpush1.msra.mxu0 %v213_v55  ;;  %399 = vmatpush1.msra.mxu1 %v215_v56 }
  0xaf   :  { %v169_v58 = vpop.permute.xlu0 %168  ;;  %v171_v59 = vpop.permute.xlu1 %170 }
  0xb0   :  { %v202_v2 = vsel %vm201_vm1, %v109_v60, %v169_v58  ;;  %v203_v6 = vsel %vm201_vm1, %v110_v62, %v171_v59  ;;  %v5356_v59 = vld [vmem:[%s7609_s3 + $0x18] sm:$0xff]  ;;  %v463_v60 = vld [vmem:[%s7609_s3] sm:$0xff] }
  0xb3   :  { %v187_v3 = vpop.permute.xlu0 %186  ;;  %v189_v4 = vpop.permute.xlu1 %188 }
  0xb4   :  { %v208_v5 = vsel %vm207_vm2, %v202_v2, %v187_v3  ;;  %v209_v12 = vsel %vm207_vm2, %v203_v6, %v189_v4  ;;  %v464_v2 = vld [vmem:[%s7609_s3 + $0x8] sm:$0xff]  ;;  %v5365_v3 = vld [vmem:[%s7609_s3 + $0x30] sm:$0xff] }
  0xb5   :  { %5343 = vmatmul.mubr.msk.f32.vlgmr.msra.gmra.mxu0 %vm245_vm3, %v208_v5  ;;  %5350 = vmatmul.mubr.msk.f32.vlgmr.msra.gmra.mxu1 %vm245_vm3, %v208_v5 }
  0xb6   :  { %343 = vmatprep.mubr.f32.mxu0 %v6333_v0  ;;  %438 = vmatprep.mubr.f32.mxu1 %v6333_v0 }
  0xb7   :  { %v173_v10 = vpop.permute.xlu0 %172  ;;  %v191_v11 = vpop.permute.xlu1 %190 }
  0xb8   :  { %v204_v13 = vsel %vm201_vm1, %v128_v7, %v173_v10  ;;  %v5366_v7 = vld [vmem:[%s7609_s3 + $0x38] sm:$0xff] }
  0xb9   :  { %5344 = vmatmul.mubr.msk.f32.gmra.mxu0 %vm245_vm3, %v209_v12  ;;  %5351 = vmatmul.mubr.msk.f32.gmra.mxu1 %vm245_vm3, %v209_v12  ;;  %v210_v16 = vsel %vm207_vm2, %v204_v13, %v191_v11  ;;  %v5374_v12 = vld [vmem:[%s7609_s3 + $0x58] sm:$0xff]  ;;  %v5381_v13 = vld [vmem:[%s7609_s3 + $0x70] sm:$0xff] }
  0xba   :  { %349 = vmatprep.mubr.f32.mxu0 %v6333_v0  ;;  %444 = vmatprep.mubr.f32.mxu1 %v6333_v0 }
  0xbb   :  { %v175_v17 = vpop.permute.xlu0 %174  ;;  %v193_v18 = vpop.permute.xlu1 %192 }
  0xbc   :  { %v205_v19 = vsel %vm201_vm1, %v122_v14, %v175_v17 }
  0xbd   :  { %5345 = vmatmul.mubr.msk.f32.gmra.mxu0 %vm245_vm3, %v210_v16  ;;  %5352 = vmatmul.mubr.msk.f32.gmra.mxu1 %vm245_vm3, %v210_v16  ;;  %v211_v21 = vsel %vm207_vm2, %v205_v19, %v193_v18  ;;  %v5382_v18 = vld [vmem:[%s7609_s3 + $0x78] sm:$0xff]  ;;  %v1226_v19 = vld [vmem:[%s7610_s27] sm:$0xff]  ;;  %s6338_s3 = smov 32  }
  0xbe   :  { %355 = vmatprep.mubr.f32.mxu0 %v6333_v0  ;;  %450 = vmatprep.mubr.f32.mxu1 %v6333_v0  ;;  %vm1228_vm4 = vcmp.gt.f32.partialorder %v1226_v19, 0.5  ;;  %v5386_v19 = vld [vmem:[#allocation7] ss:$0 sm:$0xff] }
  0xbf   :  { %v177_v22 = vpop.permute.xlu0 %176  ;;  %v195_v23 = vpop.permute.xlu1 %194 }
  0xc0   :  { %v206_v24 = vsel %vm201_vm1, %v124_v20, %v177_v22  ;;  %v6337_v20 = vmov 0   ;;  %v1227_v22 = vld [vmem:[%s7610_s27 + $0x8] sm:$0xff]  ;;  %s7587_s27 = smov 72  }
  0xc1   :  { %5346 = vmatmul.mubr.msk.f32.gmra.mxu0 %vm245_vm3, %v211_v21  ;;  %5353 = vmatmul.mubr.msk.f32.gmra.mxu1 %vm245_vm3, %v211_v21  ;;  %v212_v25 = vsel %vm207_vm2, %v206_v24, %v195_v23  ;;  %v1230_v21 = vsel %vm1228_vm4, 1, %v6337_v20  ;;  %vm1229_vm5 = vcmp.gt.f32.partialorder %v1227_v22, 0.5 }
  0xc2   :  { %361 = vmatprep.mubr.f32.mxu0 %v6333_v0  ;;  %456 = vmatprep.mubr.f32.mxu1 %v6333_v0  ;;  %v1231_v23 = vsel %vm1229_vm5, 1, %v6337_v20 }
  0xc3   :  { %6138 = vset.pattern.permute.xlu0 %v6337_v20  ;;  %6139 = vset.pattern.permute.xlu1 %v6337_v20  ;;  %v5385_v20 = vld [vmem:[#allocation5] ss:$0 sm:$0xff] }
  0xc5   :  { %5347 = vmatmul.mubr.msk.f32.gmra.mxu0 %vm245_vm3, %v212_v25  ;;  %5354 = vmatmul.mubr.msk.f32.gmra.mxu1 %vm245_vm3, %v212_v25 }
  0xc6   :  { %5739 = vmatprep.mubr.msk.f32.mxu0 %vm207_vm2, %v5361_v26  ;;  %5713 = vmatprep.mubr.msk.f32.mxu1 %vm207_vm2, %v5355_v39 }
 0x175   :  { %v6684_v27 = vpop.f32.mrf.mxu0  ;;  %v6686_v28 = vpop.f32.mrf.mxu1 }
 0x177   :  { %v341_v29 = vpop.f32.mrf.mxu0  ;;  %v6688_v30 = vpop.f32.mrf.mxu1 }
 0x179   :  { %v6690_v31 = vpop.f32.mrf.mxu0  ;;  %v440_v32 = vpop.f32.mrf.mxu1 }
 0x17b   :  { %v347_v33 = vpop.f32.mrf.mxu0  ;;  %v6694_v35 = vpop.f32.mrf.mxu1 }
 0x17d   :  { %v6692_v34 = vpop.f32.mrf.mxu0  ;;  %v446_v38 = vpop.f32.mrf.mxu1 }
 0x17f   :  { %v353_v36 = vpop.f32.mrf.mxu0  ;;  %v448_v42 = vpop.f32.mrf.mxu1 }
 0x181   :  { %v6696_v37 = vpop.f32.mrf.mxu0  ;;  %v452_v44 = vpop.f32.mrf.mxu1 }
 0x182   :  { %479 = vrot.lane.b32.xlu1 %v6696_v37, %s6336_s29 }
 0x183   :  { %v359_v40 = vpop.f32.mrf.mxu0  ;;  %v454_v45 = vpop.f32.mrf.mxu1 }
 0x185   :  { %v6704_v41 = vpop.f32.mrf.mxu0  ;;  %v458_v47 = vpop.f32.mrf.mxu1 }
 0x186   :  { %475 = vrot.lane.b32.xlu1 %v6690_v31, %s6336_s29  ;;  %481 = vrot.lane.b32.xlu0 %v6704_v41, %s6336_s29 }
 0x187   :  { %v365_v43 = vpop.f32.mrf.mxu0  ;;  %v460_v50 = vpop.f32.mrf.mxu1 }
 0x188   :  { %5729 = vmatprep.subr.mxu0 %v365_v43 }
 0x189   :  { %5730 = vmatpush3.msra.mxu0 %v365_v43 }
 0x18a   :  { %477 = vrot.lane.b32.xlu0 %v6692_v34, %s6336_s29  ;;  %752 = vrot.lane.b32.xlu1 %v365_v43, %s6336_s29 }
 0x18b   :  { %5731 = vmatprep.subr.mxu0 %v359_v40 }
 0x18c   :  { %5732 = vmatpush3.msra.mxu0 %v359_v40 }
 0x18d   :  { %5733 = vmatprep.subr.mxu0 %v353_v36 }
 0x18e   :  { %5734 = vmatpush3.msra.mxu0 %v353_v36  ;;  %473 = vrot.lane.b32.xlu0 %v6684_v27, %s6336_s29 }
 0x18f   :  { %748 = vrot.lane.b32.xlu1 %v353_v36, %s6336_s29  ;;  %5735 = vmatprep.subr.mxu0 %v347_v33 }
 0x190   :  { %5736 = vmatpush3.msra.mxu0 %v347_v33 }
 0x191   :  { %5737 = vmatprep.subr.mxu0 %v341_v29 }
 0x192   :  { %5738 = vmatpush3.msra.mxu0 %v341_v29  ;;  %750 = vrot.lane.b32.xlu0 %v359_v40, %s6336_s29 }
 0x193   :  { %744 = vrot.lane.b32.xlu1 %v341_v29, %s6336_s29  ;;  %5755 = vmatprep.subr.mxu0 %v458_v47 }
 0x194   :  { %5740 = vmatmul.mubr.msk.f32.vlgmr.msra.gmra.mxu0 %vm207_vm2, %v5362_v46 }
 0x195   :  { %5756 = vmatpush3.msra.mxu0 %v458_v47  ;;  %5765 = vmatprep.mubr.msk.f32.mxu0 %vm207_vm2, %v5369_v48 }
 0x196   :  { %5757 = vmatprep.subr.mxu0 %v452_v44  ;;  %746 = vrot.lane.b32.xlu0 %v347_v33, %s6336_s29 }
 0x197   :  { %5758 = vmatpush3.msra.mxu0 %v452_v44  ;;  %942 = vrot.lane.b32.xlu1 %v452_v44, %s6336_s29 }
 0x198   :  { %5759 = vmatprep.subr.mxu0 %v446_v38 }
 0x199   :  { %5760 = vmatpush3.msra.mxu0 %v446_v38 }
 0x19a   :  { %5761 = vmatprep.subr.mxu0 %v440_v32  ;;  %944 = vrot.lane.b32.xlu0 %v458_v47, %s6336_s29 }
 0x19b   :  { %5762 = vmatpush3.msra.mxu0 %v440_v32  ;;  %938 = vrot.lane.b32.xlu1 %v440_v32, %s6336_s29 }
 0x19c   :  { %5763 = vmatprep.subr.mxu0 %v6686_v28 }
 0x19d   :  { %5764 = vmatpush3.msra.mxu0 %v6686_v28 }
 0x19e   :  { %5781 = vmatprep.subr.mxu0 %v460_v50  ;;  %5766 = vmatmul.mubr.msk.f32.vlgmr.msra.gmra.mxu0 %vm207_vm2, %v5370_v49 }
 0x19f   :  { %5782 = vmatpush3.msra.mxu0 %v460_v50  ;;  %940 = vrot.lane.b32.xlu0 %v446_v38, %s6336_s29 }
 0x1a0   :  { %1136 = vrot.lane.b32.xlu1 %v460_v50, %s6336_s29  ;;  %5783 = vmatprep.subr.mxu0 %v454_v45 }
 0x1a1   :  { %5784 = vmatpush3.msra.mxu0 %v454_v45  ;;  %5791 = vmatprep.mubr.msk.f32.mxu0 %vm207_vm2, %v5377_v51 }
 0x1a2   :  { %5785 = vmatprep.subr.mxu0 %v448_v42 }
 0x1a3   :  { %5786 = vmatpush3.msra.mxu0 %v448_v42  ;;  %936 = vrot.lane.b32.xlu0 %v6686_v28, %s6336_s29 }
 0x1a4   :  { %1132 = vrot.lane.b32.xlu1 %v448_v42, %s6336_s29  ;;  %5787 = vmatprep.subr.mxu0 %v6694_v35 }
 0x1a5   :  { %5788 = vmatpush3.msra.mxu0 %v6694_v35 }
 0x1a6   :  { %5789 = vmatprep.subr.mxu0 %v6688_v30 }
 0x1a7   :  { %5790 = vmatpush3.msra.mxu0 %v6688_v30  ;;  %1134 = vrot.lane.b32.xlu0 %v454_v45, %s6336_s29 }
 0x1a8   :  { %1128 = vrot.lane.b32.xlu1 %v6688_v30, %s6336_s29  ;;  %5792 = vmatmul.mubr.msk.f32.vlgmr.msra.gmra.mxu0 %vm207_vm2, %v5378_v52 }
 0x1ab   :  { %1130 = vrot.lane.b32.xlu0 %v6694_v35, %s6336_s29 }
 0x1ac   :  { %1236 = vperm.xlu1 %6139, %v1231_v23  }
 0x1af   :  { %1233 = vperm.xlu0 %6138, %v1230_v21  }
 0x1f4   :  { %v480_v53 = vpop.permute.xlu1 %479 }
 0x1f8   :  { %v476_v54 = vpop.permute.xlu1 %475  ;;  %v482_v55 = vpop.permute.xlu0 %481 }
 0x1f9   :  { %5703 = vmatprep.subr.mxu1 %v482_v55 }
 0x1fa   :  { %5704 = vmatpush3.msra.mxu1 %v482_v55  ;;  %v1250_v55 = vld [vmem:[#allocation2] sm:$0xff] }
 0x1fb   :  { %5705 = vmatprep.subr.mxu1 %v480_v53 }
 0x1fc   :  { %5706 = vmatpush3.msra.mxu1 %v480_v53  ;;  %v478_v56 = vpop.permute.xlu0 %477  ;;  %v753_v57 = vpop.permute.xlu1 %752 }
 0x1fd   :  { %5707 = vmatprep.subr.mxu1 %v478_v56 }
 0x1fe   :  { %5708 = vmatpush3.msra.mxu1 %v478_v56 }
 0x1ff   :  { %5709 = vmatprep.subr.mxu1 %v476_v54 }
 0x200   :  { %5710 = vmatpush3.msra.mxu1 %v476_v54  ;;  %v474_v58 = vpop.permute.xlu0 %473  ;;  %v1251_v54 = vld [vmem:[#allocation2 + $0x8] sm:$0xff] }
 0x201   :  { %5711 = vmatprep.subr.mxu1 %v474_v58  ;;  %v749_v61 = vpop.permute.xlu1 %748 }
 0x202   :  { %5712 = vmatpush3.msra.mxu1 %v474_v58 }
 0x203   :  { %5716 = vmatprep.subr.mxu1 %v6704_v41  ;;  %5714 = vmatmul.mubr.msk.f32.vlgmr.msra.gmra.mxu1 %vm207_vm2, %v5356_v59 }
 0x204   :  { %5717 = vmatpush3.msra.mxu1 %v6704_v41  ;;  %v751_v62 = vpop.permute.xlu0 %750  ;;  %5726 = vmatprep.mubr.msk.f32.mxu1 %vm207_vm2, %v463_v60 }
 0x205   :  { %5718 = vmatprep.subr.mxu1 %v6696_v37  ;;  %v745_v1 = vpop.permute.xlu1 %744 }
 0x206   :  { %5719 = vmatpush3.msra.mxu1 %v6696_v37 }
 0x207   :  { %5720 = vmatprep.subr.mxu1 %v6692_v34 }
 0x208   :  { %5721 = vmatpush3.msra.mxu1 %v6692_v34  ;;  %v747_v63 = vpop.permute.xlu0 %746 }
 0x209   :  { %5722 = vmatprep.subr.mxu1 %v6690_v31  ;;  %v943_v5 = vpop.permute.xlu1 %942 }
 0x20a   :  { %5723 = vmatpush3.msra.mxu1 %v6690_v31 }
 0x20b   :  { %5724 = vmatprep.subr.mxu1 %v6684_v27 }
 0x20c   :  { %5725 = vmatpush3.msra.mxu1 %v6684_v27  ;;  %v945_v4 = vpop.permute.xlu0 %944 }
 0x20d   :  { %5727 = vmatmul.mubr.msk.f32.vlgmr.msra.gmra.mxu1 %vm207_vm2, %v464_v2  ;;  %5742 = vmatprep.subr.mxu1 %v753_v57  ;;  %v939_v9 = vpop.permute.xlu1 %938 }
 0x20e   :  { %5743 = vmatpush3.msra.mxu1 %v753_v57  ;;  %5752 = vmatprep.mubr.msk.f32.mxu1 %vm207_vm2, %v5365_v3 }
 0x20f   :  { %5744 = vmatprep.subr.mxu1 %v751_v62 }
 0x210   :  { %5745 = vmatpush3.msra.mxu1 %v751_v62 }
 0x211   :  { %5746 = vmatprep.subr.mxu1 %v749_v61  ;;  %v941_v6 = vpop.permute.xlu0 %940 }
 0x212   :  { %5747 = vmatpush3.msra.mxu1 %v749_v61  ;;  %v1137_v11 = vpop.permute.xlu1 %1136 }
 0x213   :  { %5748 = vmatprep.subr.mxu1 %v747_v63 }
 0x214   :  { %5749 = vmatpush3.msra.mxu1 %v747_v63 }
 0x215   :  { %5750 = vmatprep.subr.mxu1 %v745_v1  ;;  %v937_v10 = vpop.permute.xlu0 %936 }
 0x216   :  { %5751 = vmatpush3.msra.mxu1 %v745_v1  ;;  %v1133_v15 = vpop.permute.xlu1 %1132 }
 0x217   :  { %5753 = vmatmul.mubr.msk.f32.vlgmr.msra.gmra.mxu1 %vm207_vm2, %v5366_v7  ;;  %5768 = vmatprep.subr.mxu1 %v945_v4 }
 0x218   :  { %5769 = vmatpush3.msra.mxu1 %v945_v4  ;;  %5778 = vmatprep.mubr.msk.f32.mxu1 %vm207_vm2, %v5373_v8 }
 0x219   :  { %5770 = vmatprep.subr.mxu1 %v943_v5  ;;  %v1135_v14 = vpop.permute.xlu0 %1134 }
 0x21a   :  { %5771 = vmatpush3.msra.mxu1 %v943_v5  ;;  %v1129_v17 = vpop.permute.xlu1 %1128 }
 0x21b   :  { %5772 = vmatprep.subr.mxu1 %v941_v6 }
 0x21c   :  { %5773 = vmatpush3.msra.mxu1 %v941_v6 }
 0x21d   :  { %5774 = vmatprep.subr.mxu1 %v939_v9  ;;  %v1131_v16 = vpop.permute.xlu0 %1130 }
 0x21e   :  { %5775 = vmatpush3.msra.mxu1 %v939_v9 }
 0x21f   :  { %5776 = vmatprep.subr.mxu1 %v937_v10 }
 0x220   :  { %5777 = vmatpush3.msra.mxu1 %v937_v10 }
 0x221   :  { %5779 = vmatmul.mubr.msk.f32.vlgmr.msra.gmra.mxu1 %vm207_vm2, %v5374_v12  ;;  %5794 = vmatprep.subr.mxu1 %v1137_v11 }
 0x222   :  { %5795 = vmatpush3.msra.mxu1 %v1137_v11  ;;  %5804 = vmatprep.mubr.msk.f32.mxu1 %vm207_vm2, %v5381_v13 }
 0x223   :  { %5796 = vmatprep.subr.mxu1 %v1135_v14 }
 0x224   :  { %5797 = vmatpush3.msra.mxu1 %v1135_v14 }
 0x225   :  { %5798 = vmatprep.subr.mxu1 %v1133_v15 }
 0x226   :  { %5799 = vmatpush3.msra.mxu1 %v1133_v15 }
 0x227   :  { %5800 = vmatprep.subr.mxu1 %v1131_v16  ;;  %v1237_v57 = vpop.permute.xlu1 %1236 }
 0x228   :  { %5801 = vmatpush3.msra.mxu1 %v1131_v16  ;;  %vm1239_vm6 = vcmp.eq.s32.totalorder %v1237_v57, 1  ;;  %v1396_v57 = vld [vmem:[%s7563_s9 + $0x8] sm:$0xff] }
 0x229   :  { %5802 = vmatprep.subr.mxu1 %v1129_v17 }
 0x22a   :  { %5803 = vmatpush3.msra.mxu1 %v1129_v17  ;;  %v1234_v56 = vpop.permute.xlu0 %1233 }
 0x22b   :  { %5805 = vmatmul.mubr.msk.f32.vlgmr.msra.gmra.mxu1 %vm207_vm2, %v5382_v18  ;;  %5818 = vmatprep.subr.mxu1 %v6333_v0  ;;  %vm1238_vm7 = vcmp.eq.s32.totalorder %v1234_v56, 1  ;;  %v1397_v56 = vld [vmem:[%s7563_s9 + $0x10] sm:$0xff] }
 0x22c   :  { %5820 = vmatprep.mubr.msk.f32.mxu1 %vm6340_vm9, %v6333_v0 }
 0x254   :  { %v5741_v28 = vpop.f32.mrf.mxu0 }
 0x256   :  { %v725_v32 = vpop.f32.mrf.mxu0 }
 0x25e   :  { %v5767_v35 = vpop.f32.mrf.mxu0 }
 0x260   :  { %v917_v40 = vpop.f32.mrf.mxu0 }
 0x268   :  { %v5793_v43 = vpop.f32.mrf.mxu0 }
 0x26a   :  { %v1109_v47 = vpop.f32.mrf.mxu0 }
 0x2c3   :  { %v5715_v24 = vpop.f32.mrf.mxu1 }
 0x2c5   :  { %v560_v25 = vpop.f32.mrf.mxu1 }
 0x2cd   :  { %v5728_v26 = vpop.f32.mrf.mxu1 }
 0x2ce   :  { %v647_v29 = vadd.f32 %v5728_v26, %v5715_v24 }
 0x2cf   :  { %v641_v27 = vpop.f32.mrf.mxu1 }
 0x2d0   :  { %v642_v31 = vadd.f32 %v641_v27, %v560_v25  ;;  %v735_v33 = vadd.f32 %v5741_v28, %v647_v29 }
 0x2d2   :  { %v734_v36 = vadd.f32 %v725_v32, %v642_v31 }
 0x2d7   :  { %v5754_v30 = vpop.f32.mrf.mxu1 }
 0x2d8   :  { %v841_v37 = vadd.f32 %v5754_v30, %v735_v33 }
 0x2d9   :  { %v831_v34 = vpop.f32.mrf.mxu1 }
 0x2da   :  { %v840_v39 = vadd.f32 %v831_v34, %v734_v36  ;;  %v927_v41 = vadd.f32 %v5767_v35, %v841_v37 }
 0x2dc   :  { %v926_v44 = vadd.f32 %v917_v40, %v840_v39 }
 0x2e1   :  { %v5780_v38 = vpop.f32.mrf.mxu1 }
 0x2e2   :  { %v1033_v45 = vadd.f32 %v5780_v38, %v927_v41 }
 0x2e3   :  { %v1023_v42 = vpop.f32.mrf.mxu1 }
 0x2e4   :  { %v1032_v46 = vadd.f32 %v1023_v42, %v926_v44  ;;  %v1119_v48 = vadd.f32 %v5793_v43, %v1033_v45 }
 0x2e6   :  { %v1118_v50 = vadd.f32 %v1109_v47, %v1032_v46 }
 0x2eb   :  { %v5806_v49 = vpop.f32.mrf.mxu1 }
 0x2ec   :  { %v1225_v51 = vadd.f32 %v5806_v49, %v1119_v48 }
 0x2ed   :  { %v1215_v52 = vpop.f32.mrf.mxu1 }
 0x2ee   :  { %v1224_v53 = vadd.f32 %v1215_v52, %v1118_v50  ;;  %1244 = vrot.lane.b32.xlu0 %v1225_v51, %s6338_s3 }
 0x2f0   :  { %1242 = vrot.lane.b32.xlu1 %v1224_v53, %s6338_s3 }
 0x2f2   :  { %1256 = vrot.lane.b32.xlu0 %v1251_v54, %s6338_s3  ;;  %v5387_v54 = vld [vmem:[%s7561_s7] ss:$0 sm:$0xff] }
 0x2f4   :  { %1254 = vrot.lane.b32.xlu1 %v1250_v55, %s6338_s3  ;;  %v1398_v55 = vld [vmem:[%s7563_s9 + $0x18] sm:$0xff] }
 0x2f5   :  { %5807 = vmatprep.subr.mxu0 %v1398_v55 }
 0x2f6   :  { %5808 = vmatpush3.msra.mxu0 %v1398_v55 }
 0x2f7   :  { %5809 = vmatprep.subr.mxu0 %v1397_v56 }
 0x2f8   :  { %5810 = vmatpush3.msra.mxu0 %v1397_v56 }
 0x2f9   :  { %5811 = vmatprep.subr.mxu0 %v1396_v57 }
 0x2fa   :  { %5812 = vmatpush3.msra.mxu0 %v1396_v57 }
 0x360   :  { %v1245_v58 = vpop.permute.xlu0 %1244 }
 0x361   :  { %v1249_v60 = vsel %vm1239_vm6, %v1225_v51, %v1245_v58 }
 0x362   :  { %v1243_v59 = vpop.permute.xlu1 %1242 }
 0x363   :  { %v1248_v63 = vsel %vm1238_vm7, %v1224_v53, %v1243_v59  ;;  %v5388_v53 = vld [vmem:[%s7562_s8] ss:$0 sm:$0xff] }
 0x364   :  { %v1257_v61 = vpop.permute.xlu0 %1256 }
 0x365   :  { %v1261_v62 = vadd.f32 %v1257_v61, %v1249_v60 }
 0x366   :  { %v1255_v1 = vpop.permute.xlu1 %1254 }
 0x367   :  { %v1260_v2 = vadd.f32 %v1255_v1, %v1248_v63  ;;  %1268 = vrot.lane.b32.xlu0 %v1261_v62, %s6339_s28  ;;  %v1395_v1 = vld [vmem:[%s7563_s9] sm:$0xff] }
 0x368   :  { %5813 = vmatprep.subr.mxu0 %v1395_v1 }
 0x369   :  { %1266 = vrot.lane.b32.xlu1 %v1260_v2, %s6339_s28  ;;  %5814 = vmatpush3.msra.mxu0 %v1395_v1 }
 0x36a   :  { %5828 = vmatprep.subr.mxu0 %v6333_v0 }
 0x3d9   :  { %v1269_v3 = vpop.permute.xlu0 %1268 }
 0x3da   :  { %v1276_v4 = vsel %vm1272_vm8, %v1269_v3, 0.0 }
 0x3db   :  { %1277 = vadd.xlane.f32.xlu0 %v1276_v4  ;;  %v1267_v5 = vpop.permute.xlu1 %1266 }
 0x3dc   :  { %v1273_v6 = vsel %vm1272_vm8, %v1267_v5, 0.0 }
 0x3dd   :  { %1274 = vadd.xlane.f32.xlu1 %v1273_v6 }
 0x464   :  { %v1278_v7 = vpop.xlane.xlu0 %1277 }
 0x465   :  { %v1281_v8 = vmul.f32 0.03125, %v1278_v7 }
 0x466   :  { %v1275_v9 = vpop.xlane.xlu1 %1274 }
 0x467   :  { %v1283_v10 = vsub.f32 %v1261_v62, %v1281_v8  ;;  %v1280_v11 = vmul.f32 0.03125, %v1275_v9 }
 0x469   :  { %v1282_v12 = vsub.f32 %v1260_v2, %v1280_v11  ;;  %v1285_v13 = vmul.f32 %v1283_v10, %v1283_v10 }
 0x46b   :  { %1290 = vrot.lane.b32.xlu1 %v1285_v13, %s6339_s28  ;;  %v1284_v14 = vmul.f32 %v1282_v12, %v1282_v12 }
 0x46d   :  { %1288 = vrot.lane.b32.xlu0 %v1284_v14, %s6339_s28 }
 0x4dd   :  { %v1291_v15 = vpop.permute.xlu1 %1290 }
 0x4de   :  { %v1297_v16 = vsel %vm1272_vm8, %v1291_v15, 0.0  ;;  %v5389_v15 = vld [vmem:[%s7564_s10] ss:$0 sm:$0xff] }
 0x4df   :  { %v1289_v17 = vpop.permute.xlu0 %1288  ;;  %1298 = vadd.xlane.f32.xlu0 %v1297_v16 }
 0x4e0   :  { %v1294_v18 = vsel %vm1272_vm8, %v1289_v17, 0.0 }
 0x4e1   :  { %1295 = vadd.xlane.f32.xlu1 %v1294_v18 }
 0x4f2   :  { %1323 = vrot.lane.b32.xlu1 %v5386_v19, %s6338_s3 }
 0x4f5   :  { %1313 = vrot.lane.b32.xlu0 %v5385_v20, %s6338_s3 }
 0x568   :  { %v1299_v21 = vpop.xlane.xlu0 %1298 }
 0x569   :  { %v1301_v22 = vmul.f32 0.03125, %v1299_v21 }
 0x56a   :  { %v1296_v23 = vpop.xlane.xlu1 %1295 }
 0x56b   :  { %v1303_v24 = vadd.f32 1e-05, %v1301_v22  ;;  %v1300_v25 = vmul.f32 0.03125, %v1296_v23 }
 0x56c   :  { %v1314_v28 = vpop.permute.xlu0 %1313 }
 0x56d   :  { %6140 = vrsqrt.f32 %v1303_v24  ;;  %v1302_v26 = vadd.f32 1e-05, %v1300_v25 }
 0x56e   :  { %v1324_v31 = vpop.permute.xlu1 %1323 }
 0x56f   :  { %6142 = vrsqrt.f32 %v1302_v26 }
 0x57a   :  { %v6141_v27 = vpop.eup %6140 }
 0x57b   :  { %v1307_v29 = vmul.f32 %v6141_v27, %v1283_v10 }
 0x57c   :  { %v6143_v30 = vpop.eup %6142 }
 0x57d   :  { %v1306_v32 = vmul.f32 %v6143_v30, %v1282_v12  ;;  %v1317_v33 = vmul.f32 %v1314_v28, %v1307_v29 }
 0x57f   :  { %v1316_v34 = vmul.f32 %v1314_v28, %v1306_v32  ;;  %v6825_v35 = vadd.f32 %v1324_v31, %v1317_v33 }
 0x581   :  { %v6827_v36 = vadd.f32 %v1324_v31, %v1316_v34  ;;  %1337 = vrot.lane.b32.xlu0 %v6825_v35, %s6339_s28  ;;  %v1328_v34 = vlaneseq }
 0x583   :  { %1335 = vrot.lane.b32.xlu1 %v6827_v36, %s6339_s28 }
 0x5f3   :  { %v1338_v37 = vpop.permute.xlu0 %1337 }
 0x5f4   :  { %v1344_v38 = vsel %vm1272_vm8, %v1338_v37, 0.0  ;;  %v6947_v37 = vand.u32 127, %v1328_v34 }
 0x5f5   :  { %1345 = vadd.xlane.f32.xlu0 %v1344_v38  ;;  %v1336_v39 = vpop.permute.xlu1 %1335 }
 0x5f6   :  { %v1341_v40 = vsel %vm1272_vm8, %v1336_v39, 0.0  ;;  %vm1330_vm11 = vcmp.lt.s32.totalorder %v6947_v37, 5 }
 0x5f7   :  { %1342 = vadd.xlane.f32.xlu1 %v1341_v40 }
 0x67e   :  { %v1346_v41 = vpop.xlane.xlu0 %1345 }
 0x67f   :  { %v1348_v42 = vmul.f32 0.03125, %v1346_v41 }
 0x680   :  { %v1343_v43 = vpop.xlane.xlu1 %1342 }
 0x681   :  { %v1350_v44 = vsub.f32 %v6825_v35, %v1348_v42  ;;  %v1347_v45 = vmul.f32 0.03125, %v1343_v43 }
 0x683   :  { %v1349_v46 = vsub.f32 %v6827_v36, %v1347_v45  ;;  %v1352_v47 = vmul.f32 %v1350_v44, %v1350_v44 }
 0x685   :  { %1357 = vrot.lane.b32.xlu1 %v1352_v47, %s6339_s28  ;;  %v1351_v48 = vmul.f32 %v1349_v46, %v1349_v46 }
 0x687   :  { %1355 = vrot.lane.b32.xlu0 %v1351_v48, %s6339_s28 }
 0x6f7   :  { %v1358_v49 = vpop.permute.xlu1 %1357 }
 0x6f8   :  { %v1364_v50 = vsel %vm1272_vm8, %v1358_v49, 0.0 }
 0x6f9   :  { %v1356_v51 = vpop.permute.xlu0 %1355  ;;  %1365 = vadd.xlane.f32.xlu0 %v1364_v50 }
 0x6fa   :  { %v1361_v52 = vsel %vm1272_vm8, %v1356_v51, 0.0 }
 0x6fb   :  { %1362 = vadd.xlane.f32.xlu1 %v1361_v52 }
 0x70c   :  { %1390 = vrot.lane.b32.xlu1 %v5388_v53, %s6338_s3 }
 0x70f   :  { %1380 = vrot.lane.b32.xlu0 %v5387_v54, %s6338_s3 }
 0x782   :  { %v1366_v58 = vpop.xlane.xlu0 %1365 }
 0x783   :  { %v1368_v59 = vmul.f32 0.03125, %v1366_v58 }
 0x784   :  { %v1363_v60 = vpop.xlane.xlu1 %1362 }
 0x785   :  { %v1370_v61 = vadd.f32 1e-05, %v1368_v59  ;;  %v1367_v62 = vmul.f32 0.03125, %v1363_v60 }
 0x786   :  { %v1381_v3 = vpop.permute.xlu0 %1380 }
 0x787   :  { %6144 = vrsqrt.f32 %v1370_v61  ;;  %v1369_v63 = vadd.f32 1e-05, %v1367_v62 }
 0x788   :  { %v1391_v6 = vpop.permute.xlu1 %1390 }
 0x789   :  { %6146 = vrsqrt.f32 %v1369_v63 }
 0x794   :  { %v6145_v2 = vpop.eup %6144 }
 0x795   :  { %v1374_v4 = vmul.f32 %v6145_v2, %v1350_v44 }
 0x796   :  { %v6147_v5 = vpop.eup %6146 }
 0x797   :  { %v1373_v7 = vmul.f32 %v6147_v5, %v1349_v46  ;;  %v1384_v8 = vmul.f32 %v1381_v3, %v1374_v4 }
 0x799   :  { %v1383_v9 = vmul.f32 %v1381_v3, %v1373_v7  ;;  %v1394_v10 = vadd.f32 %v1391_v6, %v1384_v8 }
 0x79b   :  { %v1393_v11 = vadd.f32 %v1391_v6, %v1383_v9  ;;  %1410 = vrot.lane.b32.xlu0 %v1394_v10, %s6339_s28 }
 0x79d   :  { %1408 = vrot.lane.b32.xlu1 %v1393_v11, %s6339_s28 }
 0x80d   :  { %v1411_v13 = vpop.permute.xlu0 %1410 }
 0x80f   :  { %v1409_v12 = vpop.permute.xlu1 %1408 }
 0x810   :  { %5815 = vmatprep.mubr.msk.f32.mxu0 %vm1272_vm8, %v1409_v12 }
 0x811   :  { %5816 = vmatmul.mubr.msk.f32.vlgmr.msra.gmra.mxu0 %vm1272_vm8, %v1411_v13 }
 0x812   :  { %5830 = vmatprep.mubr.msk.f32.mxu0 %vm6340_vm9, %v6333_v0 }
 0x8d1   :  { %v5817_v14 = vpop.f32.mrf.mxu0 }
 0x8d2   :  { %v6887_v18 = vadd.f32 %v5817_v14, %v5389_v15 }
 0x8d3   :  { %v1482_v16 = vpop.f32.mrf.mxu0 }
 0x8d4   :  { %v6873_v17 = vadd.f32 %v5389_v15, %v1482_v16 }
 0x8d6   :  { %1660 = vrot.lane.b32.xlu0 %v6873_v17, %s7595_s26  ;;  %1492 = vrot.lane.b32.xlu1 %v6873_v17, %s6339_s28 }
 0x8da   :  { %1827 = vrot.lane.b32.xlu0 %v6873_v17, %s7593_s2  ;;  %1658 = vrot.lane.b32.xlu1 %v6873_v17, %s6343_s24 }
 0x8de   :  { %1994 = vrot.lane.b32.xlu0 %v6873_v17, %s7587_s27  ;;  %1825 = vrot.lane.b32.xlu1 %v6873_v17, %s7591_s4 }
 0x8e2   :  { %2177 = vrot.lane.b32.xlu0 %v6887_v18, %s6339_s28  ;;  %1992 = vrot.lane.b32.xlu1 %v6873_v17, %s7589_s23 }
 0x8e6   :  { %2342 = vrot.lane.b32.xlu0 %v6887_v18, %s6343_s24  ;;  %2344 = vrot.lane.b32.xlu1 %v6887_v18, %s7595_s26  ;;  %s6350_s26 = smov 24  }
 0x8ea   :  { %2509 = vrot.lane.b32.xlu0 %v6887_v18, %s7591_s4  ;;  %2511 = vrot.lane.b32.xlu1 %v6887_v18, %s7593_s2  ;;  %s7616_s2 = smov 56  }
 0x8ee   :  { %2676 = vrot.lane.b32.xlu0 %v6887_v18, %s7589_s23  ;;  %2678 = vrot.lane.b32.xlu1 %v6887_v18, %s7587_s27  ;;  %s7618_s27 = smov 48  }
 0x8f2   :  { %1582 = vrot.lane.b32.xlu1 %v6873_v17, %s6336_s29 }
 0x948   :  { %v1661_v19 = vpop.permute.xlu0 %1660  ;;  %v1493_v20 = vpop.permute.xlu1 %1492 }
 0x949   :  { %5819 = vmatpush3.xpose.msk.msra.mxu1 %vm1494_vm10, %v1493_v20  ;;  %5829 = vmatpush3.xpose.msk.msra.mxu0 %vm1494_vm10, %v1661_v19 }
 0x94a   :  { %5838 = vmatprep.subr.mxu0 %v6333_v0  ;;  %5823 = vmatprep.subr.mxu1 %v6333_v0 }
 0x94c   :  { %v1828_v21 = vpop.permute.xlu0 %1827  ;;  %5821 = vmatmul.mubr.msk.f32.vlgmr.msra.gmra.mxu1 %vm1494_vm10, %v6873_v17  ;;  %v1659_v22 = vpop.permute.xlu1 %1658 }
 0x94d   :  { %5831 = vmatmul.mubr.msk.f32.vlgmr.msra.gmra.mxu0 %vm1494_vm10, %v1659_v22  ;;  %5825 = vmatprep.mubr.msk.f32.mxu1 %vm6340_vm9, %v6333_v0 }
 0x94e   :  { %5839 = vmatpush3.xpose.msk.msra.mxu0 %vm1494_vm10, %v1828_v21  ;;  %5840 = vmatprep.mubr.msk.f32.mxu0 %vm6340_vm9, %v6333_v0 }
 0x94f   :  { %5848 = vmatprep.subr.mxu0 %v6333_v0 }
 0x950   :  { %v1995_v23 = vpop.permute.xlu0 %1994  ;;  %v1826_v24 = vpop.permute.xlu1 %1825 }
 0x951   :  { %5841 = vmatmul.mubr.msk.f32.vlgmr.msra.gmra.mxu0 %vm1494_vm10, %v1826_v24 }
 0x952   :  { %5849 = vmatpush3.xpose.msk.msra.mxu0 %vm1494_vm10, %v1995_v23  ;;  %5850 = vmatprep.mubr.msk.f32.mxu0 %vm6340_vm9, %v6333_v0 }
 0x953   :  { %5858 = vmatprep.subr.mxu0 %v6333_v0 }
 0x954   :  { %v2178_v25 = vpop.permute.xlu0 %2177  ;;  %v1993_v26 = vpop.permute.xlu1 %1992 }
 0x955   :  { %5851 = vmatmul.mubr.msk.f32.vlgmr.msra.gmra.mxu0 %vm1494_vm10, %v1993_v26 }
 0x956   :  { %5859 = vmatpush3.xpose.msk.msra.mxu0 %vm1494_vm10, %v2178_v25  ;;  %5860 = vmatprep.mubr.msk.f32.mxu0 %vm6340_vm9, %v6333_v0 }
 0x957   :  { %5868 = vmatprep.subr.mxu0 %v6333_v0 }
 0x958   :  { %v2343_v27 = vpop.permute.xlu0 %2342  ;;  %v2345_v28 = vpop.permute.xlu1 %2344 }
 0x959   :  { %5861 = vmatmul.mubr.msk.f32.vlgmr.msra.gmra.mxu0 %vm1494_vm10, %v6887_v18 }
 0x95a   :  { %5869 = vmatpush3.xpose.msk.msra.mxu0 %vm1494_vm10, %v2345_v28  ;;  %5870 = vmatprep.mubr.msk.f32.mxu0 %vm6340_vm9, %v6333_v0 }
 0x95b   :  { %5878 = vmatprep.subr.mxu0 %v6333_v0 }
 0x95c   :  { %v2512_v29 = vpop.permute.xlu1 %2511  ;;  %v2510_v30 = vpop.permute.xlu0 %2509 }
 0x95d   :  { %5871 = vmatmul.mubr.msk.f32.vlgmr.msra.gmra.mxu0 %vm1494_vm10, %v2343_v27 }
 0x95e   :  { %5879 = vmatpush3.xpose.msk.msra.mxu0 %vm1494_vm10, %v2512_v29  ;;  %5880 = vmatprep.mubr.msk.f32.mxu0 %vm6340_vm9, %v6333_v0 }
 0x95f   :  { %5888 = vmatprep.subr.mxu0 %v6333_v0 }
 0x960   :  { %v2679_v31 = vpop.permute.xlu1 %2678  ;;  %v2677_v32 = vpop.permute.xlu0 %2676 }
 0x961   :  { %5881 = vmatmul.mubr.msk.f32.vlgmr.msra.gmra.mxu0 %vm1494_vm10, %v2510_v30 }
 0x962   :  { %5889 = vmatpush3.xpose.msk.msra.mxu0 %vm1494_vm10, %v2679_v31  ;;  %5890 = vmatprep.mubr.msk.f32.mxu0 %vm6340_vm9, %v6333_v0 }
 0x964   :  { %v1583_v33 = vpop.permute.xlu1 %1582 }
 0x965   :  { %5824 = vmatpush3.msra.mxu1 %v1583_v33  ;;  %5891 = vmatmul.mubr.msk.f32.vlgmr.msra.gmra.mxu0 %vm1494_vm10, %v2677_v32 }
 0x966   :  { %5833 = vmatprep.subr.mxu1 %v6333_v0 }
 0xa0c   :  { %v1565_v38 = vpop.f32.mrf.mxu1 }
 0xa0d   :  { %v1569_v39 = vmul.f32 0.35355338, %v1565_v38  ;;  %v1732_v40 = vpop.f32.mrf.mxu0 }
 0xa0e   :  { %v1736_v41 = vmul.f32 0.35355338, %v1732_v40  ;;  %v5822_v42 = vpop.f32.mrf.mxu1 }
 0xa0f   :  { %v5832_v43 = vpop.f32.mrf.mxu0  ;;  %v1570_v44 = vsel %vm1330_vm11, %v1569_v39, -1e+30 }
 0xa10   :  { %v1571_v45 = vsel %vm1494_vm10, %v1570_v44, -inf  ;;  %v1737_v46 = vsel %vm1330_vm11, %v1736_v41, -1e+30 }
 0xa11   :  { %1572 = vmax.xlane.f32.xlu1 %v1571_v45  ;;  %v1899_v47 = vpop.f32.mrf.mxu0  ;;  %v1738_v48 = vsel %vm1494_vm10, %v1737_v46, -inf }
 0xa12   :  { %v1903_v49 = vmul.f32 0.35355338, %v1899_v47  ;;  %1739 = vmax.xlane.f32.xlu0 %v1738_v48 }
 0xa13   :  { %v5842_v50 = vpop.f32.mrf.mxu0 }
 0xa14   :  { %v1904_v51 = vsel %vm1330_vm11, %v1903_v49, -1e+30 }
 0xa15   :  { %v2066_v52 = vpop.f32.mrf.mxu0  ;;  %v1905_v53 = vsel %vm1494_vm10, %v1904_v51, -inf }
 0xa16   :  { %v2070_v54 = vmul.f32 0.35355338, %v2066_v52  ;;  %1906 = vmax.xlane.f32.xlu0 %v1905_v53 }
 0xa17   :  { %v5852_v55 = vpop.f32.mrf.mxu0 }
 0xa18   :  { %v2071_v56 = vsel %vm1330_vm11, %v2070_v54, -1e+30 }
 0xa19   :  { %v2249_v57 = vpop.f32.mrf.mxu0  ;;  %v2072_v58 = vsel %vm1494_vm10, %v2071_v56, -inf }
 0xa1a   :  { %v2253_v59 = vmul.f32 0.35355338, %v2249_v57  ;;  %2073 = vmax.xlane.f32.xlu1 %v2072_v58 }
 0xa1b   :  { %v5862_v60 = vpop.f32.mrf.mxu0 }
 0xa1c   :  { %v2254_v61 = vsel %vm1330_vm11, %v2253_v59, -1e+30 }
 0xa1d   :  { %v2416_v62 = vpop.f32.mrf.mxu0  ;;  %v2255_v63 = vsel %vm1494_vm10, %v2254_v61, -inf }
 0xa1e   :  { %v2420_v1 = vmul.f32 0.35355338, %v2416_v62  ;;  %2256 = vmax.xlane.f32.xlu0 %v2255_v63 }
 0xa1f   :  { %v5872_v2 = vpop.f32.mrf.mxu0 }
 0xa20   :  { %v2421_v3 = vsel %vm1330_vm11, %v2420_v1, -1e+30 }
 0xa21   :  { %v2583_v4 = vpop.f32.mrf.mxu0  ;;  %v2422_v5 = vsel %vm1494_vm10, %v2421_v3, -inf }
 0xa22   :  { %v2587_v6 = vmul.f32 0.35355338, %v2583_v4  ;;  %2423 = vmax.xlane.f32.xlu1 %v2422_v5 }
 0xa23   :  { %v5882_v7 = vpop.f32.mrf.mxu0 }
 0xa24   :  { %v2588_v8 = vsel %vm1330_vm11, %v2587_v6, -1e+30 }
 0xa25   :  { %v2750_v9 = vpop.f32.mrf.mxu0  ;;  %v2589_v10 = vsel %vm1494_vm10, %v2588_v8, -inf }
 0xa26   :  { %2590 = vmax.xlane.f32.xlu0 %v2589_v10  ;;  %v2754_v12 = vmul.f32 0.35355338, %v2750_v9 }
 0xa27   :  { %v5892_v11 = vpop.f32.mrf.mxu0 }
 0xa28   :  { %v2755_v13 = vsel %vm1330_vm11, %v2754_v12, -1e+30 }
 0xa29   :  { %v2756_v14 = vsel %vm1494_vm10, %v2755_v13, -inf }
 0xa33   :  { %1916 = vrot.lane.b32.xlu1 %v6873_v17, %s7581_s0 }
 0xa3c   :  { %1749 = vrot.lane.b32.xlu0 %v6873_v17, %s7585_s30 }
 0xa57   :  { %2757 = vmax.xlane.f32.xlu1 %v2756_v14 }
 0xa68   :  { %2083 = vrot.lane.b32.xlu1 %v6873_v17, %s7583_s1 }
 0xa9a   :  { %v1573_v15 = vpop.xlane.xlu1 %1572 }
 0xa9b   :  { %v1574_v16 = vsub.f32 %v1570_v44, %v1573_v15  ;;  %v1740_v19 = vpop.xlane.xlu0 %1739 }
 0xa9c   :  { %v1741_v20 = vsub.f32 %v1737_v46, %v1740_v19 }
 0xa9d   :  { %v1575_v21 = vmul.f32 1.442695, %v1574_v16 }
 0xa9e   :  { %v1742_v22 = vmul.f32 1.442695, %v1741_v20 }
 0xa9f   :  { %6148 = vpow2.f32 %v1575_v21  ;;  %v1907_v23 = vpop.xlane.xlu0 %1906 }
 0xaa0   :  { %6150 = vpow2.f32 %v1742_v22  ;;  %v1908_v24 = vsub.f32 %v1904_v51, %v1907_v23 }
 0xaa2   :  { %v1909_v25 = vmul.f32 1.442695, %v1908_v24 }
 0xaa3   :  { %v2074_v31 = vpop.xlane.xlu1 %2073 }
 0xaa4   :  { %6152 = vpow2.f32 %v1909_v25  ;;  %v2075_v32 = vsub.f32 %v2071_v56, %v2074_v31 }
 0xaa6   :  { %v2076_v39 = vmul.f32 1.442695, %v2075_v32 }
 0xaa7   :  { %v2257_v33 = vpop.xlane.xlu0 %2256 }
 0xaa8   :  { %v2258_v38 = vsub.f32 %v2254_v61, %v2257_v33  ;;  %6154 = vpow2.f32 %v2076_v39  ;;  %v2861_v33 = vld [vmem:[%s7565_s11 + $0x18] sm:$0xff]  ;;  %v2859_v39 = vld [vmem:[%s7565_s11 + $0x8] sm:$0xff] }
 0xaa9   :  { %5898 = vmatprep.subr.mxu0 %v2861_v33 }
 0xaaa   :  { %v2259_v42 = vmul.f32 1.442695, %v2258_v38  ;;  %5899 = vmatpush3.msra.mxu0 %v2861_v33 }
 0xaab   :  { %v2424_v34 = vpop.xlane.xlu1 %2423 }
 0xaac   :  { %v6149_v26 = vpop.eup %6148  ;;  %v2425_v40 = vsub.f32 %v2421_v3, %v2424_v34  ;;  %6156 = vpow2.f32 %v2259_v42  ;;  %v2860_v34 = vld [vmem:[%s7565_s11 + $0x10] sm:$0xff] }
 0xaad   :  { %v6980_v27 = vpop.eup %6150  ;;  %v1577_v28 = vsel %vm1494_vm10, %v6149_v26, 0.0  ;;  %5900 = vmatprep.subr.mxu0 %v2860_v34 }
 0xaae   :  { %1578 = vadd.xlane.f32.xlu0 %v1577_v28  ;;  %v1744_v17 = vsel %vm1494_vm10, %v6980_v27, 0.0  ;;  %v2426_v43 = vmul.f32 1.442695, %v2425_v40  ;;  %5901 = vmatpush3.msra.mxu0 %v2860_v34  ;;  %v2858_v40 = vld [vmem:[%s7565_s11] sm:$0xff] }
 0xaaf   :  { %1745 = vadd.xlane.f32.xlu1 %v1744_v17  ;;  %v2591_v41 = vpop.xlane.xlu0 %2590  ;;  %v1917_v46 = vpop.permute.xlu1 %1916  ;;  %5902 = vmatprep.subr.mxu0 %v2859_v39 }
 0xab0   :  { %v2592_v44 = vsub.f32 %v2588_v8, %v2591_v41  ;;  %6158 = vpow2.f32 %v2426_v43  ;;  %5903 = vmatpush3.msra.mxu0 %v2859_v39 }
 0xab1   :  { %v6985_v29 = vpop.eup %6152  ;;  %5904 = vmatprep.subr.mxu0 %v2858_v40 }
 0xab2   :  { %v1911_v30 = vsel %vm1494_vm10, %v6985_v29, 0.0  ;;  %v2593_v45 = vmul.f32 1.442695, %v2592_v44  ;;  %5905 = vmatpush3.msra.mxu0 %v2858_v40 }
 0xab3   :  { %1912 = vadd.xlane.f32.xlu0 %v1911_v30  ;;  %v1750_v60 = vpop.permute.xlu0 %1749 }
 0xab4   :  { %6160 = vpow2.f32 %v2593_v45 }
 0xab5   :  { %v6155_v47 = vpop.eup %6154 }
 0xab6   :  { %v2078_v52 = vsel %vm1494_vm10, %v6155_v47, 0.0 }
 0xab9   :  { %v6993_v50 = vpop.eup %6156 }
 0xaba   :  { %v2261_v54 = vsel %vm1494_vm10, %v6993_v50, 0.0 }
 0xabd   :  { %v6996_v53 = vpop.eup %6158 }
 0xabe   :  { %v2428_v55 = vsel %vm1494_vm10, %v6996_v53, 0.0 }
 0xac0   :  { %2266 = vrot.lane.b32.xlu1 %v6887_v18, %s6336_s29 }
 0xac1   :  { %v7002_v56 = vpop.eup %6160 }
 0xac2   :  { %v2595_v57 = vsel %vm1494_vm10, %v7002_v56, 0.0 }
 0xac9   :  { %2433 = vrot.lane.b32.xlu0 %v6887_v18, %s7585_s30  ;;  %s7613_s30 = smov 112  }
 0xae0   :  { %v2758_v48 = vpop.xlane.xlu1 %2757 }
 0xae1   :  { %v2759_v49 = vsub.f32 %v2755_v13, %v2758_v48 }
 0xae3   :  { %v2760_v51 = vmul.f32 1.442695, %v2759_v49 }
 0xae4   :  { %2079 = vadd.xlane.f32.xlu1 %v2078_v52  ;;  %v2084_v61 = vpop.permute.xlu1 %2083 }
 0xae5   :  { %6162 = vpow2.f32 %v2760_v51 }
 0xae8   :  { %2262 = vadd.xlane.f32.xlu0 %v2261_v54  ;;  %2429 = vadd.xlane.f32.xlu1 %v2428_v55 }
 0xaec   :  { %2596 = vadd.xlane.f32.xlu0 %v2595_v57 }
 0xaf2   :  { %v7006_v58 = vpop.eup %6162 }
 0xaf3   :  { %v2762_v59 = vsel %vm1494_vm10, %v7006_v58, 0.0 }
 0xaf4   :  { %2763 = vadd.xlane.f32.xlu0 %v2762_v59 }
 0xaf9   :  { %2600 = vrot.lane.b32.xlu1 %v6887_v18, %s7581_s0  ;;  %s7612_s0 = smov 80  }
 0xb0a   :  { %2767 = vrot.lane.b32.xlu0 %v6887_v18, %s7583_s1  ;;  %s7615_s1 = smov 72  }
 0xb37   :  { %v1579_v62 = vpop.xlane.xlu0 %1578 }
 0xb38   :  { %6164 = vrcp.f32 %v1579_v62  ;;  %v1746_v63 = vpop.xlane.xlu1 %1745 }
 0xb39   :  { %6166 = vrcp.f32 %v1746_v63 }
 0xb3c   :  { %v1913_v1 = vpop.xlane.xlu0 %1912  ;;  %v2267_v7 = vpop.permute.xlu1 %2266 }
 0xb3d   :  { %6168 = vrcp.f32 %v1913_v1  ;;  %v5418_v1 = vld [vmem:[%s7566_s12] ss:$0 sm:$0xff] }
 0xb40   :  { %v2434_v8 = vpop.permute.xlu0 %2433 }
 0xb45   :  { %v6165_v2 = vpop.eup %6164 }
 0xb46   :  { %v1581_v3 = vmul.f32 %v6165_v2, %v6149_v26  ;;  %v6167_v4 = vpop.eup %6166 }
 0xb47   :  { %v1748_v18 = vmul.f32 %v6167_v4, %v6980_v27 }
 0xb48   :  { %5826 = vmatmul.mubr.msk.f32.vlgmr.msra.gmra.mxu1 %vm1494_vm10, %v1581_v3 }
 0xb49   :  { %5834 = vmatpush3.msra.mxu1 %v1750_v60  ;;  %5835 = vmatprep.mubr.msk.f32.mxu1 %vm6340_vm9, %v6333_v0 }
 0xb4a   :  { %5843 = vmatprep.subr.mxu1 %v6333_v0  ;;  %v6169_v5 = vpop.eup %6168 }
 0xb4b   :  { %v1915_v6 = vmul.f32 %v6169_v5, %v6985_v29 }
 0xb4c   :  { %5836 = vmatmul.mubr.msk.f32.vlgmr.msra.gmra.mxu1 %vm1494_vm10, %v1748_v18 }
 0xb4d   :  { %5844 = vmatpush3.msra.mxu1 %v1917_v46  ;;  %5845 = vmatprep.mubr.msk.f32.mxu1 %vm6340_vm9, %v6333_v0 }
 0xb4e   :  { %5853 = vmatprep.subr.mxu1 %v6333_v0 }
 0xb50   :  { %5846 = vmatmul.mubr.msk.f32.vlgmr.msra.gmra.mxu1 %vm1494_vm10, %v1915_v6 }
 0xb51   :  { %5854 = vmatpush3.msra.mxu1 %v2084_v61  ;;  %5855 = vmatprep.mubr.msk.f32.mxu1 %vm6340_vm9, %v6333_v0 }
 0xb52   :  { %5863 = vmatprep.subr.mxu1 %v6333_v0 }
 0xb6d   :  { %v2080_v9 = vpop.xlane.xlu1 %2079 }
 0xb6e   :  { %6170 = vrcp.f32 %v2080_v9 }
 0xb71   :  { %v2263_v10 = vpop.xlane.xlu0 %2262  ;;  %v2430_v11 = vpop.xlane.xlu1 %2429 }
 0xb72   :  { %6172 = vrcp.f32 %v2263_v10 }
 0xb73   :  { %6174 = vrcp.f32 %v2430_v11 }
 0xb75   :  { %v2597_v12 = vpop.xlane.xlu0 %2596  ;;  %v2601_v23 = vpop.permute.xlu1 %2600 }
 0xb76   :  { %6176 = vrcp.f32 %v2597_v12 }
 0xb7b   :  { %v6171_v13 = vpop.eup %6170 }
 0xb7c   :  { %v2082_v14 = vmul.f32 %v6171_v13, %v6155_v47 }
 0xb7d   :  { %v2764_v15 = vpop.xlane.xlu0 %2763 }
 0xb7e   :  { %6178 = vrcp.f32 %v2764_v15  ;;  %5856 = vmatmul.mubr.msk.f32.vlgmr.msra.gmra.mxu1 %vm1494_vm10, %v2082_v14 }
 0xb7f   :  { %v6173_v16 = vpop.eup %6172  ;;  %5864 = vmatpush3.msra.mxu1 %v2267_v7  ;;  %5865 = vmatprep.mubr.msk.f32.mxu1 %vm6340_vm9, %v6333_v0 }
 0xb80   :  { %5873 = vmatprep.subr.mxu1 %v6333_v0  ;;  %v2265_v19 = vmul.f32 %v6173_v16, %v6993_v50  ;;  %v6175_v20 = vpop.eup %6174 }
 0xb81   :  { %v2432_v21 = vmul.f32 %v6175_v20, %v6996_v53  ;;  %v2768_v25 = vpop.permute.xlu0 %2767 }
 0xb82   :  { %5866 = vmatmul.mubr.msk.f32.vlgmr.msra.gmra.mxu1 %vm1494_vm10, %v2265_v19 }
 0xb83   :  { %5874 = vmatpush3.msra.mxu1 %v2434_v8  ;;  %5875 = vmatprep.mubr.msk.f32.mxu1 %vm6340_vm9, %v6333_v0  ;;  %v6177_v22 = vpop.eup %6176 }
 0xb84   :  { %5883 = vmatprep.subr.mxu1 %v6333_v0  ;;  %v2599_v24 = vmul.f32 %v6177_v22, %v7002_v56 }
 0xb86   :  { %5876 = vmatmul.mubr.msk.f32.vlgmr.msra.gmra.mxu1 %vm1494_vm10, %v2432_v21 }
 0xb87   :  { %5884 = vmatpush3.msra.mxu1 %v2601_v23  ;;  %5885 = vmatprep.mubr.msk.f32.mxu1 %vm6340_vm9, %v6333_v0 }
 0xb88   :  { %5893 = vmatprep.subr.mxu1 %v6333_v0 }
 0xb8a   :  { %5886 = vmatmul.mubr.msk.f32.vlgmr.msra.gmra.mxu1 %vm1494_vm10, %v2599_v24  ;;  %v5420_v24 = vld [vmem:[%s7568_s14] ss:$0 sm:$0xff] }
 0xb8b   :  { %v6179_v26 = vpop.eup %6178  ;;  %5894 = vmatpush3.msra.mxu1 %v2768_v25  ;;  %5895 = vmatprep.mubr.msk.f32.mxu1 %vm6340_vm9, %v6333_v0  ;;  %v5419_v25 = vld [vmem:[%s7567_s13] ss:$0 sm:$0xff] }
 0xb8c   :  { %v2766_v27 = vmul.f32 %v6179_v26, %v7006_v58  ;;  %v3031_v26 = vld [vmem:[%s7569_s15 + $0x18] sm:$0xff] }
 0xb8d   :  { %5909 = vmatprep.subr.mxu1 %v3031_v26 }
 0xb8e   :  { %5896 = vmatmul.mubr.msk.f32.vlgmr.msra.gmra.mxu1 %vm1494_vm10, %v2766_v27  ;;  %v3030_v27 = vld [vmem:[%s7569_s15 + $0x10] sm:$0xff] }
 0xb8f   :  { %5910 = vmatpush3.msra.mxu1 %v3031_v26 }
 0xb90   :  { %5911 = vmatprep.subr.mxu1 %v3030_v27 }
 0xb91   :  { %5912 = vmatpush3.msra.mxu1 %v3030_v27 }
 0xc08   :  { %v1654_v28 = vpop.f32.mrf.mxu1 }
 0xc0a   :  { %v5827_v17 = vpop.f32.mrf.mxu1 }
 0xc0b   :  { %v3028_v17 = vld [vmem:[%s7569_s15] sm:$0xff] }
 0xc0c   :  { %v1821_v29 = vpop.f32.mrf.mxu1 }
 0xc0d   :  { %2160 = vrot.lane.b32.xlu1 %v1821_v29, %s6331_s25 }
 0xc0e   :  { %v5837_v30 = vpop.f32.mrf.mxu1 }
 0xc10   :  { %v1988_v31 = vpop.f32.mrf.mxu1 }
 0xc11   :  { %2164 = vrot.lane.b32.xlu0 %v1988_v31, %s6349_s5 }
 0xc12   :  { %v5847_v32 = vpop.f32.mrf.mxu1 }
 0xc3e   :  { %v2155_v38 = vpop.f32.mrf.mxu1 }
 0xc3f   :  { %2168 = vrot.lane.b32.xlu0 %v2155_v38, %s6350_s26 }
 0xc40   :  { %v5857_v41 = vpop.f32.mrf.mxu1 }
 0xc42   :  { %v2338_v42 = vpop.f32.mrf.mxu1 }
 0xc44   :  { %v5867_v43 = vpop.f32.mrf.mxu1 }
 0xc46   :  { %v2505_v44 = vpop.f32.mrf.mxu1 }
 0xc47   :  { %2844 = vrot.lane.b32.xlu1 %v2505_v44, %s6331_s25 }
 0xc48   :  { %v5877_v45 = vpop.f32.mrf.mxu1 }
 0xc4a   :  { %v2672_v46 = vpop.f32.mrf.mxu1 }
 0xc4b   :  { %2848 = vrot.lane.b32.xlu1 %v2672_v46, %s6349_s5 }
 0xc4c   :  { %v5887_v47 = vpop.f32.mrf.mxu1 }
 0xc4e   :  { %v2839_v48 = vpop.f32.mrf.mxu1 }
 0xc4f   :  { %2852 = vrot.lane.b32.xlu0 %v2839_v48, %s6350_s26 }
 0xc50   :  { %v5897_v49 = vpop.f32.mrf.mxu1 }
 0xc7f   :  { %v2161_v50 = vpop.permute.xlu1 %2160 }
 0xc80   :  { %v2171_v52 = vsel %vm1494_vm10, %v1654_v28, %v2161_v50  ;;  %v3029_v28 = vld [vmem:[%s7569_s15 + $0x8] sm:$0xff]  ;;  %v3155_v50 = vld [vmem:[%s7571_s17 + $0x78] sm:$0xff] }
 0xc81   :  { %5913 = vmatprep.subr.mxu1 %v3029_v28  ;;  %5920 = vmatprep.subr.mxu0 %v3155_v50 }
 0xc82   :  { %5914 = vmatpush3.msra.mxu1 %v3029_v28 }
 0xc83   :  { %v2165_v51 = vpop.permute.xlu0 %2164  ;;  %5915 = vmatprep.subr.mxu1 %v3028_v17 }
 0xc84   :  { %v2173_v53 = vsel %vm2172_vm12, %v2171_v52, %v2165_v51  ;;  %5916 = vmatpush3.msra.mxu1 %v3028_v17  ;;  %v3154_v51 = vld [vmem:[%s7571_s17 + $0x70] sm:$0xff]  ;;  %v3153_v52 = vld [vmem:[%s7571_s17 + $0x68] sm:$0xff] }
 0xcb1   :  { %v2169_v54 = vpop.permute.xlu0 %2168 }
 0xcb2   :  { %v2175_v55 = vsel %vm2174_vm13, %v2173_v53, %v2169_v54  ;;  %v3152_v53 = vld [vmem:[%s7571_s17 + $0x60] sm:$0xff]  ;;  %v3151_v54 = vld [vmem:[%s7571_s17 + $0x58] sm:$0xff] }
 0xcb3   :  { %5906 = vmatprep.mubr.msk.f32.mxu0 %vm1272_vm8, %v2175_v55  ;;  %v3150_v55 = vld [vmem:[%s7571_s17 + $0x50] sm:$0xff] }
 0xcb9   :  { %v2845_v56 = vpop.permute.xlu1 %2844 }
 0xcba   :  { %v2855_v58 = vsel %vm1494_vm10, %v2338_v42, %v2845_v56  ;;  %v3149_v56 = vld [vmem:[%s7571_s17 + $0x48] sm:$0xff] }
 0xcbd   :  { %v2849_v57 = vpop.permute.xlu1 %2848 }
 0xcbe   :  { %v2856_v59 = vsel %vm2172_vm12, %v2855_v58, %v2849_v57  ;;  %v3148_v57 = vld [vmem:[%s7571_s17 + $0x40] sm:$0xff]  ;;  %v3147_v58 = vld [vmem:[%s7571_s17 + $0x38] sm:$0xff] }
 0xcc1   :  { %v2853_v60 = vpop.permute.xlu0 %2852 }
 0xcc2   :  { %v2857_v61 = vsel %vm2174_vm13, %v2856_v59, %v2853_v60  ;;  %v3146_v59 = vld [vmem:[%s7571_s17 + $0x30] sm:$0xff]  ;;  %v3145_v60 = vld [vmem:[%s7571_s17 + $0x28] sm:$0xff] }
 0xcc3   :  { %5907 = vmatmul.mubr.msk.f32.vlgmr.msra.gmra.mxu0 %vm1272_vm8, %v2857_v61  ;;  %v3144_v61 = vld [vmem:[%s7571_s17 + $0x20] sm:$0xff] }
 0xcc4   :  { %5921 = vmatpush3.msra.mxu0 %v3155_v50  ;;  %v5433_v50 = vld [vmem:[%s7563_s9 + $0x30] sm:$0xff] }
 0xcc5   :  { %5922 = vmatprep.subr.mxu0 %v3154_v51 }
 0xcc6   :  { %5923 = vmatpush3.msra.mxu0 %v3154_v51  ;;  %v5432_v51 = vld [vmem:[%s7563_s9 + $0x28] sm:$0xff] }
 0xcc7   :  { %5924 = vmatprep.subr.mxu0 %v3153_v52 }
 0xcc8   :  { %5925 = vmatpush3.msra.mxu0 %v3153_v52  ;;  %v5431_v52 = vld [vmem:[%s7563_s9 + $0x20] sm:$0xff] }
 0xcc9   :  { %5926 = vmatprep.subr.mxu0 %v3152_v53 }
 0xcca   :  { %5927 = vmatpush3.msra.mxu0 %v3152_v53 }
 0xccb   :  { %5928 = vmatprep.subr.mxu0 %v3151_v54 }
 0xccc   :  { %5929 = vmatpush3.msra.mxu0 %v3151_v54 }
 0xccd   :  { %5930 = vmatprep.subr.mxu0 %v3150_v55 }
 0xcce   :  { %5931 = vmatpush3.msra.mxu0 %v3150_v55 }
 0xccf   :  { %5932 = vmatprep.subr.mxu0 %v3149_v56 }
 0xcd0   :  { %5933 = vmatpush3.msra.mxu0 %v3149_v56 }
 0xcd1   :  { %5934 = vmatprep.subr.mxu0 %v3148_v57 }
 0xcd2   :  { %5935 = vmatpush3.msra.mxu0 %v3148_v57 }
 0xcd3   :  { %5936 = vmatprep.subr.mxu0 %v3147_v58 }
 0xcd4   :  { %5937 = vmatpush3.msra.mxu0 %v3147_v58 }
 0xcd5   :  { %5938 = vmatprep.subr.mxu0 %v3146_v59 }
 0xcd6   :  { %5939 = vmatpush3.msra.mxu0 %v3146_v59 }
 0xcd7   :  { %5940 = vmatprep.subr.mxu0 %v3145_v60 }
 0xcd8   :  { %5941 = vmatpush3.msra.mxu0 %v3145_v60 }
 0xcd9   :  { %5942 = vmatprep.subr.mxu0 %v3144_v61 }
 0xcda   :  { %5943 = vmatpush3.msra.mxu0 %v3144_v61 }
 0xd83   :  { %v5908_v62 = vpop.f32.mrf.mxu0 }
 0xd84   :  { %2947 = vrot.lane.b32.xlu0 %v5908_v62, %s6338_s3  ;;  %v3143_v62 = vld [vmem:[%s7571_s17 + $0x18] sm:$0xff] }
 0xd85   :  { %v2934_v63 = vpop.f32.mrf.mxu0  ;;  %5944 = vmatprep.subr.mxu0 %v3143_v62 }
 0xd86   :  { %2945 = vrot.lane.b32.xlu1 %v2934_v63, %s6338_s3  ;;  %5945 = vmatpush3.msra.mxu0 %v3143_v62  ;;  %v3142_v63 = vld [vmem:[%s7571_s17 + $0x10] sm:$0xff] }
 0xd87   :  { %5946 = vmatprep.subr.mxu0 %v3142_v63 }
 0xd88   :  { %5947 = vmatpush3.msra.mxu0 %v3142_v63 }
 0xd8a   :  { %2959 = vrot.lane.b32.xlu1 %v5418_v1, %s6338_s3  ;;  %v3141_v1 = vld [vmem:[%s7571_s17 + $0x8] sm:$0xff] }
 0xd8b   :  { %5948 = vmatprep.subr.mxu0 %v3141_v1 }
 0xd8c   :  { %5949 = vmatpush3.msra.mxu0 %v3141_v1 }
 0xdf6   :  { %v2948_v2 = vpop.permute.xlu0 %2947 }
 0xdf7   :  { %v2952_v4 = vadd.f32 %v2948_v2, %v6825_v35  ;;  %v3140_v2 = vld [vmem:[%s7571_s17] sm:$0xff] }
 0xdf8   :  { %v2946_v3 = vpop.permute.xlu1 %2945  ;;  %5950 = vmatprep.subr.mxu0 %v3140_v2 }
 0xdf9   :  { %v2951_v18 = vadd.f32 %v2946_v3, %v6827_v36  ;;  %5951 = vmatpush3.msra.mxu0 %v3140_v2  ;;  %v5421_v3 = vld [vmem:[%s7570_s16] ss:$0 sm:$0xff] }
 0xdfa   :  { %5996 = vmatprep.subr.mxu0 %v6333_v0 }
 0xdfc   :  { %v2960_v5 = vpop.permute.xlu1 %2959 }
 0xdfd   :  { %v7082_v6 = vadd.f32 %v2960_v5, %v2951_v18  ;;  %v7084_v7 = vadd.f32 %v2960_v5, %v2952_v4 }
 0xdff   :  { %2970 = vrot.lane.b32.xlu1 %v7084_v7, %s6339_s28  ;;  %2968 = vrot.lane.b32.xlu0 %v7082_v6, %s6339_s28 }
 0xe71   :  { %v2971_v8 = vpop.permute.xlu1 %2970  ;;  %v2969_v9 = vpop.permute.xlu0 %2968 }
 0xe72   :  { %v2977_v10 = vsel %vm1272_vm8, %v2971_v8, 0.0  ;;  %v2974_v11 = vsel %vm1272_vm8, %v2969_v9, 0.0 }
 0xe73   :  { %2978 = vadd.xlane.f32.xlu1 %v2977_v10  ;;  %2975 = vadd.xlane.f32.xlu0 %v2974_v11 }
 0xefc   :  { %v2979_v35 = vpop.xlane.xlu1 %2978  ;;  %v2976_v36 = vpop.xlane.xlu0 %2975 }
 0xefd   :  { %v2981_v12 = vmul.f32 0.03125, %v2979_v35  ;;  %v2980_v13 = vmul.f32 0.03125, %v2976_v36 }
 0xeff   :  { %v2983_v14 = vsub.f32 %v7084_v7, %v2981_v12  ;;  %v2982_v15 = vsub.f32 %v7082_v6, %v2980_v13 }
 0xf01   :  { %v2985_v16 = vmul.f32 %v2983_v14, %v2983_v14  ;;  %v2984_v19 = vmul.f32 %v2982_v15, %v2982_v15 }
 0xf03   :  { %2990 = vrot.lane.b32.xlu1 %v2985_v16, %s6339_s28  ;;  %2988 = vrot.lane.b32.xlu0 %v2984_v19, %s6339_s28 }
 0xf75   :  { %v2991_v20 = vpop.permute.xlu1 %2990  ;;  %v2989_v21 = vpop.permute.xlu0 %2988 }
 0xf76   :  { %v2997_v22 = vsel %vm1272_vm8, %v2991_v20, 0.0  ;;  %v2994_v23 = vsel %vm1272_vm8, %v2989_v21, 0.0 }
 0xf77   :  { %2998 = vadd.xlane.f32.xlu1 %v2997_v22  ;;  %2995 = vadd.xlane.f32.xlu0 %v2994_v23  ;;  %v5426_v23 = vld [vmem:[%s7572_s18] ss:$0 sm:$0xff] }
 0xf88   :  { %3023 = vrot.lane.b32.xlu1 %v5420_v24, %s6338_s3 }
 0xf8d   :  { %3013 = vrot.lane.b32.xlu0 %v5419_v25, %s6338_s3 }
0x1000   :  { %v2999_v29 = vpop.xlane.xlu1 %2998  ;;  %v2996_v30 = vpop.xlane.xlu0 %2995 }
0x1001   :  { %v3001_v31 = vmul.f32 0.03125, %v2999_v29  ;;  %v3000_v32 = vmul.f32 0.03125, %v2996_v30 }
0x1003   :  { %v3003_v33 = vadd.f32 1e-05, %v3001_v31  ;;  %v3002_v34 = vadd.f32 1e-05, %v3000_v32 }
0x1004   :  { %v3014_v39 = vpop.permute.xlu0 %3013  ;;  %v3024_v43 = vpop.permute.xlu1 %3023 }
0x1005   :  { %6180 = vrsqrt.f32 %v3003_v33 }
0x1006   :  { %6182 = vrsqrt.f32 %v3002_v34 }
0x1012   :  { %v6181_v38 = vpop.eup %6180 }
0x1013   :  { %v6183_v40 = vpop.eup %6182  ;;  %v3007_v41 = vmul.f32 %v6181_v38, %v2983_v14 }
0x1014   :  { %v3006_v42 = vmul.f32 %v6183_v40, %v2982_v15 }
0x1015   :  { %v3017_v44 = vmul.f32 %v3014_v39, %v3007_v41 }
0x1016   :  { %v3016_v45 = vmul.f32 %v3014_v39, %v3006_v42 }
0x1017   :  { %v3027_v46 = vadd.f32 %v3024_v43, %v3017_v44 }
0x1018   :  { %v3026_v47 = vadd.f32 %v3024_v43, %v3016_v45 }
0x1019   :  { %3043 = vrot.lane.b32.xlu1 %v3027_v46, %s6339_s28 }
0x101a   :  { %3041 = vrot.lane.b32.xlu0 %v3026_v47, %s6339_s28  ;;  %v5430_v47 = vld [vmem:[%s7562_s8 + $0x1] ss:$0 sm:$0xff] }
0x108b   :  { %v3044_v48 = vpop.permute.xlu1 %3043 }
0x108c   :  { %v3042_v49 = vpop.permute.xlu0 %3041 }
0x108d   :  { %5917 = vmatprep.mubr.msk.f32.mxu1 %vm1272_vm8, %v3042_v49  ;;  %v5434_v49 = vld [vmem:[%s7563_s9 + $0x38] sm:$0xff] }
0x108e   :  { %5918 = vmatmul.mubr.msk.f32.vlgmr.msra.gmra.mxu1 %vm1272_vm8, %v3044_v48  ;;  %v5429_v48 = vld [vmem:[%s7561_s7 + $0x1] ss:$0 sm:$0xff]  ;;  %5955 = vmatprep.subr.mxu1 %v5434_v49 }
0x108f   :  { %5956 = vmatpush3.msra.mxu1 %v5434_v49 }
0x1090   :  { %5957 = vmatprep.subr.mxu1 %v5433_v50 }
0x1091   :  { %5958 = vmatpush3.msra.mxu1 %v5433_v50 }
0x1092   :  { %5959 = vmatprep.subr.mxu1 %v5432_v51 }
0x1093   :  { %5960 = vmatpush3.msra.mxu1 %v5432_v51 }
0x1094   :  { %5961 = vmatprep.subr.mxu1 %v5431_v52 }
0x1095   :  { %5962 = vmatpush3.msra.mxu1 %v5431_v52 }
0x1096   :  { %5966 = vmatprep.subr.mxu1 %v6333_v0 }
0x114e   :  { %v5919_v4 = vpop.f32.mrf.mxu1 }
0x114f   :  { %v3121_v18 = vadd.f32 %v5919_v4, %v5421_v3 }
0x1150   :  { %v3115_v5 = vpop.f32.mrf.mxu1 }
0x1151   :  { %v5425_v8 = vmul.f32 -1.702, %v3121_v18  ;;  %v3116_v9 = vadd.f32 %v5421_v3, %v3115_v5 }
0x1153   :  { %v3130_v10 = vmul.f32 1.442695, %v5425_v8  ;;  %v5424_v11 = vmul.f32 -1.702, %v3116_v9 }
0x1155   :  { %6184 = vpow2.f32 %v3130_v10  ;;  %v3128_v35 = vmul.f32 1.442695, %v5424_v11 }
0x1157   :  { %6186 = vpow2.f32 %v3128_v35 }
0x1162   :  { %v6185_v36 = vpop.eup %6184 }
0x1163   :  { %v3133_v12 = vadd.f32 1.0, %v6185_v36 }
0x1164   :  { %v6187_v13 = vpop.eup %6186 }
0x1165   :  { %v3132_v14 = vadd.f32 1.0, %v6187_v13  ;;  %6188 = vrcp.f32 %v3133_v12 }
0x1167   :  { %6190 = vrcp.f32 %v3132_v14 }
0x1172   :  { %v6189_v15 = vpop.eup %6188 }
0x1173   :  { %v3139_v20 = vmul.f32 %v6189_v15, %v3121_v18 }
0x1174   :  { %v6191_v16 = vpop.eup %6190 }
0x1175   :  { %v3138_v19 = vmul.f32 %v6191_v16, %v3116_v9  ;;  %v5436_v9 = vld [vmem:[%s7564_s10 + $0x1] ss:$0 sm:$0xff]  ;;  %s7611_s10 = smov 88  }
0x1177   :  { %5952 = vmatprep.mubr.f32.mxu0 %v3138_v19 }
0x1178   :  { %5953 = vmatmul.mubr.f32.vlgmr.msra.gmra.mxu0 %v3139_v20 }
0x1179   :  { %5998 = vmatprep.mubr.msk.f32.mxu0 %vm6340_vm9, %v6333_v0 }
0x1238   :  { %v5954_v21 = vpop.f32.mrf.mxu0 }
0x1239   :  { %3235 = vrot.lane.b32.xlu1 %v5954_v21, %s6338_s3 }
0x123a   :  { %v3222_v22 = vpop.f32.mrf.mxu0 }
0x123b   :  { %3233 = vrot.lane.b32.xlu0 %v3222_v22, %s6338_s3 }
0x123f   :  { %3247 = vrot.lane.b32.xlu0 %v5426_v23, %s6338_s3 }
0x12ab   :  { %v3236_v24 = vpop.permute.xlu1 %3235 }
0x12ac   :  { %v3240_v26 = vadd.f32 %v3236_v24, %v7084_v7 }
0x12ad   :  { %v3234_v25 = vpop.permute.xlu0 %3233 }
0x12ae   :  { %v3239_v27 = vadd.f32 %v3234_v25, %v7082_v6 }
0x12b1   :  { %v3248_v28 = vpop.permute.xlu0 %3247 }
0x12b2   :  { %v7184_v17 = vadd.f32 %v3248_v28, %v3239_v27  ;;  %v7186_v29 = vadd.f32 %v3248_v28, %v3240_v26 }
0x12b4   :  { %3260 = vrot.lane.b32.xlu0 %v7186_v29, %s6339_s28  ;;  %3258 = vrot.lane.b32.xlu1 %v7184_v17, %s6339_s28 }
0x1326   :  { %v3261_v30 = vpop.permute.xlu0 %3260  ;;  %v3259_v31 = vpop.permute.xlu1 %3258 }
0x1327   :  { %v3267_v32 = vsel %vm1272_vm8, %v3261_v30, 0.0  ;;  %v3264_v33 = vsel %vm1272_vm8, %v3259_v31, 0.0 }
0x1328   :  { %3268 = vadd.xlane.f32.xlu0 %v3267_v32  ;;  %3265 = vadd.xlane.f32.xlu1 %v3264_v33 }
0x13b1   :  { %v3269_v6 = vpop.xlane.xlu0 %3268  ;;  %v3266_v7 = vpop.xlane.xlu1 %3265 }
0x13b2   :  { %v3271_v34 = vmul.f32 0.03125, %v3269_v6  ;;  %v3270_v38 = vmul.f32 0.03125, %v3266_v7 }
0x13b4   :  { %v3273_v39 = vsub.f32 %v7186_v29, %v3271_v34  ;;  %v3272_v40 = vsub.f32 %v7184_v17, %v3270_v38 }
0x13b6   :  { %v3275_v41 = vmul.f32 %v3273_v39, %v3273_v39  ;;  %v3274_v42 = vmul.f32 %v3272_v40, %v3272_v40 }
0x13b8   :  { %3280 = vrot.lane.b32.xlu1 %v3275_v41, %s6339_s28  ;;  %3278 = vrot.lane.b32.xlu0 %v3274_v42, %s6339_s28 }
0x142a   :  { %v3279_v43 = vpop.permute.xlu0 %3278  ;;  %v3281_v44 = vpop.permute.xlu1 %3280 }
0x142b   :  { %v3284_v45 = vsel %vm1272_vm8, %v3279_v43, 0.0  ;;  %v3287_v46 = vsel %vm1272_vm8, %v3281_v44, 0.0 }
0x142c   :  { %3285 = vadd.xlane.f32.xlu1 %v3284_v45  ;;  %3288 = vadd.xlane.f32.xlu0 %v3287_v46 }
0x143d   :  { %3313 = vrot.lane.b32.xlu1 %v5430_v47, %s6338_s3 }
0x1442   :  { %3303 = vrot.lane.b32.xlu0 %v5429_v48, %s6338_s3 }
0x14b5   :  { %v3289_v53 = vpop.xlane.xlu0 %3288  ;;  %v3286_v54 = vpop.xlane.xlu1 %3285 }
0x14b6   :  { %v3291_v55 = vmul.f32 0.03125, %v3289_v53  ;;  %v3290_v56 = vmul.f32 0.03125, %v3286_v54 }
0x14b8   :  { %v3293_v57 = vadd.f32 1e-05, %v3291_v55  ;;  %v3292_v58 = vadd.f32 1e-05, %v3290_v56 }
0x14b9   :  { %v3304_v60 = vpop.permute.xlu0 %3303  ;;  %v3314_v1 = vpop.permute.xlu1 %3313 }
0x14ba   :  { %6192 = vrsqrt.f32 %v3293_v57 }
0x14bb   :  { %6194 = vrsqrt.f32 %v3292_v58 }
0x14c7   :  { %v6193_v59 = vpop.eup %6192 }
0x14c8   :  { %v6195_v61 = vpop.eup %6194  ;;  %v3297_v62 = vmul.f32 %v6193_v59, %v3273_v39 }
0x14c9   :  { %v3296_v63 = vmul.f32 %v6195_v61, %v3272_v40 }
0x14ca   :  { %v3307_v2 = vmul.f32 %v3304_v60, %v3297_v62 }
0x14cb   :  { %v3306_v3 = vmul.f32 %v3304_v60, %v3296_v63 }
0x14cc   :  { %v3317_v4 = vadd.f32 %v3314_v1, %v3307_v2 }
0x14cd   :  { %v3316_v18 = vadd.f32 %v3314_v1, %v3306_v3 }
0x14ce   :  { %3335 = vrot.lane.b32.xlu0 %v3317_v4, %s6339_s28 }
0x14cf   :  { %3333 = vrot.lane.b32.xlu1 %v3316_v18, %s6339_s28 }
0x1540   :  { %v3336_v5 = vpop.permute.xlu0 %3335 }
0x1541   :  { %v3334_v8 = vpop.permute.xlu1 %3333 }
0x1542   :  { %5963 = vmatprep.mubr.msk.f32.mxu1 %vm1272_vm8, %v3334_v8 }
0x1543   :  { %5964 = vmatmul.mubr.msk.f32.vlgmr.msra.gmra.mxu1 %vm1272_vm8, %v3336_v5 }
0x1544   :  { %5968 = vmatprep.mubr.msk.f32.mxu1 %vm6340_vm9, %v6333_v0 }
0x1603   :  { %v5965_v10 = vpop.f32.mrf.mxu1 }
0x1604   :  { %v7230_v11 = vadd.f32 %v5965_v10, %v5436_v9 }
0x1605   :  { %v3407_v35 = vpop.f32.mrf.mxu1 }
0x1606   :  { %v7232_v36 = vadd.f32 %v5436_v9, %v3407_v35 }
0x1608   :  { %3417 = vrot.lane.b32.xlu1 %v7232_v36, %s6339_s28 }
0x167a   :  { %v3418_v12 = vpop.permute.xlu1 %3417 }
0x167b   :  { %5967 = vmatpush3.xpose.msk.msra.mxu1 %vm1494_vm10, %v3418_v12 }
0x167c   :  { %5971 = vmatprep.subr.mxu1 %v6333_v0 }
0x167e   :  { %5969 = vmatmul.mubr.msk.f32.vlgmr.msra.gmra.mxu1 %vm1494_vm10, %v7232_v36 }
0x167f   :  { %5973 = vmatprep.mubr.msk.f32.mxu1 %vm6340_vm9, %v6333_v0 }
0x173e   :  { %v3489_v13 = vpop.f32.mrf.mxu1 }
0x173f   :  { %v3493_v14 = vmul.f32 0.35355338, %v3489_v13 }
0x1740   :  { %v5970_v15 = vpop.f32.mrf.mxu1 }
0x1741   :  { %v3494_v16 = vsel %vm1330_vm11, %v3493_v14, -1e+30 }
0x1742   :  { %v3495_v19 = vsel %vm1494_vm10, %v3494_v16, -inf }
0x1743   :  { %3496 = vmax.xlane.f32.xlu0 %v3495_v19 }
0x1759   :  { %3506 = vrot.lane.b32.xlu0 %v7232_v36, %s6336_s29 }
0x175d   :  { %3582 = vrot.lane.b32.xlu0 %v7232_v36, %s6343_s24 }
0x17cc   :  { %v3497_v20 = vpop.xlane.xlu0 %3496 }
0x17cd   :  { %v3498_v21 = vsub.f32 %v3494_v16, %v3497_v20 }
0x17cf   :  { %v3499_v22 = vmul.f32 1.442695, %v3498_v21 }
0x17d0   :  { %v3507_v23 = vpop.permute.xlu0 %3506 }
0x17d1   :  { %6196 = vpow2.f32 %v3499_v22  ;;  %5972 = vmatpush3.msra.mxu1 %v3507_v23 }
0x17d2   :  { %5976 = vmatprep.subr.mxu1 %v6333_v0 }
0x17d4   :  { %v3583_v31 = vpop.permute.xlu0 %3582 }
0x17de   :  { %v6197_v24 = vpop.eup %6196 }
0x17df   :  { %v3501_v25 = vsel %vm1494_vm10, %v6197_v24, 0.0 }
0x17e0   :  { %3502 = vadd.xlane.f32.xlu1 %v3501_v25 }
0x17f1   :  { %3584 = vrot.lane.b32.xlu1 %v7232_v36, %s7611_s10 }
0x1869   :  { %v3503_v26 = vpop.xlane.xlu1 %3502 }
0x186a   :  { %6198 = vrcp.f32 %v3503_v26 }
0x186d   :  { %v3585_v30 = vpop.permute.xlu1 %3584 }
0x1877   :  { %v6199_v27 = vpop.eup %6198 }
0x1878   :  { %v3505_v28 = vmul.f32 %v6199_v27, %v6197_v24 }
0x187a   :  { %5974 = vmatmul.mubr.msk.f32.vlgmr.msra.gmra.mxu1 %vm1494_vm10, %v3505_v28 }
0x187b   :  { %5977 = vmatpush3.xpose.msk.msra.mxu1 %vm1494_vm10, %v3585_v30  ;;  %5978 = vmatprep.mubr.msk.f32.mxu1 %vm6340_vm9, %v6333_v0 }
0x187c   :  { %5981 = vmatprep.subr.mxu1 %v6333_v0 }
0x187e   :  { %5979 = vmatmul.mubr.msk.f32.vlgmr.msra.gmra.mxu1 %vm1494_vm10, %v3583_v31 }
0x187f   :  { %5983 = vmatprep.mubr.msk.f32.mxu1 %vm6340_vm9, %v6333_v0 }
0x193a   :  { %v7261_v32 = vpop.f32.mrf.mxu1 }
0x193c   :  { %v5975_v33 = vpop.f32.mrf.mxu1 }
0x193e   :  { %v3656_v6 = vpop.f32.mrf.mxu1 }
0x193f   :  { %v3660_v7 = vmul.f32 0.35355338, %v3656_v6 }
0x1940   :  { %v5980_v34 = vpop.f32.mrf.mxu1 }
0x1941   :  { %v3661_v38 = vsel %vm1330_vm11, %v3660_v7, -1e+30 }
0x1942   :  { %v3662_v39 = vsel %vm1494_vm10, %v3661_v38, -inf }
0x1943   :  { %3663 = vmax.xlane.f32.xlu1 %v3662_v39 }
0x1954   :  { %3751 = vrot.lane.b32.xlu1 %v7232_v36, %s7612_s0 }
0x1958   :  { %3749 = vrot.lane.b32.xlu1 %v7232_v36, %s7613_s30 }
0x195c   :  { %3916 = vrot.lane.b32.xlu1 %v7232_v36, %s7614_s6 }
0x1960   :  { %4266 = vrot.lane.b32.xlu1 %v7230_v11, %s7611_s10 }
0x1964   :  { %4433 = vrot.lane.b32.xlu1 %v7230_v11, %s7612_s0 }
0x1968   :  { %4600 = vrot.lane.b32.xlu1 %v7230_v11, %s7615_s1 }
0x19cc   :  { %v3664_v40 = vpop.xlane.xlu1 %3663 }
0x19cd   :  { %v3665_v41 = vsub.f32 %v3661_v38, %v3664_v40 }
0x19cf   :  { %v3666_v42 = vmul.f32 1.442695, %v3665_v41 }
0x19d0   :  { %v3752_v45 = vpop.permute.xlu1 %3751 }
0x19d1   :  { %6200 = vpow2.f32 %v3666_v42 }
0x19d4   :  { %v3750_v46 = vpop.permute.xlu1 %3749 }
0x19d8   :  { %v3917_v49 = vpop.permute.xlu1 %3916 }
0x19dc   :  { %v4267_v51 = vpop.permute.xlu1 %4266 }
0x19de   :  { %v6201_v43 = vpop.eup %6200 }
0x19df   :  { %v3668_v44 = vsel %vm1494_vm10, %v6201_v43, 0.0 }
0x19e0   :  { %3669 = vadd.xlane.f32.xlu0 %v3668_v44  ;;  %v4434_v56 = vpop.permute.xlu1 %4433 }
0x19e4   :  { %v4601_v58 = vpop.permute.xlu1 %4600 }
0x19f6   :  { %3673 = vrot.lane.b32.xlu0 %v7232_v36, %s7616_s2 }
0x19fa   :  { %3918 = vrot.lane.b32.xlu0 %v7232_v36, %s7615_s1 }
0x19fe   :  { %4099 = vrot.lane.b32.xlu0 %v7230_v11, %s6339_s28 }
0x1a02   :  { %4264 = vrot.lane.b32.xlu0 %v7230_v11, %s6343_s24  ;;  %s7617_s24 = smov 40  }
0x1a06   :  { %4431 = vrot.lane.b32.xlu0 %v7230_v11, %s7613_s30 }
0x1a0a   :  { %4598 = vrot.lane.b32.xlu0 %v7230_v11, %s7614_s6 }
0x1a69   :  { %v3670_v47 = vpop.xlane.xlu0 %3669 }
0x1a6a   :  { %6202 = vrcp.f32 %v3670_v47 }
0x1a6d   :  { %v3674_v48 = vpop.permute.xlu0 %3673 }
0x1a6e   :  { %5982 = vmatpush3.msra.mxu1 %v3674_v48 }
0x1a6f   :  { %5986 = vmatprep.subr.mxu1 %v6333_v0 }
0x1a71   :  { %v3919_v50 = vpop.permute.xlu0 %3918 }
0x1a72   :  { %5997 = vmatpush3.xpose.msk.msra.mxu0 %vm1494_vm10, %v3919_v50 }
0x1a73   :  { %6006 = vmatprep.subr.mxu0 %v6333_v0 }
0x1a75   :  { %v4100_v52 = vpop.permute.xlu0 %4099  ;;  %5999 = vmatmul.mubr.msk.f32.vlgmr.msra.gmra.mxu0 %vm1494_vm10, %v3917_v49 }
0x1a76   :  { %6007 = vmatpush3.xpose.msk.msra.mxu0 %vm1494_vm10, %v4100_v52  ;;  %6008 = vmatprep.mubr.msk.f32.mxu0 %vm6340_vm9, %v6333_v0 }
0x1a77   :  { %v6203_v53 = vpop.eup %6202  ;;  %6016 = vmatprep.subr.mxu0 %v6333_v0 }
0x1a78   :  { %v3672_v54 = vmul.f32 %v6203_v53, %v6201_v43 }
0x1a79   :  { %v4265_v55 = vpop.permute.xlu0 %4264  ;;  %6009 = vmatmul.mubr.msk.f32.vlgmr.msra.gmra.mxu0 %vm1494_vm10, %v7230_v11 }
0x1a7a   :  { %5984 = vmatmul.mubr.msk.f32.vlgmr.msra.gmra.mxu1 %vm1494_vm10, %v3672_v54  ;;  %6017 = vmatpush3.xpose.msk.msra.mxu0 %vm1494_vm10, %v4267_v51 }
0x1a7b   :  { %5987 = vmatpush3.xpose.msk.msra.mxu1 %vm1494_vm10, %v3752_v45  ;;  %6018 = vmatprep.mubr.msk.f32.mxu0 %vm6340_vm9, %v6333_v0 }
0x1a7c   :  { %5988 = vmatprep.mubr.msk.f32.mxu1 %vm6340_vm9, %v6333_v0  ;;  %6026 = vmatprep.subr.mxu0 %v6333_v0 }
0x1a7d   :  { %6019 = vmatmul.mubr.msk.f32.vlgmr.msra.gmra.mxu0 %vm1494_vm10, %v4265_v55  ;;  %5991 = vmatprep.subr.mxu1 %v6333_v0  ;;  %v4432_v57 = vpop.permute.xlu0 %4431 }
0x1a7e   :  { %5989 = vmatmul.mubr.msk.f32.vlgmr.msra.gmra.mxu1 %vm1494_vm10, %v3750_v46  ;;  %6027 = vmatpush3.xpose.msk.msra.mxu0 %vm1494_vm10, %v4434_v56 }
0x1a7f   :  { %6028 = vmatprep.mubr.msk.f32.mxu0 %vm6340_vm9, %v6333_v0  ;;  %6036 = vmatprep.subr.mxu0 %v6333_v0 }
0x1a80   :  { %5993 = vmatprep.mubr.msk.f32.mxu1 %vm6340_vm9, %v6333_v0 }
0x1a81   :  { %6029 = vmatmul.mubr.msk.f32.vlgmr.msra.gmra.mxu0 %vm1494_vm10, %v4432_v57  ;;  %v4599_v59 = vpop.permute.xlu0 %4598 }
0x1a82   :  { %6037 = vmatpush3.xpose.msk.msra.mxu0 %vm1494_vm10, %v4601_v58  ;;  %6038 = vmatprep.mubr.msk.f32.mxu0 %vm6340_vm9, %v6333_v0 }
0x1a85   :  { %6039 = vmatmul.mubr.msk.f32.vlgmr.msra.gmra.mxu0 %vm1494_vm10, %v4599_v59 }
0x1b35   :  { %v3990_v60 = vpop.f32.mrf.mxu0 }
0x1b36   :  { %v3994_v61 = vmul.f32 0.35355338, %v3990_v60 }
0x1b37   :  { %v6000_v62 = vpop.f32.mrf.mxu0 }
0x1b38   :  { %v3995_v63 = vsel %vm1330_vm11, %v3994_v61, -1e+30 }
0x1b39   :  { %v4171_v1 = vpop.f32.mrf.mxu0  ;;  %v3996_v2 = vsel %vm1494_vm10, %v3995_v63, -inf }
0x1b3a   :  { %v4175_v3 = vmul.f32 0.35355338, %v4171_v1  ;;  %3997 = vmax.xlane.f32.xlu0 %v3996_v2  ;;  %v7326_v4 = vpop.f32.mrf.mxu1 }
0x1b3b   :  { %v6010_v18 = vpop.f32.mrf.mxu0 }
0x1b3c   :  { %v4176_v5 = vsel %vm1330_vm11, %v4175_v3, -1e+30  ;;  %v5985_v8 = vpop.f32.mrf.mxu1 }
0x1b3d   :  { %v4338_v9 = vpop.f32.mrf.mxu0  ;;  %v4177_v10 = vsel %vm1494_vm10, %v4176_v5, -inf }
0x1b3e   :  { %4178 = vmax.xlane.f32.xlu0 %v4177_v10  ;;  %v3823_v35 = vpop.f32.mrf.mxu1  ;;  %v4342_v12 = vmul.f32 0.35355338, %v4338_v9 }
0x1b3f   :  { %v3827_v13 = vmul.f32 0.35355338, %v3823_v35  ;;  %v6020_v14 = vpop.f32.mrf.mxu0 }
0x1b40   :  { %v5990_v15 = vpop.f32.mrf.mxu1  ;;  %v4343_v22 = vsel %vm1330_vm11, %v4342_v12, -1e+30 }
0x1b41   :  { %v3828_v16 = vsel %vm1330_vm11, %v3827_v13, -1e+30  ;;  %v4505_v19 = vpop.f32.mrf.mxu0  ;;  %v4344_v28 = vsel %vm1494_vm10, %v4343_v22, -inf }
0x1b42   :  { %v4509_v20 = vmul.f32 0.35355338, %v4505_v19  ;;  %v3829_v21 = vsel %vm1494_vm10, %v3828_v16, -inf }
0x1b43   :  { %v6030_v23 = vpop.f32.mrf.mxu0  ;;  %3830 = vmax.xlane.f32.xlu1 %v3829_v21 }
0x1b44   :  { %v4510_v24 = vsel %vm1330_vm11, %v4509_v20, -1e+30 }
0x1b45   :  { %v4672_v25 = vpop.f32.mrf.mxu0  ;;  %v4511_v26 = vsel %vm1494_vm10, %v4510_v24, -inf }
0x1b46   :  { %v4676_v27 = vmul.f32 0.35355338, %v4672_v25  ;;  %4512 = vmax.xlane.f32.xlu0 %v4511_v26 }
0x1b47   :  { %v6040_v30 = vpop.f32.mrf.mxu0  ;;  %4345 = vmax.xlane.f32.xlu1 %v4344_v28  ;;  %v5465_v28 = vld [vmem:[%s7565_s11 + $0x30] sm:$0xff] }
0x1b48   :  { %v4677_v31 = vsel %vm1330_vm11, %v4676_v27, -1e+30  ;;  %v5466_v27 = vld [vmem:[%s7565_s11 + $0x38] sm:$0xff] }
0x1b49   :  { %v4678_v33 = vsel %vm1494_vm10, %v4677_v31, -inf  ;;  %6046 = vmatprep.subr.mxu0 %v5466_v27 }
0x1b4a   :  { %6047 = vmatpush3.msra.mxu0 %v5466_v27 }
0x1b4b   :  { %4679 = vmax.xlane.f32.xlu1 %v4678_v33  ;;  %6048 = vmatprep.subr.mxu0 %v5465_v28  ;;  %v5464_v33 = vld [vmem:[%s7565_s11 + $0x28] sm:$0xff] }
0x1b4c   :  { %6049 = vmatpush3.msra.mxu0 %v5465_v28 }
0x1b4d   :  { %6050 = vmatprep.subr.mxu0 %v5464_v33 }
0x1b4e   :  { %6051 = vmatpush3.msra.mxu0 %v5464_v33 }
0x1bc3   :  { %v3998_v6 = vpop.xlane.xlu0 %3997 }
0x1bc4   :  { %v3999_v7 = vsub.f32 %v3995_v63, %v3998_v6  ;;  %v5463_v6 = vld [vmem:[%s7565_s11 + $0x20] sm:$0xff] }
0x1bc5   :  { %6052 = vmatprep.subr.mxu0 %v5463_v6 }
0x1bc6   :  { %v4000_v34 = vmul.f32 1.442695, %v3999_v7  ;;  %6053 = vmatpush3.msra.mxu0 %v5463_v6 }
0x1bc7   :  { %v4179_v38 = vpop.xlane.xlu0 %4178 }
0x1bc8   :  { %6204 = vpow2.f32 %v4000_v34  ;;  %v4180_v39 = vsub.f32 %v4176_v5, %v4179_v38 }
0x1bca   :  { %v4181_v40 = vmul.f32 1.442695, %v4180_v39 }
0x1bcc   :  { %6206 = vpow2.f32 %v4181_v40  ;;  %v3831_v41 = vpop.xlane.xlu1 %3830 }
0x1bcd   :  { %v3832_v42 = vsub.f32 %v3828_v16, %v3831_v41 }
0x1bcf   :  { %v4513_v43 = vpop.xlane.xlu0 %4512  ;;  %v3833_v47 = vmul.f32 1.442695, %v3832_v42 }
0x1bd0   :  { %v4514_v44 = vsub.f32 %v4510_v24, %v4513_v43  ;;  %v4346_v45 = vpop.xlane.xlu1 %4345 }
0x1bd1   :  { %v4347_v46 = vsub.f32 %v4343_v22, %v4346_v45 }
0x1bd2   :  { %v4515_v37 = vmul.f32 1.442695, %v4514_v44 }
0x1bd3   :  { %v4348_v48 = vmul.f32 1.442695, %v4347_v46 }
0x1bd4   :  { %6208 = vpow2.f32 %v4515_v37  ;;  %v4680_v49 = vpop.xlane.xlu1 %4679 }
0x1bd5   :  { %v6205_v50 = vpop.eup %6204  ;;  %6210 = vpow2.f32 %v4348_v48  ;;  %v4681_v51 = vsub.f32 %v4677_v31, %v4680_v49 }
0x1bd6   :  { %6212 = vpow2.f32 %v3833_v47  ;;  %v4002_v52 = vsel %vm1494_vm10, %v6205_v50, 0.0 }
0x1bd7   :  { %v4682_v53 = vmul.f32 1.442695, %v4681_v51  ;;  %4003 = vadd.xlane.f32.xlu1 %v4002_v52 }
0x1bd9   :  { %v6207_v54 = vpop.eup %6206  ;;  %6214 = vpow2.f32 %v4682_v53 }
0x1bda   :  { %v4183_v55 = vsel %vm1494_vm10, %v6207_v54, 0.0 }
0x1bdb   :  { %4184 = vadd.xlane.f32.xlu0 %v4183_v55 }
0x1be1   :  { %v7345_v56 = vpop.eup %6208 }
0x1be2   :  { %v6211_v57 = vpop.eup %6210  ;;  %v4517_v58 = vsel %vm1494_vm10, %v7345_v56, 0.0 }
0x1be3   :  { %v6213_v59 = vpop.eup %6212  ;;  %4518 = vadd.xlane.f32.xlu0 %v4517_v58  ;;  %v4350_v60 = vsel %vm1494_vm10, %v6211_v57, 0.0 }
0x1be4   :  { %4351 = vadd.xlane.f32.xlu1 %v4350_v60  ;;  %v3835_v62 = vsel %vm1494_vm10, %v6213_v59, 0.0 }
0x1be6   :  { %v6215_v61 = vpop.eup %6214 }
0x1be7   :  { %3836 = vadd.xlane.f32.xlu0 %v3835_v62  ;;  %v4684_v63 = vsel %vm1494_vm10, %v6215_v61, 0.0 }
0x1be8   :  { %4685 = vadd.xlane.f32.xlu1 %v4684_v63 }
0x1bf9   :  { %4007 = vrot.lane.b32.xlu1 %v7232_v36, %s7617_s24 }
0x1bfd   :  { %3840 = vrot.lane.b32.xlu0 %v7232_v36, %s7618_s27  ;;  %4188 = vrot.lane.b32.xlu1 %v7230_v11, %s6336_s29 }
0x1c01   :  { %4355 = vrot.lane.b32.xlu0 %v7230_v11, %s7616_s2  ;;  %4522 = vrot.lane.b32.xlu1 %v7230_v11, %s7618_s27 }
0x1c05   :  { %4689 = vrot.lane.b32.xlu0 %v7230_v11, %s7617_s24  ;;  %4084 = vrot.lane.b32.xlu1 %v7326_v4, %s6331_s25 }
0x1c60   :  { %v4004_v3 = vpop.xlane.xlu1 %4003 }
0x1c64   :  { %v4185_v1 = vpop.xlane.xlu0 %4184 }
0x1c6c   :  { %v4519_v2 = vpop.xlane.xlu0 %4518 }
0x1c6d   :  { %v4352_v36 = vpop.xlane.xlu1 %4351 }
0x1c70   :  { %v3837_v18 = vpop.xlane.xlu0 %3836 }
0x1c71   :  { %6216 = vrcp.f32 %v3837_v18  ;;  %v4686_v8 = vpop.xlane.xlu1 %4685 }
0x1c72   :  { %6218 = vrcp.f32 %v4004_v3 }
0x1c73   :  { %6220 = vrcp.f32 %v4185_v1 }
0x1c74   :  { %v3841_v5 = vpop.permute.xlu0 %3840  ;;  %6222 = vrcp.f32 %v4352_v36 }
0x1c75   :  { %5992 = vmatpush3.msra.mxu1 %v3841_v5  ;;  %6224 = vrcp.f32 %v4519_v2  ;;  %v4008_v11 = vpop.permute.xlu1 %4007 }
0x1c76   :  { %6001 = vmatprep.subr.mxu1 %v6333_v0  ;;  %6226 = vrcp.f32 %v4686_v8 }
0x1c78   :  { %v4356_v16 = vpop.permute.xlu0 %4355 }
0x1c79   :  { %v4189_v13 = vpop.permute.xlu1 %4188 }
0x1c7c   :  { %v4690_v24 = vpop.permute.xlu0 %4689 }
0x1c7d   :  { %v4523_v21 = vpop.permute.xlu1 %4522 }
0x1c7e   :  { %v6217_v9 = vpop.eup %6216 }
0x1c7f   :  { %v3839_v10 = vmul.f32 %v6217_v9, %v6213_v59  ;;  %v6219_v35 = vpop.eup %6218 }
0x1c80   :  { %v4006_v4 = vmul.f32 %v6219_v35, %v6205_v50  ;;  %v6221_v12 = vpop.eup %6220 }
0x1c81   :  { %5994 = vmatmul.mubr.msk.f32.vlgmr.msra.gmra.mxu1 %vm1494_vm10, %v3839_v10  ;;  %v4187_v14 = vmul.f32 %v6221_v12, %v6207_v54  ;;  %v6223_v15 = vpop.eup %6222  ;;  %v4085_v45 = vpop.permute.xlu1 %4084 }
0x1c82   :  { %6002 = vmatpush3.msra.mxu1 %v4008_v11  ;;  %6003 = vmatprep.mubr.msk.f32.mxu1 %vm6340_vm9, %v6333_v0  ;;  %v4354_v19 = vmul.f32 %v6223_v15, %v6211_v57  ;;  %v6225_v20 = vpop.eup %6224  ;;  %v4095_v47 = vsel %vm1494_vm10, %v7261_v32, %v4085_v45  ;;  %v5470_v57 = vld [vmem:[%s7566_s12 + $0x1] ss:$0 sm:$0xff]  ;;  %v5499_v45 = vld [vmem:[%s7571_s17 + $0xf0] sm:$0xff] }
0x1c83   :  { %6011 = vmatprep.subr.mxu1 %v6333_v0  ;;  %v4521_v22 = vmul.f32 %v6225_v20, %v7345_v56  ;;  %v6227_v23 = vpop.eup %6226  ;;  %v5474_v15 = vld [vmem:[%s7568_s14 + $0x1] ss:$0 sm:$0xff]  ;;  %v5477_v20 = vld [vmem:[%s7569_s15 + $0x30] sm:$0xff] }
0x1c84   :  { %v4688_v25 = vmul.f32 %v6227_v23, %v6215_v61 }
0x1c85   :  { %6004 = vmatmul.mubr.msk.f32.vlgmr.msra.gmra.mxu1 %vm1494_vm10, %v4006_v4 }
0x1c86   :  { %6012 = vmatpush3.msra.mxu1 %v4189_v13  ;;  %6013 = vmatprep.mubr.msk.f32.mxu1 %vm6340_vm9, %v6333_v0 }
0x1c87   :  { %6021 = vmatprep.subr.mxu1 %v6333_v0 }
0x1c89   :  { %6014 = vmatmul.mubr.msk.f32.vlgmr.msra.gmra.mxu1 %vm1494_vm10, %v4187_v14 }
0x1c8a   :  { %6022 = vmatpush3.msra.mxu1 %v4356_v16  ;;  %6023 = vmatprep.mubr.msk.f32.mxu1 %vm6340_vm9, %v6333_v0  ;;  %v5473_v16 = vld [vmem:[%s7567_s13 + $0x1] ss:$0 sm:$0xff] }
0x1c8b   :  { %6031 = vmatprep.subr.mxu1 %v6333_v0 }
0x1c8d   :  { %6024 = vmatmul.mubr.msk.f32.vlgmr.msra.gmra.mxu1 %vm1494_vm10, %v4354_v19  ;;  %v5478_v19 = vld [vmem:[%s7569_s15 + $0x38] sm:$0xff] }
0x1c8e   :  { %6032 = vmatpush3.msra.mxu1 %v4523_v21  ;;  %6033 = vmatprep.mubr.msk.f32.mxu1 %vm6340_vm9, %v6333_v0  ;;  %v5476_v21 = vld [vmem:[%s7569_s15 + $0x28] sm:$0xff] }
0x1c8f   :  { %6041 = vmatprep.subr.mxu1 %v6333_v0 }
0x1c91   :  { %6034 = vmatmul.mubr.msk.f32.vlgmr.msra.gmra.mxu1 %vm1494_vm10, %v4521_v22  ;;  %v5475_v22 = vld [vmem:[%s7569_s15 + $0x20] sm:$0xff] }
0x1c92   :  { %6042 = vmatpush3.msra.mxu1 %v4690_v24  ;;  %6043 = vmatprep.mubr.msk.f32.mxu1 %vm6340_vm9, %v6333_v0 }
0x1c93   :  { %6057 = vmatprep.subr.mxu1 %v5478_v19 }
0x1c95   :  { %6044 = vmatmul.mubr.msk.f32.vlgmr.msra.gmra.mxu1 %vm1494_vm10, %v4688_v25 }
0x1c96   :  { %6058 = vmatpush3.msra.mxu1 %v5478_v19 }
0x1c97   :  { %6059 = vmatprep.subr.mxu1 %v5477_v20 }
0x1c98   :  { %6060 = vmatpush3.msra.mxu1 %v5477_v20 }
0x1c99   :  { %6061 = vmatprep.subr.mxu1 %v5476_v21 }
0x1c9a   :  { %6062 = vmatpush3.msra.mxu1 %v5476_v21 }
0x1c9b   :  { %6063 = vmatprep.subr.mxu1 %v5475_v22 }
0x1c9c   :  { %6064 = vmatpush3.msra.mxu1 %v5475_v22 }
0x1c9d   :  { %6103 = vmatprep.subr.mxu1 %v6333_v0 }
0x1d41   :  { %v3912_v26 = vpop.f32.mrf.mxu1 }
0x1d42   :  { %4088 = vrot.lane.b32.xlu0 %v3912_v26, %s6349_s5 }
0x1d43   :  { %v5995_v30 = vpop.f32.mrf.mxu1 }
0x1d45   :  { %v4079_v31 = vpop.f32.mrf.mxu1 }
0x1d46   :  { %4092 = vrot.lane.b32.xlu0 %v4079_v31, %s6350_s26 }
0x1d47   :  { %v6005_v7 = vpop.f32.mrf.mxu1 }
0x1d49   :  { %v4260_v34 = vpop.f32.mrf.mxu1 }
0x1d4b   :  { %v6015_v38 = vpop.f32.mrf.mxu1 }
0x1d4d   :  { %v4427_v39 = vpop.f32.mrf.mxu1 }
0x1d4e   :  { %4766 = vrot.lane.b32.xlu1 %v4427_v39, %s6331_s25 }
0x1d4f   :  { %v6025_v40 = vpop.f32.mrf.mxu1 }
0x1d51   :  { %v4594_v41 = vpop.f32.mrf.mxu1 }
0x1d52   :  { %4770 = vrot.lane.b32.xlu1 %v4594_v41, %s6349_s5 }
0x1d53   :  { %v6035_v42 = vpop.f32.mrf.mxu1 }
0x1d55   :  { %v4761_v43 = vpop.f32.mrf.mxu1 }
0x1d56   :  { %4774 = vrot.lane.b32.xlu0 %v4761_v43, %s6350_s26 }
0x1d57   :  { %v6045_v44 = vpop.f32.mrf.mxu1 }
0x1d58   :  { %v5500_v44 = vld [vmem:[%s7571_s17 + $0xf8] sm:$0xff] }
0x1d59   :  { %6068 = vmatprep.subr.mxu0 %v5500_v44 }
0x1db4   :  { %v4089_v46 = vpop.permute.xlu0 %4088 }
0x1db5   :  { %v4096_v37 = vsel %vm2172_vm12, %v4095_v47, %v4089_v46  ;;  %v5498_v46 = vld [vmem:[%s7571_s17 + $0xe8] sm:$0xff]  ;;  %v5497_v47 = vld [vmem:[%s7571_s17 + $0xe0] sm:$0xff] }
0x1db8   :  { %v4093_v48 = vpop.permute.xlu0 %4092 }
0x1db9   :  { %v4097_v49 = vsel %vm2174_vm13, %v4096_v37, %v4093_v48  ;;  %v5496_v37 = vld [vmem:[%s7571_s17 + $0xd8] sm:$0xff]  ;;  %v5495_v48 = vld [vmem:[%s7571_s17 + $0xd0] sm:$0xff] }
0x1dba   :  { %6054 = vmatprep.mubr.msk.f32.mxu0 %vm1272_vm8, %v4097_v49  ;;  %v5494_v49 = vld [vmem:[%s7571_s17 + $0xc8] sm:$0xff] }
0x1dc0   :  { %v4767_v50 = vpop.permute.xlu1 %4766 }
0x1dc1   :  { %v4777_v52 = vsel %vm1494_vm10, %v4260_v34, %v4767_v50  ;;  %v5493_v50 = vld [vmem:[%s7571_s17 + $0xc0] sm:$0xff] }
0x1dc4   :  { %v4771_v51 = vpop.permute.xlu1 %4770 }
0x1dc5   :  { %v4778_v53 = vsel %vm2172_vm12, %v4777_v52, %v4771_v51  ;;  %v5492_v51 = vld [vmem:[%s7571_s17 + $0xb8] sm:$0xff]  ;;  %v5491_v52 = vld [vmem:[%s7571_s17 + $0xb0] sm:$0xff] }
0x1dc8   :  { %v4775_v54 = vpop.permute.xlu0 %4774 }
0x1dc9   :  { %v4779_v55 = vsel %vm2174_vm13, %v4778_v53, %v4775_v54  ;;  %v5490_v53 = vld [vmem:[%s7571_s17 + $0xa8] sm:$0xff]  ;;  %v5489_v54 = vld [vmem:[%s7571_s17 + $0xa0] sm:$0xff] }
0x1dca   :  { %6055 = vmatmul.mubr.msk.f32.vlgmr.msra.gmra.mxu0 %vm1272_vm8, %v4779_v55  ;;  %v5488_v55 = vld [vmem:[%s7571_s17 + $0x98] sm:$0xff] }
0x1dcb   :  { %6069 = vmatpush3.msra.mxu0 %v5500_v44 }
0x1dcc   :  { %6070 = vmatprep.subr.mxu0 %v5499_v45 }
0x1dcd   :  { %6071 = vmatpush3.msra.mxu0 %v5499_v45 }
0x1dce   :  { %6072 = vmatprep.subr.mxu0 %v5498_v46 }
0x1dcf   :  { %6073 = vmatpush3.msra.mxu0 %v5498_v46 }
0x1dd0   :  { %6074 = vmatprep.subr.mxu0 %v5497_v47 }
0x1dd1   :  { %6075 = vmatpush3.msra.mxu0 %v5497_v47 }
0x1dd2   :  { %6076 = vmatprep.subr.mxu0 %v5496_v37 }
0x1dd3   :  { %6077 = vmatpush3.msra.mxu0 %v5496_v37 }
0x1dd4   :  { %6078 = vmatprep.subr.mxu0 %v5495_v48 }
0x1dd5   :  { %6079 = vmatpush3.msra.mxu0 %v5495_v48 }
0x1dd6   :  { %6080 = vmatprep.subr.mxu0 %v5494_v49 }
0x1dd7   :  { %6081 = vmatpush3.msra.mxu0 %v5494_v49 }
0x1dd8   :  { %6082 = vmatprep.subr.mxu0 %v5493_v50 }
0x1dd9   :  { %6083 = vmatpush3.msra.mxu0 %v5493_v50 }
0x1dda   :  { %6084 = vmatprep.subr.mxu0 %v5492_v51 }
0x1ddb   :  { %6085 = vmatpush3.msra.mxu0 %v5492_v51 }
0x1ddc   :  { %6086 = vmatprep.subr.mxu0 %v5491_v52 }
0x1ddd   :  { %6087 = vmatpush3.msra.mxu0 %v5491_v52 }
0x1dde   :  { %6088 = vmatprep.subr.mxu0 %v5490_v53 }
0x1ddf   :  { %6089 = vmatpush3.msra.mxu0 %v5490_v53 }
0x1de0   :  { %6090 = vmatprep.subr.mxu0 %v5489_v54 }
0x1de1   :  { %6091 = vmatpush3.msra.mxu0 %v5489_v54 }
0x1de2   :  { %6092 = vmatprep.subr.mxu0 %v5488_v55 }
0x1de3   :  { %6093 = vmatpush3.msra.mxu0 %v5488_v55 }
0x1e8a   :  { %v6056_v56 = vpop.f32.mrf.mxu0 }
0x1e8b   :  { %4870 = vrot.lane.b32.xlu0 %v6056_v56, %s6338_s3  ;;  %v5487_v56 = vld [vmem:[%s7571_s17 + $0x90] sm:$0xff] }
0x1e8c   :  { %v4857_v32 = vpop.f32.mrf.mxu0  ;;  %6094 = vmatprep.subr.mxu0 %v5487_v56 }
0x1e8d   :  { %4868 = vrot.lane.b32.xlu1 %v4857_v32, %s6338_s3  ;;  %6095 = vmatpush3.msra.mxu0 %v5487_v56  ;;  %v5486_v32 = vld [vmem:[%s7571_s17 + $0x88] sm:$0xff] }
0x1e8e   :  { %6096 = vmatprep.subr.mxu0 %v5486_v32 }
0x1e8f   :  { %6097 = vmatpush3.msra.mxu0 %v5486_v32 }
0x1e91   :  { %4883 = vrot.lane.b32.xlu1 %v5470_v57, %s6338_s3  ;;  %v5485_v57 = vld [vmem:[%s7571_s17 + $0x80] sm:$0xff] }
0x1e92   :  { %6098 = vmatprep.subr.mxu0 %v5485_v57 }
0x1e93   :  { %6099 = vmatpush3.msra.mxu0 %v5485_v57 }
0x1efd   :  { %v4871_v58 = vpop.permute.xlu0 %4870 }
0x1efe   :  { %v4875_v60 = vadd.f32 %v4871_v58, %v7186_v29  ;;  %v5480_v58 = vld [vmem:[%s7570_s16 + $0x1] ss:$0 sm:$0xff] }
0x1eff   :  { %v4869_v59 = vpop.permute.xlu1 %4868 }
0x1f00   :  { %v4874_v61 = vadd.f32 %v4869_v59, %v7184_v17 }
0x1f03   :  { %v4884_v62 = vpop.permute.xlu1 %4883 }
0x1f04   :  { %v7422_v63 = vadd.f32 %v4884_v62, %v4874_v61  ;;  %v7424_v1 = vadd.f32 %v4884_v62, %v4875_v60 }
0x1f06   :  { %4896 = vrot.lane.b32.xlu1 %v7424_v1, %s6339_s28  ;;  %4894 = vrot.lane.b32.xlu0 %v7422_v63, %s6339_s28 }
0x1f78   :  { %v4897_v2 = vpop.permute.xlu1 %4896  ;;  %v4895_v3 = vpop.permute.xlu0 %4894 }
0x1f79   :  { %v4903_v18 = vsel %vm1272_vm8, %v4897_v2, 0.0  ;;  %v4900_v36 = vsel %vm1272_vm8, %v4895_v3, 0.0 }
0x1f7a   :  { %4904 = vadd.xlane.f32.xlu1 %v4903_v18  ;;  %4901 = vadd.xlane.f32.xlu0 %v4900_v36 }
0x2003   :  { %v4905_v17 = vpop.xlane.xlu1 %4904  ;;  %v4902_v29 = vpop.xlane.xlu0 %4901 }
0x2004   :  { %v4907_v5 = vmul.f32 0.03125, %v4905_v17  ;;  %v4906_v8 = vmul.f32 0.03125, %v4902_v29 }
0x2006   :  { %v4909_v9 = vsub.f32 %v7424_v1, %v4907_v5  ;;  %v4908_v11 = vsub.f32 %v7422_v63, %v4906_v8 }
0x2008   :  { %v4911_v10 = vmul.f32 %v4909_v9, %v4909_v9  ;;  %v4910_v35 = vmul.f32 %v4908_v11, %v4908_v11 }
0x200a   :  { %4916 = vrot.lane.b32.xlu1 %v4911_v10, %s6339_s28  ;;  %4914 = vrot.lane.b32.xlu0 %v4910_v35, %s6339_s28 }
0x207c   :  { %v4917_v4 = vpop.permute.xlu1 %4916  ;;  %v4915_v12 = vpop.permute.xlu0 %4914 }
0x207d   :  { %v4923_v13 = vsel %vm1272_vm8, %v4917_v4, 0.0  ;;  %v4920_v14 = vsel %vm1272_vm8, %v4915_v12, 0.0 }
0x207e   :  { %4924 = vadd.xlane.f32.xlu1 %v4923_v13  ;;  %4921 = vadd.xlane.f32.xlu0 %v4920_v14  ;;  %v5502_v13 = vld [vmem:[%s7572_s18 + $0x1] ss:$0 sm:$0xff] }
0x208f   :  { %4949 = vrot.lane.b32.xlu1 %v5474_v15, %s6338_s3 }
0x2094   :  { %4939 = vrot.lane.b32.xlu0 %v5473_v16, %s6338_s3 }
0x2107   :  { %v4925_v23 = vpop.xlane.xlu1 %4924  ;;  %v4922_v24 = vpop.xlane.xlu0 %4921 }
0x2108   :  { %v4927_v25 = vmul.f32 0.03125, %v4925_v23  ;;  %v4926_v26 = vmul.f32 0.03125, %v4922_v24 }
0x210a   :  { %v4929_v27 = vadd.f32 1e-05, %v4927_v25  ;;  %v4928_v28 = vadd.f32 1e-05, %v4926_v26 }
0x210b   :  { %v4940_v31 = vpop.permute.xlu0 %4939  ;;  %v4950_v34 = vpop.permute.xlu1 %4949 }
0x210c   :  { %6228 = vrsqrt.f32 %v4929_v27  ;;  %v5503_v27 = vld [vmem:[%s7573_s19] ss:$0 sm:$0xff] }
0x210d   :  { %6230 = vrsqrt.f32 %v4928_v28 }
0x2119   :  { %v6229_v30 = vpop.eup %6228 }
0x211a   :  { %v6231_v33 = vpop.eup %6230  ;;  %v4933_v6 = vmul.f32 %v6229_v30, %v4909_v9 }
0x211b   :  { %v4932_v7 = vmul.f32 %v6231_v33, %v4908_v11 }
0x211c   :  { %v4943_v38 = vmul.f32 %v4940_v31, %v4933_v6  ;;  %v5504_v6 = vld [vmem:[%s7574_s20] ss:$0 sm:$0xff] }
0x211d   :  { %v4942_v39 = vmul.f32 %v4940_v31, %v4932_v7  ;;  %v5232_v7 = vld [vmem:[%s7575_s21 + $0x18] sm:$0xff] }
0x211e   :  { %v4953_v40 = vadd.f32 %v4950_v34, %v4943_v38  ;;  %v5230_v38 = vld [vmem:[%s7575_s21 + $0x8] sm:$0xff] }
0x211f   :  { %v4952_v41 = vadd.f32 %v4950_v34, %v4942_v39  ;;  %v5231_v34 = vld [vmem:[%s7575_s21 + $0x10] sm:$0xff]  ;;  %v5229_v39 = vld [vmem:[%s7575_s21] sm:$0xff]  ;;  %s6351_s21 = smov [#allocation8]  }
0x2120   :  { %4971 = vrot.lane.b32.xlu1 %v4953_v40, %s6339_s28  ;;  %s5316_s29 = sshll.u32 %s6351_s21, 4  ;;  %s5317_s29 = int_to_ptr.vmem [resolvable:$true] %s5316_s29 }
0x2121   :  { %4969 = vrot.lane.b32.xlu0 %v4952_v41, %s6339_s28  ;;  %s6302_s13 = scalar_lea.vmem %s5317_s29, 32  ;;  %p6307_p2 = scmp.lt.s32.totalorder %s5317_s29, %s5317_s29 }
0x2122   :  { %p6303_p1 = scmp.ne.s32.totalorder %s5317_s29, %s6302_s13  ;;  %p6308_p3 = scmp.lt.s32.totalorder %s6302_s13, %s6302_s13 }
0x2124   :  { %p6309_p4 = por %p6308_p3, %p6307_p2 }
0x2126   :  { %p6310_p5 = pnand %p6309_p4, %p6303_p1 }
0x2192   :  { %v4972_v42 = vpop.permute.xlu1 %4971 }
0x2193   :  { %v4970_v43 = vpop.permute.xlu0 %4969 }
0x2194   :  { %6065 = vmatprep.mubr.msk.f32.mxu1 %vm1272_vm8, %v4970_v43 }
0x2195   :  { %6066 = vmatmul.mubr.msk.f32.vlgmr.msra.gmra.mxu1 %vm1272_vm8, %v4972_v42 }
0x2196   :  { %6111 = vmatprep.mubr.msk.f32.mxu1 %vm6340_vm9, %v6333_v0  ;;  %6104 = vmatpush3.msra.mxu1 %v5232_v7 }
0x2197   :  { %6105 = vmatprep.subr.mxu1 %v6333_v0 }
0x2198   :  { %6106 = vmatpush3.msra.mxu1 %v5231_v34 }
0x2199   :  { %6107 = vmatprep.subr.mxu1 %v6333_v0 }
0x219a   :  { %6108 = vmatpush3.msra.mxu1 %v5230_v38 }
0x219b   :  { %6109 = vmatprep.subr.mxu1 %v6333_v0 }
0x219c   :  { %6110 = vmatpush3.msra.mxu1 %v5229_v39 }
0x2255   :  { %v6067_v59 = vpop.f32.mrf.mxu1 }
0x2256   :  { %v5049_v60 = vadd.f32 %v6067_v59, %v5480_v58 }
0x2257   :  { %v5043_v61 = vpop.f32.mrf.mxu1 }
0x2258   :  { %v5484_v62 = vmul.f32 -1.702, %v5049_v60  ;;  %v5044_v2 = vadd.f32 %v5480_v58, %v5043_v61 }
0x225a   :  { %v5058_v3 = vmul.f32 1.442695, %v5484_v62  ;;  %v5483_v18 = vmul.f32 -1.702, %v5044_v2 }
0x225c   :  { %6232 = vpow2.f32 %v5058_v3  ;;  %v5056_v36 = vmul.f32 1.442695, %v5483_v18 }
0x225e   :  { %6234 = vpow2.f32 %v5056_v36 }
0x2269   :  { %v6233_v17 = vpop.eup %6232 }
0x226a   :  { %v5061_v29 = vadd.f32 1.0, %v6233_v17 }
0x226b   :  { %v6235_v5 = vpop.eup %6234 }
0x226c   :  { %v5060_v8 = vadd.f32 1.0, %v6235_v5  ;;  %6236 = vrcp.f32 %v5061_v29 }
0x226e   :  { %6238 = vrcp.f32 %v5060_v8 }
0x2279   :  { %v6237_v9 = vpop.eup %6236 }
0x227a   :  { %v5067_v35 = vmul.f32 %v6237_v9, %v5049_v60 }
0x227b   :  { %v6239_v11 = vpop.eup %6238 }
0x227c   :  { %v5066_v10 = vmul.f32 %v6239_v11, %v5044_v2 }
0x227e   :  { %6100 = vmatprep.mubr.f32.mxu0 %v5066_v10 }
0x227f   :  { %6101 = vmatmul.mubr.f32.vlgmr.msra.gmra.mxu0 %v5067_v35 }
0x233f   :  { %v6102_v4 = vpop.f32.mrf.mxu0 }
0x2340   :  { %5164 = vrot.lane.b32.xlu0 %v6102_v4, %s6338_s3 }
0x2341   :  { %v5151_v12 = vpop.f32.mrf.mxu0 }
0x2342   :  { %5162 = vrot.lane.b32.xlu1 %v5151_v12, %s6338_s3 }
0x2344   :  { %5177 = vrot.lane.b32.xlu0 %v5502_v13, %s6338_s3 }
0x23b2   :  { %v5165_v14 = vpop.permute.xlu0 %5164 }
0x23b3   :  { %v5169_v16 = vadd.f32 %v5165_v14, %v7424_v1 }
0x23b4   :  { %v5163_v15 = vpop.permute.xlu1 %5162 }
0x23b5   :  { %v5168_v19 = vadd.f32 %v5163_v15, %v7422_v63 }
0x23b6   :  { %v5178_v20 = vpop.permute.xlu0 %5177 }
0x23b7   :  { %v5181_v21 = vadd.f32 %v5178_v20, %v5169_v16  ;;  %v5180_v22 = vadd.f32 %v5178_v20, %v5168_v19 }
0x23b9   :  { %v5183_v23 = vrot.slane %v5181_v21, 7 }
0x23bb   :  { %v5186_v24 = vsel %vm5185_vm14, %v5180_v22, %v5183_v23 }
0x23bc   :  { %5190 = vrot.lane.b32.xlu1 %v5186_v24, %s6339_s28 }
0x242e   :  { %v5191_v25 = vpop.permute.xlu1 %5190 }
0x242f   :  { %v5194_v26 = vsel %vm5193_vm15, %v5191_v25, 0.0 }
0x2430   :  { %5195 = vadd.xlane.f32.xlu0 %v5194_v26 }
0x2446   :  { %5216 = vrot.lane.b32.xlu0 %v5503_v27, %s6338_s3 }
0x24b9   :  { %v5196_v1 = vpop.xlane.xlu0 %5195 }
0x24ba   :  { %v5197_v63 = vmul.f32 0.03125, %v5196_v1 }
0x24bc   :  { %v5198_v28 = vsub.f32 %v5186_v24, %v5197_v63 }
0x24bd   :  { %v5217_v44 = vpop.permute.xlu0 %5216 }
0x24be   :  { %v5199_v30 = vmul.f32 %v5198_v28, %v5198_v28 }
0x24c0   :  { %5201 = vrot.lane.b32.xlu1 %v5199_v30, %s6339_s28 }
0x2532   :  { %v5202_v31 = vpop.permute.xlu1 %5201 }
0x2533   :  { %v5204_v33 = vsel %vm5193_vm15, %v5202_v31, 0.0 }
0x2534   :  { %5205 = vadd.xlane.f32.xlu1 %v5204_v33 }
0x2545   :  { %5225 = vrot.lane.b32.xlu1 %v5504_v6, %s6338_s3 }
0x25bd   :  { %v5206_v40 = vpop.xlane.xlu1 %5205 }
0x25be   :  { %v5207_v41 = vmul.f32 0.03125, %v5206_v40 }
0x25c0   :  { %v5208_v42 = vadd.f32 1e-05, %v5207_v41 }
0x25c1   :  { %v5226_v46 = vpop.permute.xlu1 %5225 }
0x25c2   :  { %6240 = vrsqrt.f32 %v5208_v42 }
0x25cf   :  { %v6241_v43 = vpop.eup %6240 }
0x25d0   :  { %v5210_v45 = vmul.f32 %v6241_v43, %v5198_v28 }
0x25d2   :  { %v5219_v47 = vmul.f32 %v5217_v44, %v5210_v45 }
0x25d4   :  { %v5228_v37 = vadd.f32 %v5226_v46, %v5219_v47 }
0x25d6   :  { %5234 = vrot.lane.b32.xlu0 %v5228_v37, %s6339_s28 }
0x2648   :  { %v5235_v48 = vpop.permute.xlu0 %5234 }
0x2649   :  { %6112 = vmatmul.mubr.msk.f32.vlgmr.msra.gmra.mxu1 %vm1272_vm8, %v5235_v48 }
0x2709   :  { %v5304_v0 = vpop.f32.mrf.mxu1 }
0x270a   :  { %5309 = vst.msk [vmem:[#allocation8] sm:$0x3] %vm5308_vm0, %v5304_v0 }
0x270b   :  { %v6113_v49 = vpop.f32.mrf.mxu1 }
0x270c   :  { %6313 = shalt.err (!%p6310_p5)
}
0x270d   :  { %5319 = dma.vmem_to_hbm [thread:$0]  %s5317_s29, 32, %s7576_s22, [#allocation4]  }
0x270e   :  { %6326 = dma.done.wait [#allocation4], 32  }
0x270f   :  { %6327 = vsyncadd [#allocation4], 4294967264 }
0x2710   :  { %5323 = vsyncpa [#allocation3], 1 }
0x2711   :  { %5324 = vsyncpa [#allocation6], 1 }
0x2712   :  { %5325 = vsyncpa [#allocation4], 1 }

</bundles_post_ra>
